<compile_context>
chip_gen: v7x
topology: tpu7x:2x2x1
jax: 0.10.0
libtpu: 0.0.40
codegen_flags: <defaults>
</compile_context>

<pallas_src>
import jax
import jax.numpy as jnp
from jax import lax
from jax.experimental import pallas as pl
from jax.experimental.pallas import tpu as pltpu


def _round_up(x, m):
    return ((x + m - 1) // m) * m


# -----------------------------------------------------------------------------
# Fused Pallas kernel: whole ResBlock1 on one (batch, time-tile) window
# -----------------------------------------------------------------------------
def _make_fused_kernel(*, K, dilations, lrelu_slope, T_true, T_in, tT, nT,
                       Hpad, Cp, PB):
    W = tT + 2 * Hpad              # halo-extended window length (rows)
    n_iter = len(dilations)

    def lrelu(v):
        return jnp.where(v >= 0, v, lrelu_slope * v)

    def kernel(x_hbm, w1_ref, b1_ref, w2_ref, b2_ref, o_ref, win, padbuf, sem):
        b = pl.program_id(0)
        t = pl.program_id(1)
        slot = t % 2

        # ---- halo-window DMA, double-buffered along the t axis -------------
        # The window of tile tt covers global rows [tt*tT - Hpad,
        # tt*tT + tT + Hpad); only its intersection with [0, T_in) is
        # transferred (static-size edge cases), the rest is masked below.
        # The same case structure is used for start and wait so the transfer
        # byte counts agree.
        def window_dma(bb, tt, sl, start):
            def run(src, dst):
                cp = pltpu.make_async_copy(src, dst, sem.at[sl])
                if start:
                    cp.start()
                else:
                    cp.wait()

            if nT == 1:                                    # single static case
                run(x_hbm.at[bb, pl.ds(0, T_in), :],
                    win.at[sl, pl.ds(Hpad, T_in), :])
                return

            last = nT - 1
            L_first = tT + Hpad
            src_last = last * tT - Hpad
            L_last = T_in - src_last

            @pl.when(tt == 0)
            def _():
                run(x_hbm.at[bb, pl.ds(0, L_first), :],
                    win.at[sl, pl.ds(Hpad, L_first), :])

            @pl.when(tt == last)
            def _():
                run(x_hbm.at[bb, pl.ds(src_last, L_last), :],
                    win.at[sl, pl.ds(0, L_last), :])

            if nT > 2:
                @pl.when(jnp.logical_and(tt > 0, tt < last))
                def _():
                    src0 = pl.multiple_of(tt * tT - Hpad, 8)
                    run(x_hbm.at[bb, pl.ds(src0, W), :],
                        win.at[sl, pl.ds(0, W), :])

        @pl.when(t == 0)                      # first tile of this batch row
        def _():
            window_dma(b, t, slot, True)

        if nT > 1:                            # prefetch next tile's window
            @pl.when(t + 1 < nT)
            def _():
                window_dma(b, t + 1, 1 - slot, True)

        window_dma(b, t, slot, False)         # wait for the current window

        # validity of each window row w.r.t. the true (unpadded) sequence
        gidx = (t * tT - Hpad) + lax.broadcasted_iota(jnp.int32, (W, 1), 0)
        valid = jnp.logical_and(gidx >= 0, gidx < T_true)

        # Zero the aligned border bands of the tap scratch.  Kept per-step on
        # purpose: scratch is per-core, so a one-time program_id==0 init would
        # break under megacore partitioning of the b axis.
        zb = jnp.zeros((PB, Cp), padbuf.dtype)
        padbuf[0:PB, :] = zb
        padbuf[PB + W:PB + W + PB, :] = zb

        def conv_same(v, w_ref, b_ref, i, d):
            # 'same'-padded dilated conv as K accumulating MXU matmuls (no
            # (W, K*Cp) concat buffer): the activation is cast to bf16 once,
            # then each dilated tap is a static slice of the zero-bordered
            # scratch feeding one (W,Cp)x(Cp,Cp) matmul with f32 accumulation.
            pad = (K - 1) * d // 2
            padbuf[PB:PB + W, :] = v.astype(padbuf.dtype)     # aligned store
            out = None
            for k in range(K):
                lo = PB - pad + k * d
                p = jnp.dot(padbuf[lo:lo + W, :], w_ref[i, k],
                            preferred_element_type=jnp.float32)
                out = p if out is None else out + p
            return out + b_ref[i]                             # (W, Cp) f32

        # rows outside [0, T_true) (and un-DMA'd window rows carrying stale
        # data) must act as the sequence-boundary zero padding.
        x = jnp.where(valid, win[slot], 0.0)                  # (W, Cp) f32
        for i in range(n_iter):                               # fully unrolled
            d = dilations[i]
            xt = lrelu(x)
            xt = conv_same(xt, w1_ref, b1_ref, i, d)
            xt = jnp.where(valid, xt, 0.0)
            xt = lrelu(xt)
            xt = conv_same(xt, w2_ref, b2_ref, i, 1)          # gamma folded in
            xt = jnp.where(valid, xt, 0.0)
            x = x + xt

        # central tT rows only; Hpad is a multiple of 8 -> sublane-aligned
        o_ref[0] = x[Hpad:Hpad + tT, :].astype(o_ref.dtype)

    return kernel


# -----------------------------------------------------------------------------
# Wrapper: packing, tiling, pallas_call
# -----------------------------------------------------------------------------
def resblock1_forward(x_btc, params, *, kernel_size=3, dilation=(1, 3, 5),
                      lrelu_slope=0.1, block_t=1024, mxu_dtype=jnp.bfloat16,
                      vmem_budget_bytes=56 * 2**20):
    """x_btc: (B, T, C) float32.

    params[i] = (w1 (K,Cin,Cout), b1 (C,), w2 (K,Cin,Cout), b2 (C,),
                 gamma (C,) or None).  weight_norm must already be folded into
    w1/w2 (it is the identity at init / after remove_weight_norm).
    """
    assert kernel_size % 2 == 1, "symmetric 'same' padding requires odd kernel"
    B, T, C = x_btc.shape
    K = kernel_size
    dilations = tuple(dilation)
    n_iter = len(dilations)

    Cp = _round_up(C, 128)                          # lane-dense channel dim
    H = sum((K - 1) * d // 2 for d in dilations) + n_iter * ((K - 1) // 2)
    Hpad = _round_up(max(H, 8), 8)                  # sublane-aligned halo
    PB = _round_up(max((K - 1) * max(dilations) // 2, 1), 8)
    wbytes = jnp.dtype(mxu_dtype).itemsize

    def vmem_need(tt):
        w = tt + 2 * Hpad
        weights = 2 * n_iter * K * Cp * Cp * wbytes        # W1 + W2
        biases = 2 * n_iter * Cp * 4                       # B1 + B2
        return (2 * (weights + biases)          # pipeline may double-buffer
                + 2 * w * Cp * 4                # window double buffer
                + (w + 2 * PB) * Cp * wbytes    # tap scratch
                + 2 * tt * Cp * 4)              # output double buffer

    # time-tile size: as large as the (v7x-safe, 64 MiB/TC) budget allows
    tT = max(Hpad, min(_round_up(block_t, 8), _round_up(T, 8)))
    while vmem_need(tT) > vmem_budget_bytes and tT > 128:
        tT = max(128, _round_up(tT // 2, 8))
    nT = -(-T // tT)
    W = tT + 2 * Hpad

    # Sequence-boundary halos are handled in-kernel (clamped edge DMAs + the
    # validity mask).  A wrapper-side zero pad is only needed when (a) channels
    # are not a multiple of 128 lanes, or (b) the last tile is too thin
    # (< Hpad valid rows) for the static edge-DMA cases.
    r = T - (nT - 1) * tT
    fast_time = (nT == 1) or (r >= Hpad)
    T_in = T if fast_time else nT * tT
    pad_t = T_in - T
    pad_c = Cp - C
    if pad_t or pad_c:
        x_in = jnp.pad(x_btc.astype(jnp.float32),
                       ((0, 0), (0, pad_t), (0, pad_c)))
    else:
        x_in = x_btc.astype(jnp.float32)

    # Pack weights as (n_iter, K, Cp, Cp) bf16 for the K accumulating matmuls.
    # gamma (layer scale) is folded into conv2's weights/bias at pack time.
    W1 = jnp.zeros((n_iter, K, Cp, Cp), mxu_dtype)
    W2 = jnp.zeros((n_iter, K, Cp, Cp), mxu_dtype)
    B1 = jnp.zeros((n_iter, 1, Cp), jnp.float32)
    B2 = jnp.zeros((n_iter, 1, Cp), jnp.float32)
    for i, (w1, b1, w2, b2, gamma) in enumerate(params):
        w2f = w2.astype(jnp.float32)
        b2f = b2.astype(jnp.float32)
        if gamma is not None:
            g = gamma.reshape(-1).astype(jnp.float32)
            w2f = w2f * g[None, None, :]        # scale output channels
            b2f = b2f * g
        W1 = W1.at[i, :, :C, :C].set(w1.astype(mxu_dtype))
        W2 = W2.at[i, :, :C, :C].set(w2f.astype(mxu_dtype))
        B1 = B1.at[i, 0, :C].set(b1.astype(jnp.float32))
        B2 = B2.at[i, 0, :C].set(b2f)

    kern = _make_fused_kernel(K=K, dilations=dilations,
                              lrelu_slope=lrelu_slope, T_true=T, T_in=T_in,
                              tT=tT, nT=nT, Hpad=Hpad, Cp=Cp, PB=PB)

    cmap4 = lambda b, t: (0, 0, 0, 0)
    cmap3 = lambda b, t: (0, 0, 0)
    in_specs = [
        pl.BlockSpec(memory_space=pl.ANY),              # x (manual halo DMA)
        pl.BlockSpec((n_iter, K, Cp, Cp), cmap4),       # conv1 weights (bf16)
        pl.BlockSpec((n_iter, 1, Cp), cmap3),           # conv1 bias   (f32)
        pl.BlockSpec((n_iter, K, Cp, Cp), cmap4),       # conv2 weights (bf16)
        pl.BlockSpec((n_iter, 1, Cp), cmap3),           # conv2 bias   (f32)
    ]

    out = pl.pallas_call(
        kern,
        out_shape=jax.ShapeDtypeStruct((B, nT * tT, Cp), jnp.float32),
        grid=(B, nT),
        in_specs=in_specs,
        out_specs=pl.BlockSpec((1, tT, Cp), lambda b, t: (b, t, 0)),
        scratch_shapes=[
            pltpu.VMEM((2, W, Cp), jnp.float32),        # double-buffered window
            pltpu.VMEM((W + 2 * PB, Cp), mxu_dtype),    # zero-bordered taps
            pltpu.SemaphoreType.DMA((2,)),
        ],
        compiler_params=pltpu.CompilerParams(
            # b is megacore-parallel (v7x); t must stay "arbitrary": the
            # in-kernel double-buffered prefetch chain relies on sequential,
            # in-order iteration over t for a fixed b.
            dimension_semantics=("parallel", "arbitrary"),
            vmem_limit_bytes=int(min(max(vmem_need(tT) + 8 * 2**20,
                                         32 * 2**20), 64 * 2**20)),
        ),
    )(x_in, W1, B1, W2, B2)

    if nT * tT != T or Cp != C:     # no-op in the production configuration
        out = out[:, :T, :C]
    return out


# -----------------------------------------------------------------------------
# Parameter init (weight_norm at init == identity, so plain random weights)
# -----------------------------------------------------------------------------
def init_resblock1_params(key, dim, kernel_size=3, dilation=(1, 3, 5),
                          layer_scale_init_value=None):
    params = []
    scale = 0.5 / (kernel_size * dim) ** 0.5
    for _ in range(len(dilation)):
        key, k1, k2, k3, k4 = jax.random.split(key, 5)
        w1 = jax.random.normal(k1, (kernel_size, dim, dim), jnp.float32) * scale
        b1 = jax.random.normal(k2, (dim,), jnp.float32) * 0.1
        w2 = jax.random.normal(k3, (kernel_size, dim, dim), jnp.float32) * scale
        b2 = jax.random.normal(k4, (dim,), jnp.float32) * 0.1
        gamma = (jnp.full((dim,), layer_scale_init_value, jnp.float32)
                 if layer_scale_init_value is not None else None)
        params.append((w1, b1, w2, b2, gamma))
    return params


# -----------------------------------------------------------------------------
# Pure-JAX reference with PyTorch (NCT) semantics
# -----------------------------------------------------------------------------
def _ref_conv1d(x_nct, w_kio, b, dilation, kernel_size, matmul_dtype):
    w_oik = jnp.transpose(w_kio, (2, 1, 0)).astype(matmul_dtype)
    pad = (kernel_size * dilation - dilation) // 2
    y = lax.conv_general_dilated(
        x_nct.astype(matmul_dtype), w_oik,
        window_strides=(1,), padding=[(pad, pad)],
        rhs_dilation=(dilation,),
        dimension_numbers=("NCH", "OIH", "NCH"),
        preferred_element_type=jnp.float32)
    return y + b.reshape(1, -1, 1)


def resblock1_reference(x_nct, params, *, kernel_size=3, dilation=(1, 3, 5),
                        lrelu_slope=0.1, matmul_dtype=jnp.float32):
    def lrelu(v):
        return jnp.where(v >= 0, v, lrelu_slope * v)

    x = x_nct
    for (w1, b1, w2, b2, gamma), d in zip(params, dilation):
        xt = lrelu(x)
        xt = _ref_conv1d(xt, w1, b1, d, kernel_size, matmul_dtype)
        xt = lrelu(xt)
        xt = _ref_conv1d(xt, w2, b2, 1, kernel_size, matmul_dtype)
        if gamma is not None:
            xt = gamma.reshape(1, -1, 1) * xt
        x = xt + x
    return x


# -----------------------------------------------------------------------------
if __name__ == "__main__":
    kernel_size, dilation, slope = 3, (1, 3, 5), 0.1
    key = jax.random.PRNGKey(0)

    configs = [
        # (B,   T,   C, block_t, layer_scale_init_value)
        (2, 256, 32, 64, None),     # multi-tile fast path, channel padding
        (2, 256, 32, 64, 0.1),      # + layer scale folded into conv2
        (2, 256, 128, 1024, None),  # single-tile path, zero wrapper copies
        (1, 250, 32, 64, None),     # ragged T, partial last tile (fast path)
        (2, 200, 32, 64, 0.1),      # thin last tile -> wrapper time-pad fallback
    ]

    for (B, T, C, bt, ls) in configs:
        key, xk, pk = jax.random.split(key, 3)
        x_btc = jax.random.normal(xk, (B, T, C), jnp.float32)
        params = init_resblock1_params(pk, C, kernel_size, dilation, ls)

        out = resblock1_forward(x_btc, params, kernel_size=kernel_size,
                                dilation=dilation, lrelu_slope=slope,
                                block_t=bt)
        out = jax.block_until_ready(out)
        assert out.shape == (B, T, C), (out.shape, (B, T, C))

        x_nct = jnp.transpose(x_btc, (0, 2, 1))
        ref16 = jnp.transpose(resblock1_reference(
            x_nct, params, kernel_size=kernel_size, dilation=dilation,
            lrelu_slope=slope, matmul_dtype=jnp.bfloat16), (0, 2, 1))
        ref32 = jnp.transpose(resblock1_reference(
            x_nct, params, kernel_size=kernel_size, dilation=dilation,
            lrelu_slope=slope, matmul_dtype=jnp.float32), (0, 2, 1))

        err16 = float(jnp.max(jnp.abs(out - ref16)))
        err32 = float(jnp.max(jnp.abs(out - ref32)))
        if not (err16 < 3e-2):
            raise AssertionError(
                f"cfg {(B, T, C, bt, ls)}: mismatch vs bf16 ref: {err16}")
        if not (err32 < 2e-1):
            raise AssertionError(
                f"cfg {(B, T, C, bt, ls)}: mismatch vs f32 ref: {err32}")

    print("KERNEL_OK")
</pallas_src>

<mosaic_0001>
module attributes {stable_mosaic.version = 11 : i64} {
  func.func @kernel(%arg0: i32, %arg1: i32, %arg2: memref<2x256x128xf32, #tpu.memory_space<any>>, %arg3: memref<3x3x128x128xbf16, #tpu.memory_space<vmem>>, %arg4: memref<3x1x128xf32, #tpu.memory_space<vmem>>, %arg5: memref<3x3x128x128xbf16, #tpu.memory_space<vmem>>, %arg6: memref<3x1x128xf32, #tpu.memory_space<vmem>>, %arg7: memref<1x64x128xf32, #tpu.memory_space<vmem>>, %arg8: memref<2x96x128xf32, #tpu.memory_space<vmem>>, %arg9: memref<112x128xbf16, #tpu.memory_space<vmem>>, %arg10: memref<2x!tpu.dma_semaphore, #tpu.memory_space<semaphore_mem>>) attributes {dimension_semantics = [#tpu.dimension_semantics<parallel>, #tpu.dimension_semantics<arbitrary>], iteration_bounds = array<i64: 2, 4>, scalar_prefetch = 0 : i64, scratch_operands = 3 : i64, tpu.core_type = #tpu.core_type<tc>, window_params = [{}, {pipeline_mode = #tpu.pipeline_mode<synchronous>, transform_indices = @transform_1, window_bounds = array<i64: 3, 3, 128, 128>}, {pipeline_mode = #tpu.pipeline_mode<synchronous>, transform_indices = @transform_2, window_bounds = array<i64: 3, 1, 128>}, {pipeline_mode = #tpu.pipeline_mode<synchronous>, transform_indices = @transform_3, window_bounds = array<i64: 3, 3, 128, 128>}, {pipeline_mode = #tpu.pipeline_mode<synchronous>, transform_indices = @transform_4, window_bounds = array<i64: 3, 1, 128>}, {transform_indices = @transform_5, window_bounds = array<i64: 1, 64, 128>}]} {
    %c2_i32 = arith.constant 2 : i32
    %c0_i32 = arith.constant 0 : i32
    %0 = arith.cmpi eq, %c2_i32, %c0_i32 : i32
    %c1_i32 = arith.constant 1 : i32
    %1 = arith.select %0, %c1_i32, %c2_i32 : i32
    %2 = arith.remsi %arg1, %1 : i32
    %c0_i32_0 = arith.constant 0 : i32
    %3 = arith.cmpi ne, %2, %c0_i32_0 : i32
    %c0_i32_1 = arith.constant 0 : i32
    %4 = arith.cmpi slt, %2, %c0_i32_1 : i32
    %c0_i32_2 = arith.constant 0 : i32
    %5 = arith.cmpi slt, %1, %c0_i32_2 : i32
    %6 = arith.xori %4, %5 : i1
    %7 = arith.andi %6, %3 : i1
    %8 = arith.addi %2, %1 : i32
    %9 = arith.select %7, %8, %2 : i32
    %c0_i32_3 = arith.constant 0 : i32
    %10 = arith.cmpi eq, %arg1, %c0_i32_3 : i32
    %11 = arith.extui %10 : i1 to i32
    %c0_i32_4 = arith.constant 0 : i32
    %12 = arith.cmpi ne, %11, %c0_i32_4 : i32
    scf.if %12 {
      %c0_i32_187 = arith.constant 0 : i32
      %229 = arith.cmpi eq, %arg1, %c0_i32_187 : i32
      %230 = arith.extui %229 : i1 to i32
      %c0_i32_188 = arith.constant 0 : i32
      %231 = arith.cmpi ne, %230, %c0_i32_188 : i32
      scf.if %231 {
        %c0_i32_194 = arith.constant 0 : i32
        %c0_i32_195 = arith.constant 0 : i32
        %240 = tpu.memref_slice %arg2[%arg0, %c0_i32_194, %c0_i32_195] : memref<2x256x128xf32, #tpu.memory_space<any>> -> memref<1x80x128xf32, #tpu.memory_space<any>>
        %241 = tpu.memref_squeeze %240 : memref<1x80x128xf32, #tpu.memory_space<any>> -> memref<80x128xf32, #tpu.memory_space<any>>
        %c16_i32_196 = arith.constant 16 : i32
        %c0_i32_197 = arith.constant 0 : i32
        %242 = tpu.memref_slice %arg8[%9, %c16_i32_196, %c0_i32_197] : memref<2x96x128xf32, #tpu.memory_space<vmem>> -> memref<1x80x128xf32, #tpu.memory_space<vmem>>
        %243 = tpu.memref_squeeze %242 : memref<1x80x128xf32, #tpu.memory_space<vmem>> -> memref<80x128xf32, #tpu.memory_space<vmem>>
        %244 = tpu.memref_slice %arg10[%9] : memref<2x!tpu.dma_semaphore, #tpu.memory_space<semaphore_mem>> -> memref<1x!tpu.dma_semaphore, #tpu.memory_space<semaphore_mem>>
        %245 = tpu.memref_squeeze %244 : memref<1x!tpu.dma_semaphore, #tpu.memory_space<semaphore_mem>> -> memref<!tpu.dma_semaphore, #tpu.memory_space<semaphore_mem>>
        tpu.enqueue_dma source(%241 : memref<80x128xf32, #tpu.memory_space<any>>) target(%243 : memref<80x128xf32, #tpu.memory_space<vmem>>) target_semaphore(%245 : memref<!tpu.dma_semaphore, #tpu.memory_space<semaphore_mem>>)
      } else {
      }
      %c3_i32_189 = arith.constant 3 : i32
      %232 = arith.cmpi eq, %arg1, %c3_i32_189 : i32
      %233 = arith.extui %232 : i1 to i32
      %c0_i32_190 = arith.constant 0 : i32
      %234 = arith.cmpi ne, %233, %c0_i32_190 : i32
      scf.if %234 {
        %c176_i32 = arith.constant 176 : i32
        %c0_i32_194 = arith.constant 0 : i32
        %240 = tpu.memref_slice %arg2[%arg0, %c176_i32, %c0_i32_194] : memref<2x256x128xf32, #tpu.memory_space<any>> -> memref<1x80x128xf32, #tpu.memory_space<any>>
        %241 = tpu.memref_squeeze %240 : memref<1x80x128xf32, #tpu.memory_space<any>> -> memref<80x128xf32, #tpu.memory_space<any>>
        %c0_i32_195 = arith.constant 0 : i32
        %c0_i32_196 = arith.constant 0 : i32
        %242 = tpu.memref_slice %arg8[%9, %c0_i32_195, %c0_i32_196] : memref<2x96x128xf32, #tpu.memory_space<vmem>> -> memref<1x80x128xf32, #tpu.memory_space<vmem>>
        %243 = tpu.memref_squeeze %242 : memref<1x80x128xf32, #tpu.memory_space<vmem>> -> memref<80x128xf32, #tpu.memory_space<vmem>>
        %244 = tpu.memref_slice %arg10[%9] : memref<2x!tpu.dma_semaphore, #tpu.memory_space<semaphore_mem>> -> memref<1x!tpu.dma_semaphore, #tpu.memory_space<semaphore_mem>>
        %245 = tpu.memref_squeeze %244 : memref<1x!tpu.dma_semaphore, #tpu.memory_space<semaphore_mem>> -> memref<!tpu.dma_semaphore, #tpu.memory_space<semaphore_mem>>
        tpu.enqueue_dma source(%241 : memref<80x128xf32, #tpu.memory_space<any>>) target(%243 : memref<80x128xf32, #tpu.memory_space<vmem>>) target_semaphore(%245 : memref<!tpu.dma_semaphore, #tpu.memory_space<semaphore_mem>>)
      } else {
      }
      %c0_i32_191 = arith.constant 0 : i32
      %235 = arith.cmpi sgt, %arg1, %c0_i32_191 : i32
      %c3_i32_192 = arith.constant 3 : i32
      %236 = arith.cmpi slt, %arg1, %c3_i32_192 : i32
      %237 = arith.andi %235, %236 : i1
      %238 = arith.extui %237 : i1 to i32
      %c0_i32_193 = arith.constant 0 : i32
      %239 = arith.cmpi ne, %238, %c0_i32_193 : i32
      scf.if %239 {
        %c64_i32_194 = arith.constant 64 : i32
        %240 = arith.muli %arg1, %c64_i32_194 : i32
        %c16_i32_195 = arith.constant 16 : i32
        %241 = arith.subi %240, %c16_i32_195 : i32
        %242 = tpu.assume_multiple %241, 8 : i32
        %c0_i32_196 = arith.constant 0 : i32
        %243 = tpu.memref_slice %arg2[%arg0, %242, %c0_i32_196] : memref<2x256x128xf32, #tpu.memory_space<any>> -> memref<1x96x128xf32, #tpu.memory_space<any>>
        %244 = tpu.memref_squeeze %243 : memref<1x96x128xf32, #tpu.memory_space<any>> -> memref<96x128xf32, #tpu.memory_space<any>>
        %c0_i32_197 = arith.constant 0 : i32
        %c0_i32_198 = arith.constant 0 : i32
        %245 = tpu.memref_slice %arg8[%9, %c0_i32_197, %c0_i32_198] : memref<2x96x128xf32, #tpu.memory_space<vmem>> -> memref<1x96x128xf32, #tpu.memory_space<vmem>>
        %246 = tpu.memref_squeeze %245 : memref<1x96x128xf32, #tpu.memory_space<vmem>> -> memref<96x128xf32, #tpu.memory_space<vmem>>
        %247 = tpu.memref_slice %arg10[%9] : memref<2x!tpu.dma_semaphore, #tpu.memory_space<semaphore_mem>> -> memref<1x!tpu.dma_semaphore, #tpu.memory_space<semaphore_mem>>
        %248 = tpu.memref_squeeze %247 : memref<1x!tpu.dma_semaphore, #tpu.memory_space<semaphore_mem>> -> memref<!tpu.dma_semaphore, #tpu.memory_space<semaphore_mem>>
        tpu.enqueue_dma source(%244 : memref<96x128xf32, #tpu.memory_space<any>>) target(%246 : memref<96x128xf32, #tpu.memory_space<vmem>>) target_semaphore(%248 : memref<!tpu.dma_semaphore, #tpu.memory_space<semaphore_mem>>)
      } else {
      }
    } else {
    }
    %c1_i32_5 = arith.constant 1 : i32
    %13 = arith.addi %arg1, %c1_i32_5 : i32
    %c4_i32 = arith.constant 4 : i32
    %14 = arith.cmpi slt, %13, %c4_i32 : i32
    %15 = arith.extui %14 : i1 to i32
    %c0_i32_6 = arith.constant 0 : i32
    %16 = arith.cmpi ne, %15, %c0_i32_6 : i32
    scf.if %16 {
      %c1_i32_187 = arith.constant 1 : i32
      %229 = arith.addi %arg1, %c1_i32_187 : i32
      %c1_i32_188 = arith.constant 1 : i32
      %230 = arith.subi %c1_i32_188, %9 : i32
      %c0_i32_189 = arith.constant 0 : i32
      %231 = arith.cmpi eq, %229, %c0_i32_189 : i32
      %232 = arith.extui %231 : i1 to i32
      %c0_i32_190 = arith.constant 0 : i32
      %233 = arith.cmpi ne, %232, %c0_i32_190 : i32
      scf.if %233 {
        %c0_i32_196 = arith.constant 0 : i32
        %c0_i32_197 = arith.constant 0 : i32
        %242 = tpu.memref_slice %arg2[%arg0, %c0_i32_196, %c0_i32_197] : memref<2x256x128xf32, #tpu.memory_space<any>> -> memref<1x80x128xf32, #tpu.memory_space<any>>
        %243 = tpu.memref_squeeze %242 : memref<1x80x128xf32, #tpu.memory_space<any>> -> memref<80x128xf32, #tpu.memory_space<any>>
        %c16_i32_198 = arith.constant 16 : i32
        %c0_i32_199 = arith.constant 0 : i32
        %244 = tpu.memref_slice %arg8[%230, %c16_i32_198, %c0_i32_199] : memref<2x96x128xf32, #tpu.memory_space<vmem>> -> memref<1x80x128xf32, #tpu.memory_space<vmem>>
        %245 = tpu.memref_squeeze %244 : memref<1x80x128xf32, #tpu.memory_space<vmem>> -> memref<80x128xf32, #tpu.memory_space<vmem>>
        %246 = tpu.memref_slice %arg10[%230] : memref<2x!tpu.dma_semaphore, #tpu.memory_space<semaphore_mem>> -> memref<1x!tpu.dma_semaphore, #tpu.memory_space<semaphore_mem>>
        %247 = tpu.memref_squeeze %246 : memref<1x!tpu.dma_semaphore, #tpu.memory_space<semaphore_mem>> -> memref<!tpu.dma_semaphore, #tpu.memory_space<semaphore_mem>>
        tpu.enqueue_dma source(%243 : memref<80x128xf32, #tpu.memory_space<any>>) target(%245 : memref<80x128xf32, #tpu.memory_space<vmem>>) target_semaphore(%247 : memref<!tpu.dma_semaphore, #tpu.memory_space<semaphore_mem>>)
      } else {
      }
      %c3_i32_191 = arith.constant 3 : i32
      %234 = arith.cmpi eq, %229, %c3_i32_191 : i32
      %235 = arith.extui %234 : i1 to i32
      %c0_i32_192 = arith.constant 0 : i32
      %236 = arith.cmpi ne, %235, %c0_i32_192 : i32
      scf.if %236 {
        %c176_i32 = arith.constant 176 : i32
        %c0_i32_196 = arith.constant 0 : i32
        %242 = tpu.memref_slice %arg2[%arg0, %c176_i32, %c0_i32_196] : memref<2x256x128xf32, #tpu.memory_space<any>> -> memref<1x80x128xf32, #tpu.memory_space<any>>
        %243 = tpu.memref_squeeze %242 : memref<1x80x128xf32, #tpu.memory_space<any>> -> memref<80x128xf32, #tpu.memory_space<any>>
        %c0_i32_197 = arith.constant 0 : i32
        %c0_i32_198 = arith.constant 0 : i32
        %244 = tpu.memref_slice %arg8[%230, %c0_i32_197, %c0_i32_198] : memref<2x96x128xf32, #tpu.memory_space<vmem>> -> memref<1x80x128xf32, #tpu.memory_space<vmem>>
        %245 = tpu.memref_squeeze %244 : memref<1x80x128xf32, #tpu.memory_space<vmem>> -> memref<80x128xf32, #tpu.memory_space<vmem>>
        %246 = tpu.memref_slice %arg10[%230] : memref<2x!tpu.dma_semaphore, #tpu.memory_space<semaphore_mem>> -> memref<1x!tpu.dma_semaphore, #tpu.memory_space<semaphore_mem>>
        %247 = tpu.memref_squeeze %246 : memref<1x!tpu.dma_semaphore, #tpu.memory_space<semaphore_mem>> -> memref<!tpu.dma_semaphore, #tpu.memory_space<semaphore_mem>>
        tpu.enqueue_dma source(%243 : memref<80x128xf32, #tpu.memory_space<any>>) target(%245 : memref<80x128xf32, #tpu.memory_space<vmem>>) target_semaphore(%247 : memref<!tpu.dma_semaphore, #tpu.memory_space<semaphore_mem>>)
      } else {
      }
      %c0_i32_193 = arith.constant 0 : i32
      %237 = arith.cmpi sgt, %229, %c0_i32_193 : i32
      %c3_i32_194 = arith.constant 3 : i32
      %238 = arith.cmpi slt, %229, %c3_i32_194 : i32
      %239 = arith.andi %237, %238 : i1
      %240 = arith.extui %239 : i1 to i32
      %c0_i32_195 = arith.constant 0 : i32
      %241 = arith.cmpi ne, %240, %c0_i32_195 : i32
      scf.if %241 {
        %c64_i32_196 = arith.constant 64 : i32
        %242 = arith.muli %229, %c64_i32_196 : i32
        %c16_i32_197 = arith.constant 16 : i32
        %243 = arith.subi %242, %c16_i32_197 : i32
        %244 = tpu.assume_multiple %243, 8 : i32
        %c0_i32_198 = arith.constant 0 : i32
        %245 = tpu.memref_slice %arg2[%arg0, %244, %c0_i32_198] : memref<2x256x128xf32, #tpu.memory_space<any>> -> memref<1x96x128xf32, #tpu.memory_space<any>>
        %246 = tpu.memref_squeeze %245 : memref<1x96x128xf32, #tpu.memory_space<any>> -> memref<96x128xf32, #tpu.memory_space<any>>
        %c0_i32_199 = arith.constant 0 : i32
        %c0_i32_200 = arith.constant 0 : i32
        %247 = tpu.memref_slice %arg8[%230, %c0_i32_199, %c0_i32_200] : memref<2x96x128xf32, #tpu.memory_space<vmem>> -> memref<1x96x128xf32, #tpu.memory_space<vmem>>
        %248 = tpu.memref_squeeze %247 : memref<1x96x128xf32, #tpu.memory_space<vmem>> -> memref<96x128xf32, #tpu.memory_space<vmem>>
        %249 = tpu.memref_slice %arg10[%230] : memref<2x!tpu.dma_semaphore, #tpu.memory_space<semaphore_mem>> -> memref<1x!tpu.dma_semaphore, #tpu.memory_space<semaphore_mem>>
        %250 = tpu.memref_squeeze %249 : memref<1x!tpu.dma_semaphore, #tpu.memory_space<semaphore_mem>> -> memref<!tpu.dma_semaphore, #tpu.memory_space<semaphore_mem>>
        tpu.enqueue_dma source(%246 : memref<96x128xf32, #tpu.memory_space<any>>) target(%248 : memref<96x128xf32, #tpu.memory_space<vmem>>) target_semaphore(%250 : memref<!tpu.dma_semaphore, #tpu.memory_space<semaphore_mem>>)
      } else {
      }
    } else {
    }
    %c0_i32_7 = arith.constant 0 : i32
    %17 = arith.cmpi eq, %arg1, %c0_i32_7 : i32
    %18 = arith.extui %17 : i1 to i32
    %c0_i32_8 = arith.constant 0 : i32
    %19 = arith.cmpi ne, %18, %c0_i32_8 : i32
    scf.if %19 {
      %c0_i32_187 = arith.constant 0 : i32
      %c0_i32_188 = arith.constant 0 : i32
      %229 = tpu.memref_slice %arg2[%arg0, %c0_i32_187, %c0_i32_188] : memref<2x256x128xf32, #tpu.memory_space<any>> -> memref<1x80x128xf32, #tpu.memory_space<any>>
      %230 = tpu.memref_squeeze %229 : memref<1x80x128xf32, #tpu.memory_space<any>> -> memref<80x128xf32, #tpu.memory_space<any>>
      %c16_i32_189 = arith.constant 16 : i32
      %c0_i32_190 = arith.constant 0 : i32
      %231 = tpu.memref_slice %arg8[%9, %c16_i32_189, %c0_i32_190] : memref<2x96x128xf32, #tpu.memory_space<vmem>> -> memref<1x80x128xf32, #tpu.memory_space<vmem>>
      %232 = tpu.memref_squeeze %231 : memref<1x80x128xf32, #tpu.memory_space<vmem>> -> memref<80x128xf32, #tpu.memory_space<vmem>>
      %233 = tpu.memref_slice %arg10[%9] : memref<2x!tpu.dma_semaphore, #tpu.memory_space<semaphore_mem>> -> memref<1x!tpu.dma_semaphore, #tpu.memory_space<semaphore_mem>>
      %234 = tpu.memref_squeeze %233 : memref<1x!tpu.dma_semaphore, #tpu.memory_space<semaphore_mem>> -> memref<!tpu.dma_semaphore, #tpu.memory_space<semaphore_mem>>
      tpu.wait_dma2 semaphore(%234 : memref<!tpu.dma_semaphore, #tpu.memory_space<semaphore_mem>>) src(%230 : memref<80x128xf32, #tpu.memory_space<any>>) dst(%232 : memref<80x128xf32, #tpu.memory_space<vmem>>)
    } else {
    }
    %c3_i32 = arith.constant 3 : i32
    %20 = arith.cmpi eq, %arg1, %c3_i32 : i32
    %21 = arith.extui %20 : i1 to i32
    %c0_i32_9 = arith.constant 0 : i32
    %22 = arith.cmpi ne, %21, %c0_i32_9 : i32
    scf.if %22 {
      %c176_i32 = arith.constant 176 : i32
      %c0_i32_187 = arith.constant 0 : i32
      %229 = tpu.memref_slice %arg2[%arg0, %c176_i32, %c0_i32_187] : memref<2x256x128xf32, #tpu.memory_space<any>> -> memref<1x80x128xf32, #tpu.memory_space<any>>
      %230 = tpu.memref_squeeze %229 : memref<1x80x128xf32, #tpu.memory_space<any>> -> memref<80x128xf32, #tpu.memory_space<any>>
      %c0_i32_188 = arith.constant 0 : i32
      %c0_i32_189 = arith.constant 0 : i32
      %231 = tpu.memref_slice %arg8[%9, %c0_i32_188, %c0_i32_189] : memref<2x96x128xf32, #tpu.memory_space<vmem>> -> memref<1x80x128xf32, #tpu.memory_space<vmem>>
      %232 = tpu.memref_squeeze %231 : memref<1x80x128xf32, #tpu.memory_space<vmem>> -> memref<80x128xf32, #tpu.memory_space<vmem>>
      %233 = tpu.memref_slice %arg10[%9] : memref<2x!tpu.dma_semaphore, #tpu.memory_space<semaphore_mem>> -> memref<1x!tpu.dma_semaphore, #tpu.memory_space<semaphore_mem>>
      %234 = tpu.memref_squeeze %233 : memref<1x!tpu.dma_semaphore, #tpu.memory_space<semaphore_mem>> -> memref<!tpu.dma_semaphore, #tpu.memory_space<semaphore_mem>>
      tpu.wait_dma2 semaphore(%234 : memref<!tpu.dma_semaphore, #tpu.memory_space<semaphore_mem>>) src(%230 : memref<80x128xf32, #tpu.memory_space<any>>) dst(%232 : memref<80x128xf32, #tpu.memory_space<vmem>>)
    } else {
    }
    %c0_i32_10 = arith.constant 0 : i32
    %23 = arith.cmpi sgt, %arg1, %c0_i32_10 : i32
    %c3_i32_11 = arith.constant 3 : i32
    %24 = arith.cmpi slt, %arg1, %c3_i32_11 : i32
    %25 = arith.andi %23, %24 : i1
    %26 = arith.extui %25 : i1 to i32
    %c0_i32_12 = arith.constant 0 : i32
    %27 = arith.cmpi ne, %26, %c0_i32_12 : i32
    scf.if %27 {
      %c64_i32_187 = arith.constant 64 : i32
      %229 = arith.muli %arg1, %c64_i32_187 : i32
      %c16_i32_188 = arith.constant 16 : i32
      %230 = arith.subi %229, %c16_i32_188 : i32
      %231 = tpu.assume_multiple %230, 8 : i32
      %c0_i32_189 = arith.constant 0 : i32
      %232 = tpu.memref_slice %arg2[%arg0, %231, %c0_i32_189] : memref<2x256x128xf32, #tpu.memory_space<any>> -> memref<1x96x128xf32, #tpu.memory_space<any>>
      %233 = tpu.memref_squeeze %232 : memref<1x96x128xf32, #tpu.memory_space<any>> -> memref<96x128xf32, #tpu.memory_space<any>>
      %c0_i32_190 = arith.constant 0 : i32
      %c0_i32_191 = arith.constant 0 : i32
      %234 = tpu.memref_slice %arg8[%9, %c0_i32_190, %c0_i32_191] : memref<2x96x128xf32, #tpu.memory_space<vmem>> -> memref<1x96x128xf32, #tpu.memory_space<vmem>>
      %235 = tpu.memref_squeeze %234 : memref<1x96x128xf32, #tpu.memory_space<vmem>> -> memref<96x128xf32, #tpu.memory_space<vmem>>
      %236 = tpu.memref_slice %arg10[%9] : memref<2x!tpu.dma_semaphore, #tpu.memory_space<semaphore_mem>> -> memref<1x!tpu.dma_semaphore, #tpu.memory_space<semaphore_mem>>
      %237 = tpu.memref_squeeze %236 : memref<1x!tpu.dma_semaphore, #tpu.memory_space<semaphore_mem>> -> memref<!tpu.dma_semaphore, #tpu.memory_space<semaphore_mem>>
      tpu.wait_dma2 semaphore(%237 : memref<!tpu.dma_semaphore, #tpu.memory_space<semaphore_mem>>) src(%233 : memref<96x128xf32, #tpu.memory_space<any>>) dst(%235 : memref<96x128xf32, #tpu.memory_space<vmem>>)
    } else {
    }
    %c64_i32 = arith.constant 64 : i32
    %28 = arith.muli %arg1, %c64_i32 : i32
    %c16_i32 = arith.constant 16 : i32
    %29 = arith.subi %28, %c16_i32 : i32
    %30 = tpu.iota {dimensions = array<i32: 0>} : vector<96x1xi32>
    %31 = vector.broadcast %29 : i32 to vector<96x1xi32>
    %32 = arith.addi %31, %30 : vector<96x1xi32>
    %c0_i32_13 = arith.constant 0 : i32
    %33 = vector.broadcast %c0_i32_13 : i32 to vector<96x1xi32>
    %34 = arith.cmpi sge, %32, %33 : vector<96x1xi32>
    %c256_i32 = arith.constant 256 : i32
    %35 = vector.broadcast %c256_i32 : i32 to vector<96x1xi32>
    %36 = arith.cmpi slt, %32, %35 : vector<96x1xi32>
    %37 = arith.andi %34, %36 : vector<96x1xi1>
    %cst = arith.constant 0.000000e+00 : bf16
    %38 = vector.broadcast %cst : bf16 to vector<8x128xbf16>
    %c0 = arith.constant 0 : index
    %c0_14 = arith.constant 0 : index
    %39 = vector.load %arg9[%c0, %c0_14] : memref<112x128xbf16, #tpu.memory_space<vmem>>, vector<8x128xbf16>
    tpu.vector_store %arg9[%c0, %c0_14], %38 {strides = array<i32>} : memref<112x128xbf16, #tpu.memory_space<vmem>>, vector<8x128xbf16>,
    %c104 = arith.constant 104 : index
    %c0_15 = arith.constant 0 : index
    %40 = vector.load %arg9[%c104, %c0_15] : memref<112x128xbf16, #tpu.memory_space<vmem>>, vector<8x128xbf16>
    tpu.vector_store %arg9[%c104, %c0_15], %38 {strides = array<i32>} : memref<112x128xbf16, #tpu.memory_space<vmem>>, vector<8x128xbf16>,
    %41 = arith.index_cast %9 : i32 to index
    %c0_16 = arith.constant 0 : index
    %c0_17 = arith.constant 0 : index
    %42 = vector.load %arg8[%41, %c0_16, %c0_17] : memref<2x96x128xf32, #tpu.memory_space<vmem>>, vector<1x96x128xf32>
    %43 = vector.shape_cast %42 : vector<1x96x128xf32> to vector<96x128xf32>
    %cst_18 = arith.constant 0.000000e+00 : f32
    %44 = vector.shape_cast %37 : vector<96x1xi1> to vector<96x1xi1>
    %45 = vector.broadcast %44 : vector<96x1xi1> to vector<96x128xi1>
    %46 = vector.broadcast %cst_18 : f32 to vector<96x128xf32>
    %47 = arith.select %45, %43, %46 : vector<96x128xi1>, vector<96x128xf32>
    %cst_19 = arith.constant 0.000000e+00 : f32
    %48 = vector.broadcast %cst_19 : f32 to vector<96x128xf32>
    %49 = arith.cmpf oge, %47, %48 : vector<96x128xf32>
    %cst_20 = arith.constant 1.000000e-01 : f32
    %50 = vector.broadcast %cst_20 : f32 to vector<96x128xf32>
    %51 = arith.mulf %50, %47 : vector<96x128xf32>
    %52 = arith.select %49, %47, %51 : vector<96x128xi1>, vector<96x128xf32>
    %53 = arith.truncf %52 : vector<96x128xf32> to vector<96x128xbf16>
    %c8 = arith.constant 8 : index
    %c0_21 = arith.constant 0 : index
    %54 = vector.load %arg9[%c8, %c0_21] : memref<112x128xbf16, #tpu.memory_space<vmem>>, vector<96x128xbf16>
    tpu.vector_store %arg9[%c8, %c0_21], %53 {strides = array<i32>} : memref<112x128xbf16, #tpu.memory_space<vmem>>, vector<96x128xbf16>,
    %c7 = arith.constant 7 : index
    %c0_22 = arith.constant 0 : index
    %55 = vector.load %arg9[%c7, %c0_22] : memref<112x128xbf16, #tpu.memory_space<vmem>>, vector<96x128xbf16>
    %c0_23 = arith.constant 0 : index
    %c0_24 = arith.constant 0 : index
    %c0_25 = arith.constant 0 : index
    %c0_26 = arith.constant 0 : index
    %56 = vector.load %arg3[%c0_23, %c0_24, %c0_25, %c0_26] : memref<3x3x128x128xbf16, #tpu.memory_space<vmem>>, vector<1x1x128x128xbf16>
    %57 = vector.shape_cast %56 : vector<1x1x128x128xbf16> to vector<128x128xbf16>
    %cst_27 = arith.constant dense<0.000000e+00> : vector<96x128xf32>
    %58 = tpu.matmul %55, %57, %cst_27 {dimension_numbers = #tpu.dot_dimension_numbers<[1], [0], [0], [1], [0, 0, 1, 1], [], []>} : vector<96x128xbf16>, vector<128x128xbf16>, vector<96x128xf32> -> vector<96x128xf32>
    %c8_28 = arith.constant 8 : index
    %c0_29 = arith.constant 0 : index
    %59 = vector.load %arg9[%c8_28, %c0_29] : memref<112x128xbf16, #tpu.memory_space<vmem>>, vector<96x128xbf16>
    %c0_30 = arith.constant 0 : index
    %c1 = arith.constant 1 : index
    %c0_31 = arith.constant 0 : index
    %c0_32 = arith.constant 0 : index
    %60 = vector.load %arg3[%c0_30, %c1, %c0_31, %c0_32] : memref<3x3x128x128xbf16, #tpu.memory_space<vmem>>, vector<1x1x128x128xbf16>
    %61 = vector.shape_cast %60 : vector<1x1x128x128xbf16> to vector<128x128xbf16>
    %cst_33 = arith.constant dense<0.000000e+00> : vector<96x128xf32>
    %62 = tpu.matmul %59, %61, %cst_33 {dimension_numbers = #tpu.dot_dimension_numbers<[1], [0], [0], [1], [0, 0, 1, 1], [], []>} : vector<96x128xbf16>, vector<128x128xbf16>, vector<96x128xf32> -> vector<96x128xf32>
    %63 = arith.addf %58, %62 : vector<96x128xf32>
    %c9 = arith.constant 9 : index
    %c0_34 = arith.constant 0 : index
    %64 = vector.load %arg9[%c9, %c0_34] : memref<112x128xbf16, #tpu.memory_space<vmem>>, vector<96x128xbf16>
    %c0_35 = arith.constant 0 : index
    %c2 = arith.constant 2 : index
    %c0_36 = arith.constant 0 : index
    %c0_37 = arith.constant 0 : index
    %65 = vector.load %arg3[%c0_35, %c2, %c0_36, %c0_37] : memref<3x3x128x128xbf16, #tpu.memory_space<vmem>>, vector<1x1x128x128xbf16>
    %66 = vector.shape_cast %65 : vector<1x1x128x128xbf16> to vector<128x128xbf16>
    %cst_38 = arith.constant dense<0.000000e+00> : vector<96x128xf32>
    %67 = tpu.matmul %64, %66, %cst_38 {dimension_numbers = #tpu.dot_dimension_numbers<[1], [0], [0], [1], [0, 0, 1, 1], [], []>} : vector<96x128xbf16>, vector<128x128xbf16>, vector<96x128xf32> -> vector<96x128xf32>
    %68 = arith.addf %63, %67 : vector<96x128xf32>
    %c0_39 = arith.constant 0 : index
    %c0_40 = arith.constant 0 : index
    %c0_41 = arith.constant 0 : index
    %69 = vector.load %arg4[%c0_39, %c0_40, %c0_41] : memref<3x1x128xf32, #tpu.memory_space<vmem>>, vector<1x1x128xf32>
    %70 = vector.shape_cast %69 : vector<1x1x128xf32> to vector<1x128xf32>
    %71 = vector.broadcast %70 : vector<1x128xf32> to vector<96x128xf32>
    %72 = arith.addf %68, %71 : vector<96x128xf32>
    %cst_42 = arith.constant 0.000000e+00 : f32
    %73 = vector.shape_cast %37 : vector<96x1xi1> to vector<96x1xi1>
    %74 = vector.broadcast %73 : vector<96x1xi1> to vector<96x128xi1>
    %75 = vector.broadcast %cst_42 : f32 to vector<96x128xf32>
    %76 = arith.select %74, %72, %75 : vector<96x128xi1>, vector<96x128xf32>
    %cst_43 = arith.constant 0.000000e+00 : f32
    %77 = vector.broadcast %cst_43 : f32 to vector<96x128xf32>
    %78 = arith.cmpf oge, %76, %77 : vector<96x128xf32>
    %cst_44 = arith.constant 1.000000e-01 : f32
    %79 = vector.broadcast %cst_44 : f32 to vector<96x128xf32>
    %80 = arith.mulf %79, %76 : vector<96x128xf32>
    %81 = arith.select %78, %76, %80 : vector<96x128xi1>, vector<96x128xf32>
    %82 = arith.truncf %81 : vector<96x128xf32> to vector<96x128xbf16>
    %c8_45 = arith.constant 8 : index
    %c0_46 = arith.constant 0 : index
    %83 = vector.load %arg9[%c8_45, %c0_46] : memref<112x128xbf16, #tpu.memory_space<vmem>>, vector<96x128xbf16>
    tpu.vector_store %arg9[%c8_45, %c0_46], %82 {strides = array<i32>} : memref<112x128xbf16, #tpu.memory_space<vmem>>, vector<96x128xbf16>,
    %c7_47 = arith.constant 7 : index
    %c0_48 = arith.constant 0 : index
    %84 = vector.load %arg9[%c7_47, %c0_48] : memref<112x128xbf16, #tpu.memory_space<vmem>>, vector<96x128xbf16>
    %c0_49 = arith.constant 0 : index
    %c0_50 = arith.constant 0 : index
    %c0_51 = arith.constant 0 : index
    %c0_52 = arith.constant 0 : index
    %85 = vector.load %arg5[%c0_49, %c0_50, %c0_51, %c0_52] : memref<3x3x128x128xbf16, #tpu.memory_space<vmem>>, vector<1x1x128x128xbf16>
    %86 = vector.shape_cast %85 : vector<1x1x128x128xbf16> to vector<128x128xbf16>
    %cst_53 = arith.constant dense<0.000000e+00> : vector<96x128xf32>
    %87 = tpu.matmul %84, %86, %cst_53 {dimension_numbers = #tpu.dot_dimension_numbers<[1], [0], [0], [1], [0, 0, 1, 1], [], []>} : vector<96x128xbf16>, vector<128x128xbf16>, vector<96x128xf32> -> vector<96x128xf32>
    %c8_54 = arith.constant 8 : index
    %c0_55 = arith.constant 0 : index
    %88 = vector.load %arg9[%c8_54, %c0_55] : memref<112x128xbf16, #tpu.memory_space<vmem>>, vector<96x128xbf16>
    %c0_56 = arith.constant 0 : index
    %c1_57 = arith.constant 1 : index
    %c0_58 = arith.constant 0 : index
    %c0_59 = arith.constant 0 : index
    %89 = vector.load %arg5[%c0_56, %c1_57, %c0_58, %c0_59] : memref<3x3x128x128xbf16, #tpu.memory_space<vmem>>, vector<1x1x128x128xbf16>
    %90 = vector.shape_cast %89 : vector<1x1x128x128xbf16> to vector<128x128xbf16>
    %cst_60 = arith.constant dense<0.000000e+00> : vector<96x128xf32>
    %91 = tpu.matmul %88, %90, %cst_60 {dimension_numbers = #tpu.dot_dimension_numbers<[1], [0], [0], [1], [0, 0, 1, 1], [], []>} : vector<96x128xbf16>, vector<128x128xbf16>, vector<96x128xf32> -> vector<96x128xf32>
    %92 = arith.addf %87, %91 : vector<96x128xf32>
    %c9_61 = arith.constant 9 : index
    %c0_62 = arith.constant 0 : index
    %93 = vector.load %arg9[%c9_61, %c0_62] : memref<112x128xbf16, #tpu.memory_space<vmem>>, vector<96x128xbf16>
    %c0_63 = arith.constant 0 : index
    %c2_64 = arith.constant 2 : index
    %c0_65 = arith.constant 0 : index
    %c0_66 = arith.constant 0 : index
    %94 = vector.load %arg5[%c0_63, %c2_64, %c0_65, %c0_66] : memref<3x3x128x128xbf16, #tpu.memory_space<vmem>>, vector<1x1x128x128xbf16>
    %95 = vector.shape_cast %94 : vector<1x1x128x128xbf16> to vector<128x128xbf16>
    %cst_67 = arith.constant dense<0.000000e+00> : vector<96x128xf32>
    %96 = tpu.matmul %93, %95, %cst_67 {dimension_numbers = #tpu.dot_dimension_numbers<[1], [0], [0], [1], [0, 0, 1, 1], [], []>} : vector<96x128xbf16>, vector<128x128xbf16>, vector<96x128xf32> -> vector<96x128xf32>
    %97 = arith.addf %92, %96 : vector<96x128xf32>
    %c0_68 = arith.constant 0 : index
    %c0_69 = arith.constant 0 : index
    %c0_70 = arith.constant 0 : index
    %98 = vector.load %arg6[%c0_68, %c0_69, %c0_70] : memref<3x1x128xf32, #tpu.memory_space<vmem>>, vector<1x1x128xf32>
    %99 = vector.shape_cast %98 : vector<1x1x128xf32> to vector<1x128xf32>
    %100 = vector.broadcast %99 : vector<1x128xf32> to vector<96x128xf32>
    %101 = arith.addf %97, %100 : vector<96x128xf32>
    %cst_71 = arith.constant 0.000000e+00 : f32
    %102 = vector.shape_cast %37 : vector<96x1xi1> to vector<96x1xi1>
    %103 = vector.broadcast %102 : vector<96x1xi1> to vector<96x128xi1>
    %104 = vector.broadcast %cst_71 : f32 to vector<96x128xf32>
    %105 = arith.select %103, %101, %104 : vector<96x128xi1>, vector<96x128xf32>
    %106 = arith.addf %47, %105 : vector<96x128xf32>
    %cst_72 = arith.constant 0.000000e+00 : f32
    %107 = vector.broadcast %cst_72 : f32 to vector<96x128xf32>
    %108 = arith.cmpf oge, %106, %107 : vector<96x128xf32>
    %cst_73 = arith.constant 1.000000e-01 : f32
    %109 = vector.broadcast %cst_73 : f32 to vector<96x128xf32>
    %110 = arith.mulf %109, %106 : vector<96x128xf32>
    %111 = arith.select %108, %106, %110 : vector<96x128xi1>, vector<96x128xf32>
    %112 = arith.truncf %111 : vector<96x128xf32> to vector<96x128xbf16>
    %c8_74 = arith.constant 8 : index
    %c0_75 = arith.constant 0 : index
    %113 = vector.load %arg9[%c8_74, %c0_75] : memref<112x128xbf16, #tpu.memory_space<vmem>>, vector<96x128xbf16>
    tpu.vector_store %arg9[%c8_74, %c0_75], %112 {strides = array<i32>} : memref<112x128xbf16, #tpu.memory_space<vmem>>, vector<96x128xbf16>,
    %c5 = arith.constant 5 : index
    %c0_76 = arith.constant 0 : index
    %114 = vector.load %arg9[%c5, %c0_76] : memref<112x128xbf16, #tpu.memory_space<vmem>>, vector<96x128xbf16>
    %c1_77 = arith.constant 1 : index
    %c0_78 = arith.constant 0 : index
    %c0_79 = arith.constant 0 : index
    %c0_80 = arith.constant 0 : index
    %115 = vector.load %arg3[%c1_77, %c0_78, %c0_79, %c0_80] : memref<3x3x128x128xbf16, #tpu.memory_space<vmem>>, vector<1x1x128x128xbf16>
    %116 = vector.shape_cast %115 : vector<1x1x128x128xbf16> to vector<128x128xbf16>
    %cst_81 = arith.constant dense<0.000000e+00> : vector<96x128xf32>
    %117 = tpu.matmul %114, %116, %cst_81 {dimension_numbers = #tpu.dot_dimension_numbers<[1], [0], [0], [1], [0, 0, 1, 1], [], []>} : vector<96x128xbf16>, vector<128x128xbf16>, vector<96x128xf32> -> vector<96x128xf32>
    %c8_82 = arith.constant 8 : index
    %c0_83 = arith.constant 0 : index
    %118 = vector.load %arg9[%c8_82, %c0_83] : memref<112x128xbf16, #tpu.memory_space<vmem>>, vector<96x128xbf16>
    %c1_84 = arith.constant 1 : index
    %c1_85 = arith.constant 1 : index
    %c0_86 = arith.constant 0 : index
    %c0_87 = arith.constant 0 : index
    %119 = vector.load %arg3[%c1_84, %c1_85, %c0_86, %c0_87] : memref<3x3x128x128xbf16, #tpu.memory_space<vmem>>, vector<1x1x128x128xbf16>
    %120 = vector.shape_cast %119 : vector<1x1x128x128xbf16> to vector<128x128xbf16>
    %cst_88 = arith.constant dense<0.000000e+00> : vector<96x128xf32>
    %121 = tpu.matmul %118, %120, %cst_88 {dimension_numbers = #tpu.dot_dimension_numbers<[1], [0], [0], [1], [0, 0, 1, 1], [], []>} : vector<96x128xbf16>, vector<128x128xbf16>, vector<96x128xf32> -> vector<96x128xf32>
    %122 = arith.addf %117, %121 : vector<96x128xf32>
    %c11 = arith.constant 11 : index
    %c0_89 = arith.constant 0 : index
    %123 = vector.load %arg9[%c11, %c0_89] : memref<112x128xbf16, #tpu.memory_space<vmem>>, vector<96x128xbf16>
    %c1_90 = arith.constant 1 : index
    %c2_91 = arith.constant 2 : index
    %c0_92 = arith.constant 0 : index
    %c0_93 = arith.constant 0 : index
    %124 = vector.load %arg3[%c1_90, %c2_91, %c0_92, %c0_93] : memref<3x3x128x128xbf16, #tpu.memory_space<vmem>>, vector<1x1x128x128xbf16>
    %125 = vector.shape_cast %124 : vector<1x1x128x128xbf16> to vector<128x128xbf16>
    %cst_94 = arith.constant dense<0.000000e+00> : vector<96x128xf32>
    %126 = tpu.matmul %123, %125, %cst_94 {dimension_numbers = #tpu.dot_dimension_numbers<[1], [0], [0], [1], [0, 0, 1, 1], [], []>} : vector<96x128xbf16>, vector<128x128xbf16>, vector<96x128xf32> -> vector<96x128xf32>
    %127 = arith.addf %122, %126 : vector<96x128xf32>
    %c1_95 = arith.constant 1 : index
    %c0_96 = arith.constant 0 : index
    %c0_97 = arith.constant 0 : index
    %128 = vector.load %arg4[%c1_95, %c0_96, %c0_97] : memref<3x1x128xf32, #tpu.memory_space<vmem>>, vector<1x1x128xf32>
    %129 = vector.shape_cast %128 : vector<1x1x128xf32> to vector<1x128xf32>
    %130 = vector.broadcast %129 : vector<1x128xf32> to vector<96x128xf32>
    %131 = arith.addf %127, %130 : vector<96x128xf32>
    %cst_98 = arith.constant 0.000000e+00 : f32
    %132 = vector.shape_cast %37 : vector<96x1xi1> to vector<96x1xi1>
    %133 = vector.broadcast %132 : vector<96x1xi1> to vector<96x128xi1>
    %134 = vector.broadcast %cst_98 : f32 to vector<96x128xf32>
    %135 = arith.select %133, %131, %134 : vector<96x128xi1>, vector<96x128xf32>
    %cst_99 = arith.constant 0.000000e+00 : f32
    %136 = vector.broadcast %cst_99 : f32 to vector<96x128xf32>
    %137 = arith.cmpf oge, %135, %136 : vector<96x128xf32>
    %cst_100 = arith.constant 1.000000e-01 : f32
    %138 = vector.broadcast %cst_100 : f32 to vector<96x128xf32>
    %139 = arith.mulf %138, %135 : vector<96x128xf32>
    %140 = arith.select %137, %135, %139 : vector<96x128xi1>, vector<96x128xf32>
    %141 = arith.truncf %140 : vector<96x128xf32> to vector<96x128xbf16>
    %c8_101 = arith.constant 8 : index
    %c0_102 = arith.constant 0 : index
    %142 = vector.load %arg9[%c8_101, %c0_102] : memref<112x128xbf16, #tpu.memory_space<vmem>>, vector<96x128xbf16>
    tpu.vector_store %arg9[%c8_101, %c0_102], %141 {strides = array<i32>} : memref<112x128xbf16, #tpu.memory_space<vmem>>, vector<96x128xbf16>,
    %c7_103 = arith.constant 7 : index
    %c0_104 = arith.constant 0 : index
    %143 = vector.load %arg9[%c7_103, %c0_104] : memref<112x128xbf16, #tpu.memory_space<vmem>>, vector<96x128xbf16>
    %c1_105 = arith.constant 1 : index
    %c0_106 = arith.constant 0 : index
    %c0_107 = arith.constant 0 : index
    %c0_108 = arith.constant 0 : index
    %144 = vector.load %arg5[%c1_105, %c0_106, %c0_107, %c0_108] : memref<3x3x128x128xbf16, #tpu.memory_space<vmem>>, vector<1x1x128x128xbf16>
    %145 = vector.shape_cast %144 : vector<1x1x128x128xbf16> to vector<128x128xbf16>
    %cst_109 = arith.constant dense<0.000000e+00> : vector<96x128xf32>
    %146 = tpu.matmul %143, %145, %cst_109 {dimension_numbers = #tpu.dot_dimension_numbers<[1], [0], [0], [1], [0, 0, 1, 1], [], []>} : vector<96x128xbf16>, vector<128x128xbf16>, vector<96x128xf32> -> vector<96x128xf32>
    %c8_110 = arith.constant 8 : index
    %c0_111 = arith.constant 0 : index
    %147 = vector.load %arg9[%c8_110, %c0_111] : memref<112x128xbf16, #tpu.memory_space<vmem>>, vector<96x128xbf16>
    %c1_112 = arith.constant 1 : index
    %c1_113 = arith.constant 1 : index
    %c0_114 = arith.constant 0 : index
    %c0_115 = arith.constant 0 : index
    %148 = vector.load %arg5[%c1_112, %c1_113, %c0_114, %c0_115] : memref<3x3x128x128xbf16, #tpu.memory_space<vmem>>, vector<1x1x128x128xbf16>
    %149 = vector.shape_cast %148 : vector<1x1x128x128xbf16> to vector<128x128xbf16>
    %cst_116 = arith.constant dense<0.000000e+00> : vector<96x128xf32>
    %150 = tpu.matmul %147, %149, %cst_116 {dimension_numbers = #tpu.dot_dimension_numbers<[1], [0], [0], [1], [0, 0, 1, 1], [], []>} : vector<96x128xbf16>, vector<128x128xbf16>, vector<96x128xf32> -> vector<96x128xf32>
    %151 = arith.addf %146, %150 : vector<96x128xf32>
    %c9_117 = arith.constant 9 : index
    %c0_118 = arith.constant 0 : index
    %152 = vector.load %arg9[%c9_117, %c0_118] : memref<112x128xbf16, #tpu.memory_space<vmem>>, vector<96x128xbf16>
    %c1_119 = arith.constant 1 : index
    %c2_120 = arith.constant 2 : index
    %c0_121 = arith.constant 0 : index
    %c0_122 = arith.constant 0 : index
    %153 = vector.load %arg5[%c1_119, %c2_120, %c0_121, %c0_122] : memref<3x3x128x128xbf16, #tpu.memory_space<vmem>>, vector<1x1x128x128xbf16>
    %154 = vector.shape_cast %153 : vector<1x1x128x128xbf16> to vector<128x128xbf16>
    %cst_123 = arith.constant dense<0.000000e+00> : vector<96x128xf32>
    %155 = tpu.matmul %152, %154, %cst_123 {dimension_numbers = #tpu.dot_dimension_numbers<[1], [0], [0], [1], [0, 0, 1, 1], [], []>} : vector<96x128xbf16>, vector<128x128xbf16>, vector<96x128xf32> -> vector<96x128xf32>
    %156 = arith.addf %151, %155 : vector<96x128xf32>
    %c1_124 = arith.constant 1 : index
    %c0_125 = arith.constant 0 : index
    %c0_126 = arith.constant 0 : index
    %157 = vector.load %arg6[%c1_124, %c0_125, %c0_126] : memref<3x1x128xf32, #tpu.memory_space<vmem>>, vector<1x1x128xf32>
    %158 = vector.shape_cast %157 : vector<1x1x128xf32> to vector<1x128xf32>
    %159 = vector.broadcast %158 : vector<1x128xf32> to vector<96x128xf32>
    %160 = arith.addf %156, %159 : vector<96x128xf32>
    %cst_127 = arith.constant 0.000000e+00 : f32
    %161 = vector.shape_cast %37 : vector<96x1xi1> to vector<96x1xi1>
    %162 = vector.broadcast %161 : vector<96x1xi1> to vector<96x128xi1>
    %163 = vector.broadcast %cst_127 : f32 to vector<96x128xf32>
    %164 = arith.select %162, %160, %163 : vector<96x128xi1>, vector<96x128xf32>
    %165 = arith.addf %106, %164 : vector<96x128xf32>
    %cst_128 = arith.constant 0.000000e+00 : f32
    %166 = vector.broadcast %cst_128 : f32 to vector<96x128xf32>
    %167 = arith.cmpf oge, %165, %166 : vector<96x128xf32>
    %cst_129 = arith.constant 1.000000e-01 : f32
    %168 = vector.broadcast %cst_129 : f32 to vector<96x128xf32>
    %169 = arith.mulf %168, %165 : vector<96x128xf32>
    %170 = arith.select %167, %165, %169 : vector<96x128xi1>, vector<96x128xf32>
    %171 = arith.truncf %170 : vector<96x128xf32> to vector<96x128xbf16>
    %c8_130 = arith.constant 8 : index
    %c0_131 = arith.constant 0 : index
    %172 = vector.load %arg9[%c8_130, %c0_131] : memref<112x128xbf16, #tpu.memory_space<vmem>>, vector<96x128xbf16>
    tpu.vector_store %arg9[%c8_130, %c0_131], %171 {strides = array<i32>} : memref<112x128xbf16, #tpu.memory_space<vmem>>, vector<96x128xbf16>,
    %c3 = arith.constant 3 : index
    %c0_132 = arith.constant 0 : index
    %173 = vector.load %arg9[%c3, %c0_132] : memref<112x128xbf16, #tpu.memory_space<vmem>>, vector<96x128xbf16>
    %c2_133 = arith.constant 2 : index
    %c0_134 = arith.constant 0 : index
    %c0_135 = arith.constant 0 : index
    %c0_136 = arith.constant 0 : index
    %174 = vector.load %arg3[%c2_133, %c0_134, %c0_135, %c0_136] : memref<3x3x128x128xbf16, #tpu.memory_space<vmem>>, vector<1x1x128x128xbf16>
    %175 = vector.shape_cast %174 : vector<1x1x128x128xbf16> to vector<128x128xbf16>
    %cst_137 = arith.constant dense<0.000000e+00> : vector<96x128xf32>
    %176 = tpu.matmul %173, %175, %cst_137 {dimension_numbers = #tpu.dot_dimension_numbers<[1], [0], [0], [1], [0, 0, 1, 1], [], []>} : vector<96x128xbf16>, vector<128x128xbf16>, vector<96x128xf32> -> vector<96x128xf32>
    %c8_138 = arith.constant 8 : index
    %c0_139 = arith.constant 0 : index
    %177 = vector.load %arg9[%c8_138, %c0_139] : memref<112x128xbf16, #tpu.memory_space<vmem>>, vector<96x128xbf16>
    %c2_140 = arith.constant 2 : index
    %c1_141 = arith.constant 1 : index
    %c0_142 = arith.constant 0 : index
    %c0_143 = arith.constant 0 : index
    %178 = vector.load %arg3[%c2_140, %c1_141, %c0_142, %c0_143] : memref<3x3x128x128xbf16, #tpu.memory_space<vmem>>, vector<1x1x128x128xbf16>
    %179 = vector.shape_cast %178 : vector<1x1x128x128xbf16> to vector<128x128xbf16>
    %cst_144 = arith.constant dense<0.000000e+00> : vector<96x128xf32>
    %180 = tpu.matmul %177, %179, %cst_144 {dimension_numbers = #tpu.dot_dimension_numbers<[1], [0], [0], [1], [0, 0, 1, 1], [], []>} : vector<96x128xbf16>, vector<128x128xbf16>, vector<96x128xf32> -> vector<96x128xf32>
    %181 = arith.addf %176, %180 : vector<96x128xf32>
    %c13 = arith.constant 13 : index
    %c0_145 = arith.constant 0 : index
    %182 = vector.load %arg9[%c13, %c0_145] : memref<112x128xbf16, #tpu.memory_space<vmem>>, vector<96x128xbf16>
    %c2_146 = arith.constant 2 : index
    %c2_147 = arith.constant 2 : index
    %c0_148 = arith.constant 0 : index
    %c0_149 = arith.constant 0 : index
    %183 = vector.load %arg3[%c2_146, %c2_147, %c0_148, %c0_149] : memref<3x3x128x128xbf16, #tpu.memory_space<vmem>>, vector<1x1x128x128xbf16>
    %184 = vector.shape_cast %183 : vector<1x1x128x128xbf16> to vector<128x128xbf16>
    %cst_150 = arith.constant dense<0.000000e+00> : vector<96x128xf32>
    %185 = tpu.matmul %182, %184, %cst_150 {dimension_numbers = #tpu.dot_dimension_numbers<[1], [0], [0], [1], [0, 0, 1, 1], [], []>} : vector<96x128xbf16>, vector<128x128xbf16>, vector<96x128xf32> -> vector<96x128xf32>
    %186 = arith.addf %181, %185 : vector<96x128xf32>
    %c2_151 = arith.constant 2 : index
    %c0_152 = arith.constant 0 : index
    %c0_153 = arith.constant 0 : index
    %187 = vector.load %arg4[%c2_151, %c0_152, %c0_153] : memref<3x1x128xf32, #tpu.memory_space<vmem>>, vector<1x1x128xf32>
    %188 = vector.shape_cast %187 : vector<1x1x128xf32> to vector<1x128xf32>
    %189 = vector.broadcast %188 : vector<1x128xf32> to vector<96x128xf32>
    %190 = arith.addf %186, %189 : vector<96x128xf32>
    %cst_154 = arith.constant 0.000000e+00 : f32
    %191 = vector.shape_cast %37 : vector<96x1xi1> to vector<96x1xi1>
    %192 = vector.broadcast %191 : vector<96x1xi1> to vector<96x128xi1>
    %193 = vector.broadcast %cst_154 : f32 to vector<96x128xf32>
    %194 = arith.select %192, %190, %193 : vector<96x128xi1>, vector<96x128xf32>
    %cst_155 = arith.constant 0.000000e+00 : f32
    %195 = vector.broadcast %cst_155 : f32 to vector<96x128xf32>
    %196 = arith.cmpf oge, %194, %195 : vector<96x128xf32>
    %cst_156 = arith.constant 1.000000e-01 : f32
    %197 = vector.broadcast %cst_156 : f32 to vector<96x128xf32>
    %198 = arith.mulf %197, %194 : vector<96x128xf32>
    %199 = arith.select %196, %194, %198 : vector<96x128xi1>, vector<96x128xf32>
    %200 = arith.truncf %199 : vector<96x128xf32> to vector<96x128xbf16>
    %c8_157 = arith.constant 8 : index
    %c0_158 = arith.constant 0 : index
    %201 = vector.load %arg9[%c8_157, %c0_158] : memref<112x128xbf16, #tpu.memory_space<vmem>>, vector<96x128xbf16>
    tpu.vector_store %arg9[%c8_157, %c0_158], %200 {strides = array<i32>} : memref<112x128xbf16, #tpu.memory_space<vmem>>, vector<96x128xbf16>,
    %c7_159 = arith.constant 7 : index
    %c0_160 = arith.constant 0 : index
    %202 = vector.load %arg9[%c7_159, %c0_160] : memref<112x128xbf16, #tpu.memory_space<vmem>>, vector<96x128xbf16>
    %c2_161 = arith.constant 2 : index
    %c0_162 = arith.constant 0 : index
    %c0_163 = arith.constant 0 : index
    %c0_164 = arith.constant 0 : index
    %203 = vector.load %arg5[%c2_161, %c0_162, %c0_163, %c0_164] : memref<3x3x128x128xbf16, #tpu.memory_space<vmem>>, vector<1x1x128x128xbf16>
    %204 = vector.shape_cast %203 : vector<1x1x128x128xbf16> to vector<128x128xbf16>
    %cst_165 = arith.constant dense<0.000000e+00> : vector<96x128xf32>
    %205 = tpu.matmul %202, %204, %cst_165 {dimension_numbers = #tpu.dot_dimension_numbers<[1], [0], [0], [1], [0, 0, 1, 1], [], []>} : vector<96x128xbf16>, vector<128x128xbf16>, vector<96x128xf32> -> vector<96x128xf32>
    %c8_166 = arith.constant 8 : index
    %c0_167 = arith.constant 0 : index
    %206 = vector.load %arg9[%c8_166, %c0_167] : memref<112x128xbf16, #tpu.memory_space<vmem>>, vector<96x128xbf16>
    %c2_168 = arith.constant 2 : index
    %c1_169 = arith.constant 1 : index
    %c0_170 = arith.constant 0 : index
    %c0_171 = arith.constant 0 : index
    %207 = vector.load %arg5[%c2_168, %c1_169, %c0_170, %c0_171] : memref<3x3x128x128xbf16, #tpu.memory_space<vmem>>, vector<1x1x128x128xbf16>
    %208 = vector.shape_cast %207 : vector<1x1x128x128xbf16> to vector<128x128xbf16>
    %cst_172 = arith.constant dense<0.000000e+00> : vector<96x128xf32>
    %209 = tpu.matmul %206, %208, %cst_172 {dimension_numbers = #tpu.dot_dimension_numbers<[1], [0], [0], [1], [0, 0, 1, 1], [], []>} : vector<96x128xbf16>, vector<128x128xbf16>, vector<96x128xf32> -> vector<96x128xf32>
    %210 = arith.addf %205, %209 : vector<96x128xf32>
    %c9_173 = arith.constant 9 : index
    %c0_174 = arith.constant 0 : index
    %211 = vector.load %arg9[%c9_173, %c0_174] : memref<112x128xbf16, #tpu.memory_space<vmem>>, vector<96x128xbf16>
    %c2_175 = arith.constant 2 : index
    %c2_176 = arith.constant 2 : index
    %c0_177 = arith.constant 0 : index
    %c0_178 = arith.constant 0 : index
    %212 = vector.load %arg5[%c2_175, %c2_176, %c0_177, %c0_178] : memref<3x3x128x128xbf16, #tpu.memory_space<vmem>>, vector<1x1x128x128xbf16>
    %213 = vector.shape_cast %212 : vector<1x1x128x128xbf16> to vector<128x128xbf16>
    %cst_179 = arith.constant dense<0.000000e+00> : vector<96x128xf32>
    %214 = tpu.matmul %211, %213, %cst_179 {dimension_numbers = #tpu.dot_dimension_numbers<[1], [0], [0], [1], [0, 0, 1, 1], [], []>} : vector<96x128xbf16>, vector<128x128xbf16>, vector<96x128xf32> -> vector<96x128xf32>
    %215 = arith.addf %210, %214 : vector<96x128xf32>
    %c2_180 = arith.constant 2 : index
    %c0_181 = arith.constant 0 : index
    %c0_182 = arith.constant 0 : index
    %216 = vector.load %arg6[%c2_180, %c0_181, %c0_182] : memref<3x1x128xf32, #tpu.memory_space<vmem>>, vector<1x1x128xf32>
    %217 = vector.shape_cast %216 : vector<1x1x128xf32> to vector<1x128xf32>
    %218 = vector.broadcast %217 : vector<1x128xf32> to vector<96x128xf32>
    %219 = arith.addf %215, %218 : vector<96x128xf32>
    %cst_183 = arith.constant 0.000000e+00 : f32
    %220 = vector.shape_cast %37 : vector<96x1xi1> to vector<96x1xi1>
    %221 = vector.broadcast %220 : vector<96x1xi1> to vector<96x128xi1>
    %222 = vector.broadcast %cst_183 : f32 to vector<96x128xf32>
    %223 = arith.select %221, %219, %222 : vector<96x128xi1>, vector<96x128xf32>
    %224 = arith.addf %165, %223 : vector<96x128xf32>
    %225 = vector.extract_strided_slice %224 {offsets = [16, 0], sizes = [64, 128], strides = [1, 1]} : vector<96x128xf32> to vector<64x128xf32>
    %c0_184 = arith.constant 0 : index
    %c0_185 = arith.constant 0 : index
    %c0_186 = arith.constant 0 : index
    %226 = vector.load %arg7[%c0_184, %c0_185, %c0_186] : memref<1x64x128xf32, #tpu.memory_space<vmem>>, vector<1x64x128xf32>
    %227 = vector.shape_cast %226 : vector<1x64x128xf32> to vector<64x128xf32>
    %228 = vector.shape_cast %225 : vector<64x128xf32> to vector<1x64x128xf32>
    tpu.vector_store %arg7[%c0_184, %c0_185, %c0_186], %228 {strides = array<i32>} : memref<1x64x128xf32, #tpu.memory_space<vmem>>, vector<1x64x128xf32>,
    return
  }
  func.func @transform_1(%arg0: i32, %arg1: i32) -> (i32, i32, i32, i32) {
    %c0_i32 = arith.constant 0 : i32
    %c0_i32_0 = arith.constant 0 : i32
    %c0_i32_1 = arith.constant 0 : i32
    %c0_i32_2 = arith.constant 0 : i32
    %c0_i32_3 = arith.constant 0 : i32
    return %c0_i32, %c0_i32_0, %c0_i32_1, %c0_i32_2 : i32, i32, i32, i32
  }
  func.func @transform_2(%arg0: i32, %arg1: i32) -> (i32, i32, i32) {
    %c0_i32 = arith.constant 0 : i32
    %c0_i32_0 = arith.constant 0 : i32
    %c0_i32_1 = arith.constant 0 : i32
    %c0_i32_2 = arith.constant 0 : i32
    return %c0_i32, %c0_i32_0, %c0_i32_1 : i32, i32, i32
  }
  func.func @transform_3(%arg0: i32, %arg1: i32) -> (i32, i32, i32, i32) {
    %c0_i32 = arith.constant 0 : i32
    %c0_i32_0 = arith.constant 0 : i32
    %c0_i32_1 = arith.constant 0 : i32
    %c0_i32_2 = arith.constant 0 : i32
    %c0_i32_3 = arith.constant 0 : i32
    return %c0_i32, %c0_i32_0, %c0_i32_1, %c0_i32_2 : i32, i32, i32, i32
  }
  func.func @transform_4(%arg0: i32, %arg1: i32) -> (i32, i32, i32) {
    %c0_i32 = arith.constant 0 : i32
    %c0_i32_0 = arith.constant 0 : i32
    %c0_i32_1 = arith.constant 0 : i32
    %c0_i32_2 = arith.constant 0 : i32
    return %c0_i32, %c0_i32_0, %c0_i32_1 : i32, i32, i32
  }
  func.func @transform_5(%arg0: i32, %arg1: i32) -> (i32, i32, i32) {
    %c0_i32 = arith.constant 0 : i32
    %c0_i32_0 = arith.constant 0 : i32
    return %arg0, %arg1, %c0_i32 : i32, i32, i32
  }
}

</mosaic_0001>

<bundles_post_ra>
// kernel: tpu_custom_call.1
= control target key start
LH: loop header
LB: loop body
LE: loop exit
PB: predicated region body
PF: predicated region fallthrough
CT: control target
= control target key end

     0   :  { %s8180_s0 = inlined_call_operand.hbm [shape: f32[2,256,128], index: 0, kind: input, shape index: {}]   ;;  %s8181_s1 = inlined_call_operand.hbm [shape: bf16[3,3,128,128], index: 1, kind: input, shape index: {}]   ;;  %s8182_s2 = inlined_call_operand.vmem [shape: f32[3,1,128], index: 2, kind: input, shape index: {}]   ;;  %s8183_s3 = inlined_call_operand.hbm [shape: bf16[3,3,128,128], index: 3, kind: input, shape index: {}]   ;;  %s8184_s4 = inlined_call_operand.vmem [shape: f32[3,1,128], index: 4, kind: input, shape index: {}]   ;;  %s8185_s5 = inlined_call_operand.hbm [shape: f32[2,256,128], index: 5, kind: output, shape index: {}]  }
   0x1   :  { %8234 = sst [smem:[#allocation43_spill]] %s8181_s1 }
   0x2   :  { %8235 = sst [smem:[#allocation44_spill]] %s8183_s3 }
   0x3   :  { %8236 = sst [smem:[#allocation45_spill]] %s8184_s4 }
   0x4   :  { %8237 = sst [smem:[#allocation46_spill]] %s8185_s5 }
   0x5   :  { %10 = vsyncpa [#allocation6], 0 }
   0x6   :  { %11 = vsyncpa [#allocation9], 0 }
   0x7   :  { %12 = vsyncpa [#allocation7], 0 }
   0x8   :  { %14 = vsyncpa [#allocation7 + $0x1], 0  ;;  %s6666_s18 = smov 0   ;;  %s6668_s19 = smov 0  }
   0x9   :  { %s6670_s20 = smov 0   ;;  %s6672_s21 = smov 0  }
   0xa   :  { %s6674_s22 = smov 0   ;;  %s6676_s23 = smov 0  }
   0xb   :  { %s6678_s24 = smov 0   ;;  %s6680_s25 = smov 0  }
   0xc LB: > { %8238 = sst [smem:[#allocation31_spill]] %s6597_s18  ;;  %s4905_s26 = sadd.s32 4294967295, %s6625_s25   ;;  %s6625_s25 = sphi %s6680_s25, %s20_s25   ;;  %s6621_s24 = sphi %s6678_s24, %s8416_s24   ;;  %s6617_s23 = sphi %s6676_s23, %s8415_s23   ;;  %s6613_s22 = sphi %s6674_s22, %s8414_s22   ;;  %s6609_s21 = sphi %s6672_s21, %s8413_s21   ;;  %s6605_s20 = sphi %s6670_s20, %s8412_s20   ;;  %s6601_s19 = sphi %s6668_s19, %s8411_s19   ;;  %s6597_s18 = sphi %s6666_s18, %s8410_s18  }
   0xd   : > { %8239 = sst [smem:[#allocation32_spill]] %s6601_s19  ;;  %s4906_s27 = sadd.s32 4294967294, %s6625_s25  }
   0xe   : > { %8240 = sst [smem:[#allocation33_spill]] %s6605_s20  ;;  %s29_s28 = sadd.s32 1, %s6617_s23 }
   0xf   : > { %8241 = sst [smem:[#allocation34_spill]] %s6617_s23  ;;  %s32_s29 = sadd.s32 1, %s6621_s24 }
  0x10   : > { %8242 = sst [smem:[#allocation35_spill]] %s6621_s24  ;;  %p30_p0 = scmp.ge.s32.totalorder %s29_s28, 4 }
  0x11   : > { %8243 = sst [smem:[#allocation36_spill]] %s6625_s25  ;;  %s125_s30 = sadd.s32 1, %s6605_s20 }
  0x12   : > { %p135_p1 = scmp.ne.s32.totalorder %s6605_s20, %s6601_s19  ;;  %p136_p2 = scmp.eq.s32.totalorder %s4905_s26, 7 }
  0x13   : > { %s8418_s28 = smov (%p30_p0, %s29_s28), 0  ;;  %s8420_s29 = smov (!%p30_p0, %s32_s29), %s6621_s24 }
  0x14   : > { %8244 = sst [smem:[#allocation37_spill]] %s8418_s28  ;;  %s121_s6 = ssub.s32 %s6617_s23, %s8418_s28 }
  0x15   : > { %p6718_p3 = por %p136_p2, %p135_p1  ;;  %p34_p4 = scmp.ge.s32.totalorder %s8420_s29, 2 }
  0x16   : > { %p141_p5 = scmp.ne.s32.totalorder %s6601_s19, %s6597_s18  ;;  %p142_p6 = scmp.eq.s32.totalorder %s4906_s27, 7 }
  0x17   : > { %s8245_s7 = scalar_select %p6718_p3, 1, 0 }
  0x18   : > { %p4907_p7 = scmp.ge.s32.totalorder %s6625_s25, 1  ;;  %s8422_s29 = smov (%p34_p4, %s8420_s29), 0 }
  0x19   : > { %8246 = sst [smem:[#allocation38_spill]] %s8245_s7  ;;  %p6727_p8 = por %p142_p6, %p141_p5 }
  0x1a   : > { %8247 = sst [smem:[#allocation39_spill]] %s8422_s29  ;;  %p149_p9 = scmp.lt.s32.totalorder %s6625_s25, 9 }
  0x1b   : > { %s8248_s8 = scalar_select %p6727_p8, 1, 0 }
  0x1c   : > { %s120_s9 = ssub.s32 %s6621_s24, %s8422_s29  ;;  %p6734_p10 = pnand %p4907_p7, %p149_p9 }
  0x1d   : > { %8249 = sst [smem:[#allocation40_spill]] %s8248_s8  ;;  %s122_s10 = sor.u32 %s121_s6, %s120_s9 }
  0x1e   : > { %s8250_s11 = scalar_select %p6734_p10, 1, 0 }
  0x1f   : > { %p123_p11 = scmp.eq.s32.totalorder %s122_s10, 0  ;;  %p6738_p12 = scmp.eq.s32.totalorder %s4905_s26, 0 }
  0x20   : > { %p6019_p13 = pneg %p6734_p10  ;;  %s6627_s14 = smov [#allocation5]  }
  0x21   : > { %s8251_s12 = scalar_select %p6738_p12, 1, 0 }
  0x22   : > { %s6745_s13 = scalar_select %p123_p11, %s6605_s20, %s125_s30  }
  0x23   : > { %s161_s15 = sshll.u32 %s6627_s14, 4  ;;  %p6749_p0 = pnand %p6738_p12, %p6019_p13  ;;  %s162_s15 = int_to_ptr.vmem [resolvable:$true] %s161_s15 }
  0x24   : > { %8252 = sst [smem:[#allocation41_spill]] %s6745_s13  ;;  %s8254_s1 = sld [smem:[#allocation43_spill]] }
  0x25   : > { %p6277_p2 = pneg %p6749_p0 }
  0x2a   : > { %s6275_s27 = scalar_lea.hbm %s8254_s1, 9216 }
  0x2b   : > { %p6276_p1 = scmp.ne.s32.totalorder %s8254_s1, %s6275_s27  ;;  %p6282_p6 = scmp.lt.u32.totalorder %s6275_s27, %s8254_s1 }
  0x2d   : > { %p6278_p4 = pnand %p6277_p2, %p6276_p1 }
  0x2f   : > { %p6279_p5 = pneg %p6278_p4 }
  0x31   : > { %p6284_p7 = pnand %p6282_p6, %p6279_p5 }
  0x33   : > { %6287 = shalt.err (!%p6284_p7)
}
  0x34   : > { %s6288_s14 = scalar_lea.vmem %s162_s15, 9216  ;;  %p6296_p8 = scmp.lt.s32.totalorder %s162_s15, %s162_s15 }
  0x35   : > { %p6289_p9 = scmp.ne.s32.totalorder %s162_s15, %s6288_s14  ;;  %p6297_p3 = scmp.lt.s32.totalorder %s6288_s14, %s6288_s14 }
  0x37   : > { %p6291_p11 = pnand %p6289_p9, %p6277_p2  ;;  %p6298_p12 = por %p6297_p3, %p6296_p8 }
  0x39   : > { %p6292_p13 = pneg %p6291_p11 }
  0x3b   : > { %p6299_p10 = pnand %p6298_p12, %p6292_p13 }
  0x3d   : > { %6302 = shalt.err (!%p6299_p10)
}
  0x3e   : > { %s6628_s17 = smov 64   ;;  %s6629_s26 = smov 4  }
  0x3f   : > { %6022 = dma.hbm_to_vmem [thread:$0]  (!%p6749_p0), %s8254_s1, 9216, %s162_s15, [#allocation6], %s6628_s17, %s6628_s17, %s6629_s26  }
  0x40   : > { %s6630_s9 = smov [#allocation8]   ;;  %s8255_s3 = sld [smem:[#allocation44_spill]] }
  0x41   : > { %s177_s30 = sshll.u32 %s6630_s9, 4  ;;  %s178_s30 = int_to_ptr.vmem [resolvable:$true] %s177_s30 }
  0x46   : > { %s6303_s28 = scalar_lea.hbm %s8255_s3, 9216 }
  0x47   : > { %p6304_p3 = scmp.ne.s32.totalorder %s8255_s3, %s6303_s28  ;;  %p6310_p12 = scmp.lt.u32.totalorder %s6303_s28, %s8255_s3 }
  0x49   : > { %p6306_p8 = pnand %p6304_p3, %p6277_p2 }
  0x4b   : > { %p6307_p10 = pneg %p6306_p8 }
  0x4d   : > { %p6312_p1 = pnand %p6310_p12, %p6307_p10 }
  0x4f   : > { %6315 = shalt.err (!%p6312_p1)
}
  0x50   : > { %s6316_s15 = scalar_lea.vmem %s178_s30, 9216  ;;  %p6324_p7 = scmp.lt.s32.totalorder %s178_s30, %s178_s30 }
  0x51   : > { %p6317_p4 = scmp.ne.s32.totalorder %s178_s30, %s6316_s15  ;;  %p6325_p9 = scmp.lt.s32.totalorder %s6316_s15, %s6316_s15 }
  0x53   : > { %p6319_p5 = pnand %p6317_p4, %p6277_p2  ;;  %p6326_p11 = por %p6325_p9, %p6324_p7 }
  0x55   : > { %p6320_p6 = pneg %p6319_p5 }
  0x57   : > { %p6327_p13 = pnand %p6326_p11, %p6320_p6 }
  0x59   : > { %6330 = shalt.err (!%p6327_p13)
}
  0x5a   : > { %6025 = dma.hbm_to_vmem [thread:$0]  (!%p6749_p0), %s8255_s3, 9216, %s178_s30, [#allocation9], %s6628_s17, %s6628_s17, %s6629_s26  }
  0x5b   : > { %p8256_p3 = scmp.ne.s32.totalorder %s8250_s11, 0 }
  0x5d   : > { %196 = sbr.rel (%p8256_p3) target bundleno = 2151 (0x867), region = 36 }
  0x64   : > { %p8257_p8 = scmp.ne.s32.totalorder %s8251_s12, 0 }
  0x66   : > { %6572 = dma.done.wait (%p8257_p8), [#allocation6], 9216  }
  0x67   : > { %6574 = vsyncadd (%p8257_p8), [#allocation6], 4294958080 }
  0x68   : > { %6576 = dma.done.wait (%p8257_p8), [#allocation9], 9216  }
  0x69   : > { %6578 = vsyncadd (%p8257_p8), [#allocation9], 4294958080  ;;  %s8194_s23 = sand.u32 1, %s6601_s19   ;;  %p223_p0 = scmp.lt.s32.totalorder %s6609_s21, 0 }
  0x6a   : > { %s6809_s28 = sshll.u32 %s8194_s23, 6  ;;  %s224_s11 = ssub.s32 0, %s6609_s21 }
  0x6b   : > { %s4914_s12 = smin.u32 %s6609_s21, %s224_s11  ;;  %p8197_p2 = scmp.eq.s32.totalorder %s6609_s21, 0 }
  0x6c   : > { %s226_s13 = sand.u32 1, %s4914_s12   ;;  %s5103_s17 = sshll.u32 %s6613_s22, 12 }
  0x6d   : > { %s227_s16 = ssub.s32 0, %s226_s13  ;;  %p8195_p10 = scmp.eq.s32.totalorder %s6609_s21, 3 }
  0x6e   : > { %s8424_s16 = smov (!%p223_p0, %s227_s16), %s226_s13  ;;  %s6819_s9 = scalar_lea.hbm %s8180_s0, %s5103_s17 }
  0x6f   : > { %p4916_p12 = scmp.lt.s32.totalorder %s8424_s16, 0  ;;  %s233_s26 = sadd.s32 2, %s8424_s16 }
  0x70   : > { %p6825_p1 = pnand %p8195_p10, %p8197_p2  ;;  %s6832_s10 = scalar_lea.hbm %s6819_s9, 2816 }
  0x71   : > { %s8426_s26 = smov (!%p4916_p12, %s233_s26), %s8424_s16  ;;  %p276_p4 = scmp.gt.s32.totalorder %s6609_s21, 0 }
  0x72   : > { %s242_s14 = smul.u32 96, %s8426_s26  ;;  %p277_p5 = scmp.lt.s32.totalorder %s6609_s21, 3 }
  0x73   : > { %s6850_s13 = scalar_lea.sflag [#allocation4], %s8426_s26  ;;  %s6853_s16 = scalar_lea.hbm %s6819_s9, 1280 }
  0x74   : > { %s6837_s15 = scalar_lea.vmem [#allocation2], %s242_s14  ;;  %p6841_p6 = pnand %p277_p5, %p276_p4 }
  0x75   : > { %s4811_s24 = scalar_lea.vmem %s6837_s15, 16 [#allocation2]  ;;  %s272_s29 = sshll.u32 %s6837_s15, 4  ;;  %s6847_s29 = int_to_ptr.vmem [resolvable:$true] %s272_s29 }
  0x76   : > { %s253_s11 = sshll.u32 %s4811_s24, 4  ;;  %p8196_p7 = scmp.ne.s32.totalorder %s6819_s9, %s6853_s16  ;;  %s6845_s11 = int_to_ptr.vmem [resolvable:$true] %s253_s11 }
  0x77   : > { %s8259_s12 = scalar_select %p6841_p6, 1, 0 }
  0x78   : > { %p6333_p9 = pnand %p8196_p7, %p8197_p2  ;;  %s6865_s6 = scalar_lea.hbm %s8180_s0, 8192 }
  0x79   : > { %p6336_p13 = scmp.lt.u32.totalorder %s6819_s9, %s8180_s0  ;;  %p6337_p3 = scmp.lt.u32.totalorder %s6865_s6, %s6853_s16 }
  0x7a   : > { %p6334_p11 = pneg %p6333_p9  ;;  %p6339_p0 = scmp.lt.u32.totalorder %s6853_s16, %s6819_s9 }
  0x7b   : > { %p6338_p8 = por %p6337_p3, %p6336_p13 }
  0x7d   : > { %p6875_p12 = por %p6339_p0, %p6338_p8 }
  0x7f   : > { %s8260_s23 = scalar_select %p6875_p12, 1, 0 }
  0x80   : > { %p6341_p4 = pnand %p6875_p12, %p6334_p11 }
  0x82   : > { %6344 = shalt.err (!%p6341_p4)  }
  0x83   : > { %s6345_s17 = scalar_lea.vmem %s6845_s11, 1280  ;;  %s6631_s27 = smov [#allocation2]  }
  0x84   : > { %p6346_p5 = scmp.ne.s32.totalorder %s6845_s11, %s6345_s17  ;;  %s6349_s14 = sshll.u32 %s6631_s27, 4  ;;  %s6885_s14 = int_to_ptr.vmem [resolvable:$false] %s6349_s14 }
  0x85   : > { %s6888_s24 = scalar_lea.vmem %s6885_s14, 3072  ;;  %p6352_p11 = scmp.lt.s32.totalorder %s6845_s11, %s6885_s14 }
  0x86   : > { %p6347_p9 = pnand %p6346_p5, %p8197_p2  ;;  %p6353_p13 = scmp.lt.s32.totalorder %s6888_s24, %s6345_s17 }
  0x88   : > { %p6348_p10 = pneg %p6347_p9  ;;  %p6354_p3 = por %p6353_p13, %p6352_p11 }
  0x8a   : > { %p6355_p8 = pnand %p6354_p3, %p6348_p10 }
  0x8c   : > { %6358 = shalt.err (!%p6355_p8)  }
  0x8d   : > { %6027 = dma.hbm_to_vmem [thread:$0]  (%p8197_p2), %s6819_s9, 1280, %s6845_s11, %s6850_s13 }
  0x8e   : > { %s6902_s27 = scalar_lea.hbm %s6819_s9, 4096  ;;  %p6361_p4 = pneg %p6825_p1 }
  0x8f   : > { %p8198_p10 = scmp.ne.s32.totalorder %s6832_s10, %s6902_s27  ;;  %p6365_p11 = scmp.lt.u32.totalorder %s6832_s10, %s8180_s0 }
  0x90   : > { %p6366_p13 = scmp.lt.u32.totalorder %s6865_s6, %s6902_s27  ;;  %p6368_p8 = scmp.lt.u32.totalorder %s6902_s27, %s6832_s10 }
  0x91   : > { %p6362_p5 = pnand %p6361_p4, %p8198_p10 }
  0x92   : > { %p6367_p3 = por %p6366_p13, %p6365_p11 }
  0x93   : > { %p6363_p9 = pneg %p6362_p5 }
  0x94   : > { %p6919_p7 = por %p6368_p8, %p6367_p3 }
  0x96   : > { %s8261_s11 = scalar_select %p6919_p7, 1, 0 }
  0x97   : > { %p6370_p2 = pnand %p6919_p7, %p6363_p9 }
  0x99   : > { %6373 = shalt.err (!%p6370_p2)  }
  0x9a   : > { %s6374_s1 = scalar_lea.vmem %s6847_s29, 1280  ;;  %p8210_p13 = scmp.lt.s32.totalorder %s6847_s29, %s6885_s14 }
  0x9b   : > { %p6375_p5 = scmp.ne.s32.totalorder %s6847_s29, %s6374_s1  ;;  %p6383_p3 = scmp.lt.s32.totalorder %s6888_s24, %s6374_s1 }
  0x9d   : > { %p6377_p10 = pnand %p6375_p5, %p6361_p4  ;;  %p6384_p8 = por %p6383_p3, %p8210_p13 }
  0x9f   : > { %p6378_p11 = pneg %p6377_p10 }
  0xa1   : > { %p6385_p0 = pnand %p6384_p8, %p6378_p11 }
  0xa3   : > { %6388 = shalt.err (!%p6385_p0)  }
  0xa4   : > { %6030 = dma.hbm_to_vmem [thread:$0]  (!%p6825_p1), %s6832_s10, 1280, %s6847_s29, %s6850_s13 }
  0xa5   : > { %p8262_p2 = pneg %p6841_p6  ;;  %p8263_p10 = scmp.eq.s32.totalorder %s6609_s21, 0 }
  0xa6   : > { %s8208_s30 = sshll.u32 %s6609_s21, 6  ;;  %s6953_s17 = sadd.s32 1, %s6609_s21 }
  0xa7   : > { %p6943_p4 = pnand %p8263_p10, %p8262_p2  ;;  %s6950_s1 = sadd.s32 4294967280, %s8208_s30 }
  0xa8   : > { %s8265_s20 = sshll.u32 %s6613_s22, 8 }
  0xa9   : > { %s8264_s3 = scalar_select %p6943_p4, 1, 0 }
  0xaa   : > { %s284_s8 = sadd.s32 %s6950_s1, %s8265_s20  ;;  %p6392_p9 = pneg %p6943_p4 }
  0xab   : > { %s4925_s18 = sshll.u32 %s284_s8, 4 }
  0xac   : > { %s286_s7 = scalar_lea.hbm %s8180_s0, %s4925_s18 }
  0xad   : > { %s6390_s19 = scalar_lea.hbm %s286_s7, 1536  ;;  %p6396_p3 = scmp.lt.u32.totalorder %s286_s7, %s8180_s0 }
  0xae   : > { %p6391_p0 = scmp.ne.s32.totalorder %s286_s7, %s6390_s19  ;;  %p6397_p8 = scmp.lt.u32.totalorder %s6865_s6, %s6390_s19 }
  0xaf   : > { %p6399_p10 = scmp.lt.u32.totalorder %s6390_s19, %s286_s7 }
  0xb0   : > { %p6393_p5 = pnand %p6392_p9, %p6391_p0  ;;  %p6398_p2 = por %p6397_p8, %p6396_p3 }
  0xb2   : > { %p6394_p11 = pneg %p6393_p5  ;;  %p6400_p13 = por %p6399_p10, %p6398_p2 }
  0xb4   : > { %p6401_p6 = pnand %p6400_p13, %p6394_p11 }
  0xb6   : > { %6404 = shalt.err (!%p6401_p6)  }
  0xb7   : > { %s6405_s5 = scalar_lea.vmem %s6847_s29, 1536  ;;  %p8266_p12 = scmp.lt.s32.totalorder %s6847_s29, %s6885_s14 }
  0xb8   : > { %p6406_p1 = scmp.ne.s32.totalorder %s6847_s29, %s6405_s5  ;;  %p6414_p5 = scmp.lt.s32.totalorder %s6888_s24, %s6405_s5 }
  0xba   : > { %p6408_p7 = pnand %p6406_p1, %p6392_p9  ;;  %p6415_p4 = por %p6414_p5, %p8266_p12 }
  0xbc   : > { %p6409_p0 = pneg %p6408_p7 }
  0xbe   : > { %p6416_p3 = pnand %p6415_p4, %p6409_p0 }
  0xc0   : > { %6419 = shalt.err (!%p6416_p3)  }
  0xc1   : > { %p8267_p8 = scmp.ne.s32.totalorder %s8264_s3, 0  ;;  %s304_s4 = ssub.s32 1, %s8426_s26 }
  0xc2   : > { %p6055_p6 = scmp.eq.s32.totalorder %s6953_s17, 0  ;;  %s4827_s18 = smul.u32 96, %s304_s4 }
  0xc3   : > { %6033 = dma.hbm_to_vmem [thread:$0]  (!%p8267_p8), %s286_s7, 1536, %s6847_s29, %s6850_s13 }
  0xc4   : > { %p8268_p7 = scmp.lt.s32.totalorder %s6953_s17, 4  ;;  %s4828_s20 = scalar_lea.vmem [#allocation2], %s4827_s18 }
  0xc5   : > { %s4829_s25 = scalar_lea.vmem %s4828_s20, 16 [#allocation2]  ;;  %s345_s3 = sshll.u32 %s4828_s20, 4  ;;  %s7002_s3 = int_to_ptr.vmem [resolvable:$true] %s345_s3 }
  0xc6   : > { %p6982_p13 = pnand %p6055_p6, %p8268_p7  ;;  %s323_s8 = sshll.u32 %s4829_s25, 4  ;;  %s324_s8 = int_to_ptr.vmem [resolvable:$true] %s323_s8 }
  0xc7   : > { %s6987_s30 = scalar_lea.sflag [#allocation4], %s304_s4  ;;  %p8270_p1 = scmp.ne.s32.totalorder %s6819_s9, %s6853_s16 }
  0xc8   : > { %p6422_p4 = pneg %p6982_p13  ;;  %p8271_p2 = scmp.ne.s32.totalorder %s8260_s23, 0 }
  0xca   : > { %p6423_p9 = pnand %p6422_p4, %p8270_p1 }
  0xcc   : > { %p6424_p11 = pneg %p6423_p9 }
  0xce   : > { %p6431_p10 = pnand %p6424_p11, %p8271_p2 }
  0xd0   : > { %6434 = shalt.err (!%p6431_p10)  }
  0xd1   : > { %s6435_s7 = scalar_lea.vmem %s324_s8, 1280  ;;  %p6443_p8 = scmp.lt.s32.totalorder %s324_s8, %s6885_s14 }
  0xd2   : > { %p6436_p0 = scmp.ne.s32.totalorder %s324_s8, %s6435_s7  ;;  %p6444_p6 = scmp.lt.s32.totalorder %s6888_s24, %s6435_s7 }
  0xd4   : > { %p6438_p5 = pnand %p6436_p0, %p6422_p4  ;;  %p6445_p7 = por %p6444_p6, %p6443_p8 }
  0xd6   : > { %p6439_p3 = pneg %p6438_p5 }
  0xd8   : > { %p6446_p12 = pnand %p6445_p7, %p6439_p3 }
  0xda   : > { %6449 = shalt.err (!%p6446_p12)  }
  0xdb   : > { %6037 = dma.hbm_to_vmem [thread:$0]  (!%p6982_p13), %s6819_s9, 1280, %s324_s8, %s6987_s30 }
  0xdc   : > { %p8272_p4 = scmp.lt.s32.totalorder %s6953_s17, 4  ;;  %p8273_p1 = scmp.eq.s32.totalorder %s6953_s17, 3 }
  0xdd   : > { %p349_p12 = scmp.gt.s32.totalorder %s6953_s17, 0  ;;  %s8275_s26 = sshll.u32 %s6609_s21, 6 }
  0xde   : > { %p7008_p9 = pnand %p8273_p1, %p8272_p4  ;;  %s5108_s29 = sadd.s32 64, %s8275_s26 }
  0xdf   : > { %p8276_p10 = scmp.ne.s32.totalorder %s6832_s10, %s6902_s27  ;;  %p8277_p3 = scmp.ne.s32.totalorder %s8261_s11, 0 }
  0xe0   : > { %p6452_p2 = pneg %p7008_p9 }
  0xe2   : > { %p6453_p0 = pnand %p6452_p2, %p8276_p10 }
  0xe4   : > { %p6454_p5 = pneg %p6453_p0 }
  0xe6   : > { %p6461_p13 = pnand %p6454_p5, %p8277_p3 }
  0xe8   : > { %6464 = shalt.err (!%p6461_p13)  }
  0xe9   : > { %s6465_s9 = scalar_lea.vmem %s7002_s3, 1280  ;;  %p6473_p4 = scmp.lt.s32.totalorder %s7002_s3, %s6885_s14 }
  0xea   : > { %p6466_p8 = scmp.ne.s32.totalorder %s7002_s3, %s6465_s9  ;;  %p6474_p1 = scmp.lt.s32.totalorder %s6888_s24, %s6465_s9 }
  0xec   : > { %p6468_p6 = pnand %p6466_p8, %p6452_p2  ;;  %p6475_p11 = por %p6474_p1, %p6473_p4 }
  0xee   : > { %p6469_p7 = pneg %p6468_p6 }
  0xf0   : > { %p6476_p10 = pnand %p6475_p11, %p6469_p7 }
  0xf2   : > { %6479 = shalt.err (!%p6476_p10)  }
  0xf3   : > { %6040 = dma.hbm_to_vmem [thread:$0]  (!%p7008_p9), %s6832_s10, 1280, %s7002_s3, %s6987_s30 }
  0xf4   : > { %p8278_p2 = scmp.lt.s32.totalorder %s6953_s17, 3  ;;  %s4934_s16 = sadd.s32 4294967280, %s5108_s29 }
  0xf5   : > { %s8279_s27 = sshll.u32 %s6613_s22, 8  ;;  %p8280_p11 = scmp.lt.s32.totalorder %s6953_s17, 4 }
  0xf6   : > { %p351_p0 = pnand %p8278_p2, %p349_p12  ;;  %s358_s11 = sadd.s32 %s4934_s16, %s8279_s27 }
  0xf7   : > { %s4936_s5 = sshll.u32 %s358_s11, 4 }
  0xf8   : > { %p6009_p5 = pneg %p351_p0  ;;  %s360_s19 = scalar_lea.hbm %s8180_s0, %s4936_s5 }
  0xf9   : > { %s6481_s25 = scalar_lea.hbm %s360_s19, 1536  ;;  %p6487_p6 = scmp.lt.u32.totalorder %s360_s19, %s8180_s0 }
  0xfa   : > { %p7047_p3 = pnand %p8280_p11, %p6009_p5  ;;  %p6482_p9 = scmp.ne.s32.totalorder %s360_s19, %s6481_s25 }
  0xfb   : > { %p6488_p7 = scmp.lt.u32.totalorder %s6865_s6, %s6481_s25  ;;  %p6490_p10 = scmp.lt.u32.totalorder %s6481_s25, %s360_s19 }
  0xfc   : > { %s8281_s20 = scalar_select %p7047_p3, 1, 0 }
  0xfd   : > { %p6483_p13 = pneg %p7047_p3  ;;  %p6489_p1 = por %p6488_p7, %p6487_p6 }
  0xff   : > { %p6484_p12 = pnand %p6483_p13, %p6482_p9  ;;  %p6491_p2 = por %p6490_p10, %p6489_p1 }
 0x101   : > { %p6485_p8 = pneg %p6484_p12 }
 0x103   : > { %p6492_p0 = pnand %p6491_p2, %p6485_p8 }
 0x105   : > { %6495 = shalt.err (!%p6492_p0)  }
 0x106   : > { %s6496_s17 = scalar_lea.vmem %s7002_s3, 1536 }
 0x107   : > { %p6497_p5 = scmp.ne.s32.totalorder %s7002_s3, %s6496_s17  ;;  %p6505_p12 = scmp.lt.s32.totalorder %s6888_s24, %s6496_s17 }
 0x109   : > { %p6499_p11 = pnand %p6497_p5, %p6483_p13  ;;  %p6506_p3 = por %p6505_p12, %p6473_p4 }
 0x10b   : > { %p6500_p9 = pneg %p6499_p11 }
 0x10d   : > { %p6507_p6 = pnand %p6506_p3, %p6500_p9 }
 0x10f   : > { %6510 = shalt.err (!%p6507_p6)  }
 0x110   : > { %p8282_p7 = scmp.ne.s32.totalorder %s8281_s20, 0  ;;  %s7068_s6 = scalar_lea.vmem [#allocation10], %s6809_s28 }
 0x111   : > { %p8283_p8 = scmp.eq.s32.totalorder %s6609_s21, 0 }
 0x112   : > { %6043 = dma.hbm_to_vmem [thread:$0]  (!%p8282_p7), %s360_s19, 1536, %s7002_s3, %s6987_s30 }
 0x113   : > { %6580 = dma.done.wait (%p8283_p8), %s6850_s13, 1280  ;;  %p8284_p13 = pmov %p8283_p8 }
 0x114   : > { %p8285_p4 = scmp.eq.s32.totalorder %s6609_s21, 3 }
 0x115   : > { %6582 = vsyncadd (%p8284_p13), %s6850_s13, 4294966016 }
 0x116   : > { %6584 = dma.done.wait (%p8285_p4), %s6850_s13, 1280  ;;  %p8286_p3 = pmov %p8285_p4 }
 0x117   : > { %p8287_p1 = scmp.ne.s32.totalorder %s8259_s12, 0 }
 0x118   : > { %6586 = vsyncadd (%p8286_p3), %s6850_s13, 4294966016 }
 0x119   : > { %6588 = dma.done.wait (!%p8287_p1), %s6850_s13, 1536 }
 0x11a   : > { %6590 = vsyncadd (!%p8287_p1), %s6850_s13, 4294965760  ;;  %v404_v0 = vlaneseq  ;;  %v6632_v1 = vmov 0   ;;  %v7091_v3 = vstv %s6950_s1  ;;  %v6131_v10 = vld [vmem:[#allocation5 + $0x40] sm:$0xff]   ;;  %v6132_v13 = vld [vmem:[#allocation5 + $0x48] sm:$0xff]   ;;  %v8299_v44 = vmov 0  ;;  %s8328_s14 = sld [smem:[#allocation45_spill]] }
 0x11b   : > { %466 = vst [vmem:[#allocation3] sm:$0xf] %v6632_v1  ;;  %467 = vst [vmem:[#allocation3 + $0x30] sm:$0xf0] %v6632_v1  ;;  %5361 = vmatprep.subr.bf16.mxu0 %v6131_v10  ;;  %v6133_v18 = vld [vmem:[#allocation5 + $0x50] sm:$0xff]   ;;  %v6134_v22 = vld [vmem:[#allocation5 + $0x58] sm:$0xff]  }
 0x11c   : > { %v7088_v2 = vshrl.u32 %v404_v0, 7  ;;  %5362 = vmatpush3.bf16.msra.mxu0 %v6131_v10  ;;  %v470_v24 = vld [vmem:[%s6837_s15] sm:$0xff]  ;;  %v471_v25 = vld [vmem:[%s6837_s15 + $0x8] sm:$0xff]  ;;  %v472_v27 = vld [vmem:[%s6837_s15 + $0x10] sm:$0xff]  ;;  %s5096_s9 = sshll.u32 %s6609_s21, 3  ;;  %s5097_s16 = sshll.u32 %s6613_s22, 5 }
 0x11d   : > { %5363 = vmatprep.subr.bf16.mxu0 %v6132_v13  ;;  %v473_v28 = vld [vmem:[%s6837_s15 + $0x18] sm:$0xff]  ;;  %v474_v41 = vld [vmem:[%s6837_s15 + $0x20] sm:$0xff]  ;;  %v475_v45 = vld [vmem:[%s6837_s15 + $0x28] sm:$0xff]  ;;  %s8400_s27 = sld [smem:[#allocation32_spill]]  ;;  %s4760_s11 = sadd.s32 %s5097_s16, %s5096_s9 }
 0x11e   : > { %v406_v4 = vadd.s32 8, %v7088_v2  ;;  %v407_v5 = vadd.s32 16, %v7088_v2  ;;  %v408_v6 = vadd.s32 24, %v7088_v2  ;;  %v418_v7 = vadd.s32 %v7091_v3, %v7088_v2  ;;  %v6135_v36 = vld [vmem:[#allocation5 + $0x60] sm:$0xff]   ;;  %v6136_v50 = vld [vmem:[#allocation5 + $0x68] sm:$0xff]   ;;  %v476_v60 = vld [vmem:[%s6837_s15 + $0x30] sm:$0xff] }
 0x11f   : > { %v409_v8 = vadd.s32 32, %v7088_v2  ;;  %v410_v9 = vadd.s32 40, %v7088_v2  ;;  %v411_v12 = vadd.s32 48, %v7088_v2  ;;  %v412_v16 = vadd.s32 56, %v7088_v2  ;;  %v477_v0 = vld [vmem:[%s6837_s15 + $0x38] sm:$0xff]  ;;  %s8401_s5 = sld [smem:[#allocation38_spill]] }
 0x120   : > { %v419_v11 = vadd.s32 %v7091_v3, %v406_v4  ;;  %v420_v14 = vadd.s32 %v7091_v3, %v407_v5  ;;  %v421_v15 = vadd.s32 %v7091_v3, %v408_v6  ;;  %vm430_vm0 = vcmp.ge.s32.totalorder %v418_v7, 0  ;;  %5364 = vmatpush3.bf16.msra.mxu0 %v6132_v13  ;;  %s4763_s4 = sshll.u32 %s7068_s6, 4  ;;  %s5098_s18 = sshll.u32 %s4760_s11, 7  ;;  %s8116_s4 = int_to_ptr.vmem [resolvable:$true] %s4763_s4 }
 0x121   : > { %vm442_vm1 = vcmp.lt.s32.totalorder %v418_v7, 256  ;;  %v422_v17 = vadd.s32 %v7091_v3, %v409_v8  ;;  %v423_v19 = vadd.s32 %v7091_v3, %v410_v9  ;;  %v424_v20 = vadd.s32 %v7091_v3, %v411_v12  ;;  %5365 = vmatprep.subr.bf16.mxu0 %v6133_v18  ;;  %v6137_v7 = vld [vmem:[#allocation5 + $0x70] sm:$0xff]   ;;  %s8402_s19 = sld [smem:[#allocation46_spill]]  ;;  %s6511_s17 = scalar_lea.vmem %s8116_s4, 1024 }
 0x122   : > { %vm431_vm2 = vcmp.ge.s32.totalorder %v419_v11, 0  ;;  %vm432_vm3 = vcmp.ge.s32.totalorder %v420_v14, 0  ;;  %vm433_vm4 = vcmp.ge.s32.totalorder %v421_v15, 0  ;;  %v425_v21 = vadd.s32 %v7091_v3, %v412_v16  ;;  %vm7111_vm9 = vmand %vm430_vm0, %vm442_vm1  ;;  %p6512_p10 = scmp.ne.s32.totalorder %s8116_s4, %s6511_s17  ;;  %s6633_s28 = smov [#allocation10]  }
 0x123   : > { %vm443_vm5 = vcmp.lt.s32.totalorder %v419_v11, 256  ;;  %vm444_vm6 = vcmp.lt.s32.totalorder %v420_v14, 256  ;;  %vm445_vm7 = vcmp.lt.s32.totalorder %v421_v15, 256  ;;  %vm434_vm8 = vcmp.ge.s32.totalorder %v422_v17, 0  ;;  %v478_v14 = vld [vmem:[%s6837_s15 + $0x40] sm:$0xff]  ;;  %v6138_v15 = vld [vmem:[#allocation5 + $0x78] sm:$0xff]  }
 0x124   : > { %vm446_vm11 = vcmp.lt.s32.totalorder %v422_v17, 256  ;;  %vm447_vm12 = vcmp.lt.s32.totalorder %v423_v19, 256  ;;  %vm436_vm13 = vcmp.ge.s32.totalorder %v424_v20, 0  ;;  %vm7118_vm14 = vmand %vm431_vm2, %vm443_vm5  ;;  %v7126_v29 = vsel %vm7111_vm9, %v470_v24, 0.0  ;;  %5366 = vmatpush3.bf16.msra.mxu0 %v6133_v18  ;;  %s8404_s25 = sand.u32 1, %s8400_s27  }
 0x125   : > { %vm448_vm0 = vcmp.lt.s32.totalorder %v424_v20, 256  ;;  %vm7130_vm10 = vmand %vm432_vm3, %vm444_vm6  ;;  %v7136_v31 = vsel %vm7118_vm14, %v471_v25, 0.0  ;;  %vm518_vm2 = vcmp.ge.f32.partialorder %v7126_v29, 0.0  ;;  %v530_v32 = vmul.f32 0.1, %v7126_v29  ;;  %5367 = vmatprep.subr.bf16.mxu0 %v6134_v22  ;;  %v479_v25 = vld [vmem:[%s6837_s15 + $0x48] sm:$0xff] }
 0x126   : > { %vm7142_vm5 = vmand %vm433_vm4, %vm445_vm7  ;;  %v7148_v34 = vsel %vm7130_vm10, %v472_v27, 0.0  ;;  %vm519_vm3 = vcmp.ge.f32.partialorder %v7136_v31, 0.0  ;;  %v531_v35 = vmul.f32 0.1, %v7136_v31  ;;  %vm8298_vm15 = vcmp.ge.s32.totalorder %v423_v19, 0  ;;  %s8128_s8 = scalar_lea.sflag [#allocation7], %s8404_s25 }
 0x127   : > { %v7154_v37 = vsel %vm7142_vm5, %v473_v28, 0.0  ;;  %vm520_vm4 = vcmp.ge.f32.partialorder %v7148_v34, 0.0  ;;  %v532_v38 = vmul.f32 0.1, %v7148_v34  ;;  %v542_v39 = vsel %vm518_vm2, %v7126_v29, %v530_v32  ;;  %vm7161_vm6 = vmand %vm434_vm8, %vm446_vm11  ;;  %s8403_s10 = smov %s8402_s19  ;;  %s8123_s20 = scalar_lea.hbm %s8402_s19, %s5098_s18 }
 0x128   : > { %vm521_vm7 = vcmp.ge.f32.partialorder %v7154_v37, 0.0  ;;  %v533_v42 = vmul.f32 0.1, %v7154_v37  ;;  %v543_v43 = vsel %vm519_vm3, %v7136_v31, %v531_v35  ;;  %vm7171_vm1 = vmand %vm8298_vm15, %vm447_vm12  ;;  %v7178_v46 = vsel %vm7161_vm6, %v474_v41, 0.0  ;;  %5368 = vmatpush3.bf16.msra.mxu0 %v6134_v22  ;;  %p8405_p2 = scmp.ne.s32.totalorder %s8401_s5, 0 }
 0x129   : > { %v8300_v44 = vsel %vm7171_vm1, 4294967295, %v8299_v44  ;;  %v544_v47 = vsel %vm520_vm4, %v7148_v34, %v532_v38  ;;  %v554_v48 = vpack.c.bf16 %v543_v43, %v542_v39  ;;  %v7183_v49 = vsel %vm7171_vm1, %v475_v45, 0.0  ;;  %vm7192_vm12 = vmand %vm436_vm13, %vm448_vm0  ;;  %5369 = vmatprep.subr.bf16.mxu0 %v6135_v36  ;;  %v480_v38 = vld [vmem:[%s6837_s15 + $0x50] sm:$0xff] }
 0x12a   : > { %vm522_vm8 = vcmp.ge.f32.partialorder %v7178_v46, 0.0  ;;  %v545_v51 = vsel %vm521_vm7, %v7154_v37, %v533_v42  ;;  %vm523_vm11 = vcmp.ge.f32.partialorder %v7183_v49, 0.0  ;;  %v534_v52 = vmul.f32 0.1, %v7178_v46  ;;  %p6513_p0 = pnand %p6512_p10, %p8405_p2 }
 0x12b   : > { %v535_v53 = vmul.f32 0.1, %v7183_v49  ;;  %v555_v55 = vpack.c.bf16 %v545_v51, %v544_v47  ;;  %vm8226_vm15 = vcmask 1043456   ;;  %v567_v56 = vrot.slane %v554_v48, 4 }
 0x12c   : > { %vm8303_vm2 = vcmp.lt.s32.totalorder %v425_v21, 256  ;;  %vm8304_vm3 = vcmp.ge.s32.totalorder %v425_v21, 0  ;;  %v546_v58 = vsel %vm522_vm8, %v7178_v46, %v534_v52  ;;  %v413_v61 = vadd.s32 64, %v7088_v2  ;;  %5370 = vmatpush3.bf16.msra.mxu0 %v6135_v36  ;;  %p6514_p5 = pneg %p6513_p0 }
 0x12d   : > { %vm7198_vm4 = vmand %vm8304_vm3, %vm8303_vm2  ;;  %v547_v59 = vsel %vm523_vm11, %v7183_v49, %v535_v53  ;;  %v568_v62 = vrot.slane %v555_v55, 4  ;;  %585 = vst [vmem:[#allocation3] sm:$0xf0] %v567_v56  ;;  %v7209_v1 = vsel %vm7192_vm12, %v476_v60, 0.0  ;;  %5371 = vmatprep.subr.bf16.mxu0 %v6136_v50  ;;  %v414_v13 = vadd.s32 72, %v7088_v2 }
 0x12e   : > { %v556_v63 = vpack.c.bf16 %v547_v59, %v546_v58  ;;  %v7213_v4 = vsel %vm7198_vm4, %v477_v0, 0.0  ;;  %vm524_vm13 = vcmp.ge.f32.partialorder %v7209_v1, 0.0  ;;  %v536_v5 = vmul.f32 0.1, %v7209_v1 }
 0x12f   : > { %v426_v6 = vadd.s32 %v7091_v3, %v413_v61  ;;  %v7219_v8 = vsel %vm8226_vm15, %v567_v56, %v568_v62  ;;  %vm525_vm0 = vcmp.ge.f32.partialorder %v7213_v4, 0.0  ;;  %v537_v10 = vmul.f32 0.1, %v7213_v4 }
 0x130   : > { %v570_v9 = vrot.slane %v556_v63, 4  ;;  %v641_v11 = vrot.slane %v7219_v8, 4  ;;  %v548_v12 = vsel %vm524_vm13, %v7209_v1, %v536_v5  ;;  %v415_v18 = vadd.s32 80, %v7088_v2  ;;  %5372 = vmatpush3.bf16.msra.mxu0 %v6136_v50  ;;  %v481_v50 = vld [vmem:[%s6837_s15 + $0x58] sm:$0xff]  ;;  %s6515_s15 = sshll.u32 %s6633_s28, 4  ;;  %s6516_s15 = int_to_ptr.vmem [resolvable:$false] %s6515_s15 }
 0x131   : > { %vm438_vm7 = vcmp.ge.s32.totalorder %v426_v6, 0  ;;  %v549_v17 = vsel %vm525_vm0, %v7213_v4, %v537_v10  ;;  %vm450_vm8 = vcmp.lt.s32.totalorder %v426_v6, 256  ;;  %v427_v21 = vadd.s32 %v7091_v3, %v414_v13  ;;  %5373 = vmatprep.subr.bf16.mxu0 %v6137_v7  ;;  %s6517_s12 = scalar_lea.vmem %s6516_s15, 2048  ;;  %p6518_p11 = scmp.lt.s32.totalorder %s8116_s4, %s6516_s15 }
 0x132   : > { %v7228_v16 = vsel %vm8226_vm15, %v568_v62, %v570_v9  ;;  %v557_v20 = vpack.c.bf16 %v549_v17, %v548_v12  ;;  %vm7234_vm11 = vmand %vm438_vm7, %vm450_vm8  ;;  %v8307_v22 = vmov 0  ;;  %v416_v24 = vadd.s32 88, %v7088_v2  ;;  %v6139_v2 = vld [vmem:[#allocation5] sm:$0xff]   ;;  %v6140_v62 = vld [vmem:[#allocation5 + $0x8] sm:$0xff]   ;;  %p6519_p9 = scmp.lt.s32.totalorder %s6517_s12, %s6511_s17 }
 0x133   : > { %v643_v19 = vrot.slane %v7228_v16, 4  ;;  %v8308_v22 = vsel %vm7234_vm11, 4294967295, %v8307_v22  ;;  %v7242_v27 = vsel %vm7234_vm11, %v478_v14, 0.0  ;;  %v428_v28 = vadd.s32 %v7091_v3, %v415_v18  ;;  %v6141_v14 = vld [vmem:[#allocation5 + $0x10] sm:$0xff]  }
 0x134   : > { %v7245_v32 = vld [vmem:[#allocation3] sm:$0xf0]  ;;  %v572_v36 = vrot.slane %v557_v20, 4  ;;  %vm439_vm2 = vcmp.ge.s32.totalorder %v427_v21, 0  ;;  %vm451_vm3 = vcmp.lt.s32.totalorder %v427_v21, 256  ;;  %v8309_v41 = vmov 0  ;;  %5374 = vmatpush3.bf16.msra.mxu0 %v6137_v7  ;;  %p6520_p12 = por %p6519_p9, %p6518_p11 }
 0x135   : > { %v644_v35 = vsel %vm8226_vm15, %v641_v11, %v643_v19  ;;  %v640_v39 = vrot.slane %v7245_v32, 4  ;;  %vm7250_vm13 = vmand %vm439_vm2, %vm451_vm3  ;;  %vm526_vm0 = vcmp.ge.f32.partialorder %v7242_v27, 0.0  ;;  %v538_v42 = vmul.f32 0.1, %v7242_v27  ;;  %v592_v45 = vld [vmem:[#allocation3] sm:$0xf8]  ;;  %5375 = vmatprep.subr.bf16.mxu0 %v6138_v15 }
 0x136   : > { %v8310_v41 = vsel %vm7250_vm13, 4294967295, %v8309_v41  ;;  %v429_v43 = vadd.s32 %v7091_v3, %v416_v24  ;;  %v7258_v47 = vsel %vm8226_vm15, %v570_v9, %v572_v36  ;;  %v7262_v48 = vsel %vm7250_vm13, %v479_v25, 0.0  ;;  %p6521_p6 = pnand %p6520_p12, %p6514_p5 }
 0x137   : > { %8311 = vst [vmem:[#allocation42_spill] sm:$0xff] %v7262_v48  ;;  %vm440_vm7 = vcmp.ge.s32.totalorder %v428_v28, 0  ;;  %vm452_vm8 = vcmp.lt.s32.totalorder %v428_v28, 256  ;;  %v642_v51 = vsel %vm8226_vm15, %v640_v39, %v641_v11  ;;  %v645_v52 = vrot.slane %v7258_v47, 4 }
 0x138   : > { %vm527_vm2 = vcmp.ge.f32.partialorder %v7262_v48, 0.0  ;;  %v539_v3 = vmul.f32 0.1, %v7262_v48  ;;  %vm7269_vm3 = vmand %vm440_vm7, %vm452_vm8  ;;  %v8312_v53 = vmov 0  ;;  %5377 = vmatprep.mubr.bf16.mxu0 %v642_v51  ;;  %v550_v55 = vsel %vm526_vm0, %v7242_v27, %v538_v42  ;;  %5376 = vmatpush3.bf16.msra.mxu0 %v6138_v15 }
 0x139   : > { %v8313_v53 = vsel %vm7269_vm3, 4294967295, %v8312_v53  ;;  %vm441_vm13 = vcmp.ge.s32.totalorder %v429_v43, 0  ;;  %vm453_vm11 = vcmp.lt.s32.totalorder %v429_v43, 256  ;;  %v7278_v56 = vsel %vm7269_vm3, %v480_v38, 0.0  ;;  %5389 = vmatprep.subr.bf16.mxu0 %v6139_v2  ;;  %v6142_v43 = vld [vmem:[#allocation5 + $0x18] sm:$0xff]  }
 0x13a   : > { %v646_v58 = vsel %vm8226_vm15, %v643_v19, %v645_v52  ;;  %v551_v59 = vsel %vm527_vm2, %v7262_v48, %v539_v3  ;;  %vm7282_vm1 = vmand %vm441_vm13, %vm453_vm11  ;;  %v8314_v60 = vmov 0  ;;  %vm528_vm7 = vcmp.ge.f32.partialorder %v7278_v56, 0.0 }
 0x13b   : > { %v8315_v60 = vsel %vm7282_vm1, 4294967295, %v8314_v60  ;;  %v540_v61 = vmul.f32 0.1, %v7278_v56  ;;  %v558_v63 = vpack.c.bf16 %v551_v59, %v550_v55  ;;  %v7290_v0 = vsel %vm7282_vm1, %v481_v50, 0.0  ;;  %5378 = vmatmul.mubr.bf16.vlgmr.msra.gmra.mrb[0].mxu0 %v644_v35 }
 0x13c   : > { %v790_v5 = vshrl.u32 %v592_v45, 16  ;;  %v793_v6 = vshll.u32 %v592_v45, 16  ;;  %vm529_vm0 = vcmp.ge.f32.partialorder %v7290_v0, 0.0  ;;  %v541_v7 = vmul.f32 0.1, %v7290_v0  ;;  %5390 = vmatpush3.bf16.msra.mxu0 %v6139_v2  ;;  %5381 = vmatprep.mubr.bf16.mxu0 %v646_v58  ;;  %v6143_v58 = vld [vmem:[#allocation5 + $0x20] sm:$0xff]  }
 0x13d   : > { %v552_v9 = vsel %vm528_vm7, %v7278_v56, %v540_v61  ;;  %v798_v10 = vshrl.u32 %v7219_v8, 16  ;;  %v574_v11 = vrot.slane %v558_v63, 4  ;;  %v801_v12 = vshll.u32 %v7219_v8, 16  ;;  %5391 = vmatprep.subr.bf16.mxu0 %v6140_v62 }
 0x13e   : > { %v553_v13 = vsel %vm529_vm0, %v7290_v0, %v541_v7  ;;  %v792_v19 = vrot.slane %v790_v5, 3  ;;  %v795_v20 = vrot.slane %v793_v6, 4  ;;  %vm8225_vm11 = vsmask.f32 4352 }
 0x13f   : > { %v575_v15 = vsel %vm8226_vm15, %v572_v36, %v574_v11  ;;  %v559_v17 = vpack.c.bf16 %v553_v13, %v552_v9  ;;  %v800_v21 = vrot.slane %v798_v10, 3  ;;  %v803_v25 = vrot.slane %v801_v12, 4 }
 0x140   : > { %v647_v18 = vrot.slane %v575_v15, 4  ;;  %v807_v28 = vshrl.u32 %v7228_v16, 16  ;;  %v810_v8 = vshll.u32 %v7228_v16, 16  ;;  %v816_v35 = vshrl.u32 %v7258_v47, 16  ;;  %5392 = vmatpush3.bf16.msra.mxu0 %v6140_v62 }
 0x141   : > { %v576_v24 = vrot.slane %v559_v17, 4  ;;  %v819_v38 = vshll.u32 %v7258_v47, 16  ;;  %v825_v2 = vshrl.u32 %v575_v15, 16  ;;  %v828_v42 = vshll.u32 %v575_v15, 16  ;;  %5393 = vmatprep.subr.bf16.mxu0 %v6141_v14  ;;  %v6144_v17 = vld [vmem:[#allocation5 + $0x28] sm:$0xff]  }
 0x142   : > { %v648_v36 = vsel %vm8226_vm15, %v645_v52, %v647_v18  ;;  %v796_v51 = vor.u32 %v795_v20, %v792_v19  ;;  %v1006_v16 = vshrl.u32 %v7245_v32, 16  ;;  %v1009_v55 = vshll.u32 %v7245_v32, 16 }
 0x143   : > { %v577_v39 = vsel %vm8226_vm15, %v574_v11, %v576_v24  ;;  %591 = vst [vmem:[#allocation3 + $0x30] sm:$0xf] %v576_v24  ;;  %5382 = vmatmul.mubr.bf16.gmra.mrb[4].mxu0 %v648_v36  ;;  %v804_v52 = vor.u32 %v803_v25, %v800_v21  ;;  %v809_v59 = vrot.slane %v807_v28, 3  ;;  %v812_v61 = vrot.slane %v810_v8, 4 }
 0x144   : > { %v649_v45 = vrot.slane %v577_v39, 4  ;;  %v834_v50 = vshrl.u32 %v577_v39, 16  ;;  %v837_v3 = vshll.u32 %v577_v39, 16  ;;  %5394 = vmatpush3.bf16.msra.mxu0 %v6141_v14  ;;  %v818_v62 = vrot.slane %v816_v35, 3 }
 0x145   : > { %v821_v63 = vrot.slane %v819_v38, 4  ;;  %v827_v5 = vrot.slane %v825_v2, 3  ;;  %v830_v6 = vrot.slane %v828_v42, 4  ;;  %5395 = vmatprep.subr.bf16.mxu0 %v6142_v43  ;;  %v7308_v11 = vrot.slane %v1006_v16, 4 }
 0x146   : > { %v650_v47 = vsel %vm8226_vm15, %v647_v18, %v649_v45  ;;  %v836_v7 = vrot.slane %v834_v50, 3  ;;  %v839_v9 = vrot.slane %v837_v3, 4  ;;  %v7310_v13 = vrot.slane %v798_v10, 4 }
 0x147   : > { %5385 = vmatprep.mubr.bf16.mxu0 %v650_v47  ;;  %v7312_v32 = vrot.slane %v1009_v55, 5  ;;  %v7314_v15 = vrot.slane %v801_v12, 5  ;;  %v7316_v19 = vrot.slane %v807_v28, 4  ;;  %v7318_v14 = vrot.slane %v810_v8, 5  ;;  %v6145_v8 = vld [vmem:[#allocation5 + $0x30] sm:$0xff]  }
 0x148   : > { %5396 = vmatpush3.bf16.msra.mxu0 %v6142_v43  ;;  %v7320_v36 = vrot.slane %v816_v35, 4  ;;  %v805_v10 = vsel %vm8225_vm11, %v796_v51, %v804_v52  ;;  %v7324_v12 = vrot.slane %v819_v38, 5  ;;  %v7326_v16 = vrot.slane %v825_v2, 4  ;;  %v6146_v38 = vld [vmem:[#allocation5 + $0x38] sm:$0xff]   ;;  %v6147_v2 = vld [vmem:[#allocation5 + $0x80] sm:$0xff]  }
 0x149   : > { %5397 = vmatprep.subr.bf16.mxu0 %v6143_v58  ;;  %v7328_v28 = vrot.slane %v828_v42, 5  ;;  %v1030_v48 = vrot.slane %v837_v3, 5  ;;  %v813_v42 = vor.u32 %v812_v61, %v809_v59  ;;  %v6149_v3 = vld [vmem:[#allocation5 + $0x90] sm:$0xff]   ;;  %vm8224_vm13 = vsmask.f32 3328 }
 0x14a   : > { %v598_v18 = vld [vmem:[#allocation3 + $0x30] sm:$0xf] }
 0x14b   : > { %v986_v20 = vld [vmem:[#allocation3 + $0x30] sm:$0x1f]  ;;  %v651_v21 = vrot.slane %v598_v18, 4  ;;  %v843_v24 = vshrl.u32 %v598_v18, 16  ;;  %v846_v25 = vshll.u32 %v598_v18, 16  ;;  %v1029_v18 = vrot.slane %v834_v50, 4 }
 0x14c   : > { %v1034_v43 = vshrl.u32 %v986_v20, 16  ;;  %5398 = vmatpush3.bf16.msra.mxu0 %v6143_v58  ;;  %v1037_v35 = vshll.u32 %v986_v20, 16  ;;  %v814_v58 = vsel %vm8225_vm11, %v804_v52, %v813_v42  ;;  %v831_v20 = vor.u32 %v830_v6, %v827_v5  ;;  %v6151_v52 = vld [vmem:[#allocation5 + $0xa0] sm:$0xff]   ;;  %v6152_v6 = vld [vmem:[#allocation5 + $0xa8] sm:$0xff]  }
 0x14d   : > { %v652_v39 = vsel %vm8226_vm15, %v649_v45, %v651_v21  ;;  %v845_v55 = vrot.slane %v843_v24, 3  ;;  %v848_v47 = vrot.slane %v846_v25, 4  ;;  %5399 = vmatprep.subr.bf16.mxu0 %v6144_v17  ;;  %v822_v21 = vor.u32 %v821_v63, %v818_v62  ;;  %v6148_v24 = vld [vmem:[#allocation5 + $0x88] sm:$0xff]   ;;  %v6150_v25 = vld [vmem:[#allocation5 + $0x98] sm:$0xff]  }
 0x14e   : > { %5386 = vmatmul.mubr.bf16.gmra.mrb[8].mxu0 %v652_v39  ;;  %v7330_v51 = vrot.slane %v1034_v43, 4  ;;  %v7332_v45 = vrot.slane %v1037_v35, 5  ;;  %v1012_v63 = vor.u32 %v7312_v32, %v7308_v11  ;;  %v1015_v5 = vor.u32 %v7314_v15, %v7310_v13  ;;  %v6154_v39 = vld [vmem:[#allocation5 + $0xb8] sm:$0xff]   ;;  %v6160_v35 = vld [vmem:[#allocation8 + $0x68] sm:$0xff]  }
 0x14f   : > { %5405 = vmatprep.mubr.bf16.mxu0 %v805_v10  ;;  %v823_v50 = vsel %vm8225_vm11, %v813_v42, %v822_v21  ;;  %v832_v59 = vsel %vm8225_vm11, %v822_v21, %v831_v20  ;;  %v849_v62 = vor.u32 %v848_v47, %v845_v55  ;;  %v6153_v10 = vld [vmem:[#allocation5 + $0xb0] sm:$0xff]   ;;  %v1019_v11 = vor.u32 %v7318_v14, %v7316_v19 }
 0x150   : > { %5400 = vmatpush3.bf16.msra.mxu0 %v6144_v17  ;;  %v840_v17 = vor.u32 %v839_v9, %v836_v7  ;;  %v1016_v9 = vsel %vm8224_vm13, %v1012_v63, %v1015_v5  ;;  %v1023_v13 = vor.u32 %v7324_v12, %v7320_v36  ;;  %v1031_v55 = vor.u32 %v1030_v48, %v1029_v18  ;;  %v6155_v36 = vld [vmem:[#allocation8 + $0x40] sm:$0xff]   ;;  %v6156_v12 = vld [vmem:[#allocation8 + $0x48] sm:$0xff]   ;;  %v6158_v48 = vld [vmem:[#allocation8 + $0x58] sm:$0xff]  }
 0x151   : > { %5401 = vmatprep.subr.bf16.mxu0 %v6145_v8  ;;  %v1020_v32 = vsel %vm8224_vm13, %v1015_v5, %v1019_v11  ;;  %v1040_v19 = vor.u32 %v7332_v45, %v7330_v51  ;;  %5445 = vmatprep.subr.bf16.mxu1 %v6155_v36  ;;  %v6161_v18 = vld [vmem:[#allocation8 + $0x70] sm:$0xff]   ;;  %v6162_v51 = vld [vmem:[#allocation8 + $0x78] sm:$0xff]   ;;  %v7357_v45 = vld [vmem:[#allocation8] sm:$0xff]  }
 0x152   : > { %v841_v61 = vsel %vm8225_vm11, %v831_v20, %v840_v17  ;;  %v850_v7 = vsel %vm8225_vm11, %v840_v17, %v849_v62  ;;  %v1024_v15 = vsel %vm8224_vm13, %v1019_v11, %v1023_v13  ;;  %5446 = vmatpush3.bf16.msra.mxu1 %v6155_v36  ;;  %vm8318_vm11 = vnez %v8310_v41 }
 0x153   : > { %v1041_v14 = vsel %vm8224_vm13, %v1031_v55, %v1040_v19  ;;  %5447 = vmatprep.subr.bf16.mxu1 %v6156_v12 }
 0x154   : > { %5402 = vmatpush3.bf16.msra.mxu0 %v6145_v8  ;;  %v1027_v8 = vor.u32 %v7328_v28, %v7326_v16  ;;  %v6157_v16 = vld [vmem:[#allocation8 + $0x50] sm:$0xff]   ;;  %v6159_v28 = vld [vmem:[#allocation8 + $0x60] sm:$0xff]  }
 0x155   : > { %5403 = vmatprep.subr.bf16.mxu0 %v6146_v38 }
 0x156   : > { %v1028_v43 = vsel %vm8224_vm13, %v1023_v13, %v1027_v8  ;;  %v1032_v47 = vsel %vm8224_vm13, %v1027_v8, %v1031_v55  ;;  %5448 = vmatpush3.bf16.msra.mxu1 %v6156_v12 }
 0x157   : > { %5449 = vmatprep.subr.bf16.mxu1 %v6157_v16 }
 0x158   : > { %5404 = vmatpush3.bf16.msra.mxu0 %v6146_v38  ;;  %v7363_v38 = vld [vmem:[%s8182_s2] ss:$0 sm:$0xff] }
 0x159   : > { %5417 = vmatprep.subr.bf16.mxu0 %v6147_v2 }
 0x15a   : > { %5450 = vmatpush3.bf16.msra.mxu1 %v6157_v16 }
 0x15b   : > { %5406 = vmatmul.mubr.bf16.vlgmr.msra.gmra.mrb[0].mxu0 %v814_v58  ;;  %5451 = vmatprep.subr.bf16.mxu1 %v6158_v48 }
 0x15c   : > { %5418 = vmatpush3.bf16.msra.mxu0 %v6147_v2  ;;  %5409 = vmatprep.mubr.bf16.mxu0 %v823_v50 }
 0x15d   : > { %5419 = vmatprep.subr.bf16.mxu0 %v6148_v24 }
 0x15e   : > { %5452 = vmatpush3.bf16.msra.mxu1 %v6158_v48 }
 0x15f   : > { %5453 = vmatprep.subr.bf16.mxu1 %v6159_v28 }
 0x160   : > { %5420 = vmatpush3.bf16.msra.mxu0 %v6148_v24 }
 0x161   : > { %5421 = vmatprep.subr.bf16.mxu0 %v6149_v3 }
 0x162   : > { %5454 = vmatpush3.bf16.msra.mxu1 %v6159_v28 }
 0x163   : > { %5410 = vmatmul.mubr.bf16.gmra.mrb[4].mxu0 %v832_v59  ;;  %5455 = vmatprep.subr.bf16.mxu1 %v6160_v35 }
 0x164   : > { %5422 = vmatpush3.bf16.msra.mxu0 %v6149_v3  ;;  %5413 = vmatprep.mubr.bf16.mxu0 %v841_v61 }
 0x165   : > { %5423 = vmatprep.subr.bf16.mxu0 %v6150_v25 }
 0x166   : > { %5456 = vmatpush3.bf16.msra.mxu1 %v6160_v35 }
 0x167   : > { %5457 = vmatprep.subr.bf16.mxu1 %v6161_v18 }
 0x168   : > { %5424 = vmatpush3.bf16.msra.mxu0 %v6150_v25 }
 0x169   : > { %5425 = vmatprep.subr.bf16.mxu0 %v6151_v52 }
 0x16a   : > { %5458 = vmatpush3.bf16.msra.mxu1 %v6161_v18 }
 0x16b   : > { %5414 = vmatmul.mubr.bf16.gmra.mrb[8].mxu0 %v850_v7  ;;  %5459 = vmatprep.subr.bf16.mxu1 %v6162_v51 }
 0x16c   : > { %5426 = vmatpush3.bf16.msra.mxu0 %v6151_v52  ;;  %5433 = vmatprep.mubr.bf16.mxu0 %v1016_v9 }
 0x16d   : > { %5427 = vmatprep.subr.bf16.mxu0 %v6152_v6 }
 0x16e   : > { %5460 = vmatpush3.bf16.msra.mxu1 %v6162_v51 }
 0x16f   : > { %5473 = vmatprep.subr.bf16.mxu1 %v7357_v45 }
 0x170   : > { %5428 = vmatpush3.bf16.msra.mxu0 %v6152_v6 }
 0x171   : > { %5429 = vmatprep.subr.bf16.mxu0 %v6153_v10 }
 0x174   : > { %5430 = vmatpush3.bf16.msra.mxu0 %v6153_v10 }
 0x175   : > { %5431 = vmatprep.subr.bf16.mxu0 %v6154_v39 }
 0x178   : > { %5432 = vmatpush3.bf16.msra.mxu0 %v6154_v39 }
 0x17b   : > { %5434 = vmatmul.mubr.bf16.vlgmr.msra.gmra.mrb[0].mxu0 %v1020_v32 }
 0x17c   : > { %5437 = vmatprep.mubr.bf16.mxu0 %v1024_v15 }
 0x183   : > { %5438 = vmatmul.mubr.bf16.gmra.mrb[4].mxu0 %v1028_v43 }
 0x184   : > { %5441 = vmatprep.mubr.bf16.mxu0 %v1032_v47 }
 0x18b   : > { %5442 = vmatmul.mubr.bf16.gmra.mrb[8].mxu0 %v1041_v14 }
 0x24e   : > { %v5435_v2 = vpop.f32.mrb[0].mxu0 }
 0x24f   : > { %v1198_v42 = vadd.f32 %v5435_v2, %v7363_v38  ;;  %v1130_v21 = vpop.f32.mrb[1].mxu0 }
 0x250   : > { %v1196_v24 = vadd.f32 %v7363_v38, %v1130_v21  ;;  %v5436_v58 = vpop.f32.mrb[2].mxu0 }
 0x251   : > { %v1210_v50 = vsel %vm7130_vm10, %v1198_v42, 0.0  ;;  %v1199_v3 = vadd.f32 %v5436_v58, %v7363_v38  ;;  %v1133_v20 = vpop.f32.mrb[3].mxu0 }
 0x252   : > { %v1234_v17 = vmul.f32 0.1, %v1210_v50  ;;  %v1208_v25 = vsel %vm7111_vm9, %v1196_v24, 0.0  ;;  %v1197_v59 = vadd.f32 %v7363_v38, %v1133_v20  ;;  %vm1222_vm8 = vcmp.ge.f32.partialorder %v1210_v50, 0.0 }
 0x253   : > { %v1232_v61 = vmul.f32 0.1, %v1208_v25  ;;  %v1211_v52 = vsel %vm7142_vm5, %v1199_v3, 0.0  ;;  %vm1220_vm2 = vcmp.ge.f32.partialorder %v1208_v25, 0.0 }
 0x254   : > { %vm1223_vm7 = vcmp.ge.f32.partialorder %v1211_v52, 0.0  ;;  %v1235_v62 = vmul.f32 0.1, %v1211_v52  ;;  %v1209_v63 = vsel %vm7118_vm14, %v1197_v59, 0.0  ;;  %v1246_v6 = vsel %vm1222_vm8, %v1210_v50, %v1234_v17 }
 0x255   : > { %vm1221_vm0 = vcmp.ge.f32.partialorder %v1209_v63, 0.0  ;;  %v1233_v5 = vmul.f32 0.1, %v1209_v63  ;;  %v1244_v10 = vsel %vm1220_vm2, %v1208_v25, %v1232_v61 }
 0x256   : > { %v1247_v7 = vsel %vm1223_vm7, %v1211_v52, %v1235_v62  ;;  %v5439_v9 = vpop.f32.mrb[4].mxu0 }
 0x257   : > { %v1257_v39 = vpack.c.bf16 %v1247_v7, %v1246_v6  ;;  %v1245_v11 = vsel %vm1221_vm0, %v1209_v63, %v1233_v5  ;;  %v1202_v13 = vadd.f32 %v5439_v9, %v7363_v38  ;;  %v1146_v32 = vpop.f32.mrb[5].mxu0  ;;  %vm8316_vm0 = vnez %v8300_v44 }
 0x258   : > { %v1256_v15 = vpack.c.bf16 %v1245_v11, %v1244_v10  ;;  %v1200_v8 = vadd.f32 %v7363_v38, %v1146_v32  ;;  %v5440_v55 = vpop.f32.mrb[6].mxu0 }
 0x259   : > { %v1269_v43 = vrot.slane %v1257_v39, 4  ;;  %v1214_v47 = vsel %vm7192_vm12, %v1202_v13, 0.0  ;;  %v1203_v19 = vadd.f32 %v5440_v55, %v7363_v38  ;;  %v1149_v14 = vpop.f32.mrb[7].mxu0 }
 0x25a   : > { %v1268_v36 = vrot.slane %v1256_v15, 4  ;;  %v1238_v12 = vmul.f32 0.1, %v1214_v47  ;;  %v1212_v16 = vsel %vm7161_vm6, %v1200_v8, 0.0  ;;  %vm1226_vm8 = vcmp.ge.f32.partialorder %v1214_v47, 0.0 }
 0x25b   : > { %v1236_v48 = vmul.f32 0.1, %v1212_v16  ;;  %v1215_v28 = vsel %vm7198_vm4, %v1203_v19, 0.0  ;;  %v1201_v35 = vadd.f32 %v7363_v38, %v1149_v14  ;;  %vm1224_vm2 = vcmp.ge.f32.partialorder %v1212_v16, 0.0 }
 0x25c   : > { %v7388_v18 = vsel %vm8226_vm15, %v1268_v36, %v1269_v43  ;;  %1286 = vst [vmem:[#allocation3] sm:$0xf0] %v1268_v36  ;;  %vm1227_vm7 = vcmp.ge.f32.partialorder %v1215_v28, 0.0  ;;  %v1239_v51 = vmul.f32 0.1, %v1215_v28  ;;  %v1250_v42 = vsel %vm1226_vm8, %v1214_v47, %v1238_v12 }
 0x25d   : > { %v1213_v2 = vsel %vm8316_vm0, %v1201_v35, 0.0  ;;  %v1248_v50 = vsel %vm1224_vm2, %v1212_v16, %v1236_v48  ;;  %v1342_v25 = vrot.slane %v7388_v18, 4  ;;  %v1498_v62 = vshrl.u32 %v7388_v18, 16 }
 0x25e   : > { %v1251_v21 = vsel %vm1227_vm7, %v1215_v28, %v1239_v51  ;;  %vm1225_vm13 = vcmp.ge.f32.partialorder %v1213_v2, 0.0  ;;  %v1237_v24 = vmul.f32 0.1, %v1213_v2  ;;  %v5443_v58 = vpop.f32.mrb[8].mxu0  ;;  %v1501_v63 = vshll.u32 %v7388_v18, 16 }
 0x25f   : > { %v1259_v3 = vpack.c.bf16 %v1251_v21, %v1250_v42  ;;  %v1206_v20 = vadd.f32 %v5443_v58, %v7363_v38  ;;  %v1162_v17 = vpop.f32.mrb[9].mxu0  ;;  %vm8317_vm2 = vnez %v8308_v22  ;;  %v1500_v42 = vrot.slane %v1498_v62, 3 }
 0x260   : > { %v1249_v59 = vsel %vm1225_vm13, %v1213_v2, %v1237_v24  ;;  %v1204_v61 = vadd.f32 %v7363_v38, %v1162_v17  ;;  %v5444_v52 = vpop.f32.mrb[10].mxu0 }
 0x261   : > { %v1273_v5 = vrot.slane %v1259_v3, 4  ;;  %v1258_v6 = vpack.c.bf16 %v1249_v59, %v1248_v50  ;;  %v1218_v7 = vsel %vm7269_vm3, %v1206_v20, 0.0  ;;  %v1207_v9 = vadd.f32 %v5444_v52, %v7363_v38  ;;  %v1165_v10 = vpop.f32.mrb[11].mxu0  ;;  %v6164_v3 = vld [vmem:[#allocation8 + $0x8] sm:$0xff]  }
 0x262   : > { %vm1230_vm8 = vcmp.ge.f32.partialorder %v1218_v7, 0.0  ;;  %v1242_v39 = vmul.f32 0.1, %v1218_v7  ;;  %v1216_v11 = vsel %vm8317_vm2, %v1204_v61, 0.0  ;;  %v1205_v13 = vadd.f32 %v7363_v38, %v1165_v10 }
 0x263   : > { %v1271_v32 = vrot.slane %v1258_v6, 4  ;;  %vm1228_vm13 = vcmp.ge.f32.partialorder %v1216_v11, 0.0  ;;  %v1240_v15 = vmul.f32 0.1, %v1216_v11  ;;  %v1219_v8 = vsel %vm7282_vm1, %v1207_v9, 0.0 }
 0x264   : > { %vm1231_vm7 = vcmp.ge.f32.partialorder %v1219_v8, 0.0  ;;  %v1243_v55 = vmul.f32 0.1, %v1219_v8  ;;  %v1217_v47 = vsel %vm8318_vm11, %v1205_v13, 0.0  ;;  %v7407_v19 = vld [vmem:[#allocation3] sm:$0xf0]  ;;  %v1254_v38 = vsel %vm1230_vm8, %v1218_v7, %v1242_v39 }
 0x265   : > { %v7410_v14 = vsel %vm8226_vm15, %v1269_v43, %v1271_v32  ;;  %v7413_v36 = vsel %vm8226_vm15, %v1271_v32, %v1273_v5  ;;  %vm1229_vm2 = vcmp.ge.f32.partialorder %v1217_v47, 0.0  ;;  %v1241_v16 = vmul.f32 0.1, %v1217_v47  ;;  %v1293_v35 = vld [vmem:[#allocation3] sm:$0xf8]  ;;  %v6165_v39 = vld [vmem:[#allocation8 + $0x10] sm:$0xff]  }
 0x266   : > { %v1255_v12 = vsel %vm1231_vm7, %v1219_v8, %v1243_v55  ;;  %v1341_v48 = vrot.slane %v7407_v19, 4  ;;  %v1344_v28 = vrot.slane %v7410_v14, 4  ;;  %v1346_v2 = vrot.slane %v7413_v36, 4 }
 0x267   : > { %v1261_v51 = vpack.c.bf16 %v1255_v12, %v1254_v38  ;;  %v1503_v43 = vrot.slane %v1501_v63, 4  ;;  %v1252_v21 = vsel %vm1228_vm13, %v1216_v11, %v1240_v15  ;;  %v1253_v24 = vsel %vm1229_vm2, %v1217_v47, %v1241_v16 }
 0x268   : > { %v1343_v58 = vsel %vm8226_vm15, %v1341_v48, %v1342_v25  ;;  %v1345_v50 = vsel %vm8226_vm15, %v1342_v25, %v1344_v28  ;;  %v1260_v17 = vpack.c.bf16 %v1253_v24, %v1252_v21  ;;  %v1347_v59 = vsel %vm8226_vm15, %v1344_v28, %v1346_v2 }
 0x269   : > { %v1277_v20 = vrot.slane %v1261_v51, 4  ;;  %5461 = vmatprep.mubr.bf16.mxu1 %v1343_v58  ;;  %v1490_v61 = vshrl.u32 %v1293_v35, 16  ;;  %v1493_v52 = vshll.u32 %v1293_v35, 16  ;;  %v1507_v6 = vshrl.u32 %v7410_v14, 16 }
 0x26a   : > { %5462 = vmatmul.mubr.bf16.vlgmr.msra.gmra.mrb[0].mxu1 %v1345_v50  ;;  %v1510_v7 = vshll.u32 %v7410_v14, 16  ;;  %v1516_v9 = vshrl.u32 %v7413_v36, 16  ;;  %v1275_v10 = vrot.slane %v1260_v17, 4  ;;  %v1519_v25 = vshll.u32 %v7413_v36, 16 }
 0x26b   : > { %1292 = vst [vmem:[#allocation3 + $0x30] sm:$0xf] %v1277_v20  ;;  %5474 = vmatpush3.bf16.msra.mxu1 %v7357_v45  ;;  %5465 = vmatprep.mubr.bf16.mxu1 %v1347_v59  ;;  %v1504_v11 = vor.u32 %v1503_v43, %v1500_v42  ;;  %v1509_v13 = vrot.slane %v1507_v6, 3  ;;  %v1492_v47 = vrot.slane %v1490_v61, 3  ;;  %v1495_v16 = vrot.slane %v1493_v52, 4  ;;  %v6166_v43 = vld [vmem:[#allocation8 + $0x18] sm:$0xff]  }
 0x26c   : > { %5475 = vmatprep.subr.bf16.mxu1 %v6164_v3  ;;  %v1512_v32 = vrot.slane %v1510_v7, 4  ;;  %v1518_v15 = vrot.slane %v1516_v9, 3  ;;  %v1276_v8 = vsel %vm8226_vm15, %v1273_v5, %v1275_v10  ;;  %v1278_v55 = vsel %vm8226_vm15, %v1275_v10, %v1277_v20  ;;  %v6167_v10 = vld [vmem:[#allocation8 + $0x20] sm:$0xff]  }
 0x26d   : > { %v1521_v14 = vrot.slane %v1519_v25, 4  ;;  %v1348_v38 = vrot.slane %v1276_v8, 4  ;;  %v1350_v12 = vrot.slane %v1278_v55, 4  ;;  %v1525_v28 = vshrl.u32 %v1276_v8, 16 }
 0x26e   : > { %v1513_v48 = vor.u32 %v1512_v32, %v1509_v13  ;;  %v1528_v36 = vshll.u32 %v1276_v8, 16  ;;  %v1534_v35 = vshrl.u32 %v1278_v55, 16  ;;  %vm8319_vm8 = vsmask.f32 4352 }
 0x26f   : > { %5476 = vmatpush3.bf16.msra.mxu1 %v6164_v3  ;;  %v1522_v45 = vor.u32 %v1521_v14, %v1518_v15  ;;  %v1349_v51 = vsel %vm8226_vm15, %v1346_v2, %v1348_v38  ;;  %v1351_v42 = vsel %vm8226_vm15, %v1348_v38, %v1350_v12  ;;  %v1537_v21 = vshll.u32 %v1278_v55, 16  ;;  %vm8320_vm2 = vmmov %vm8319_vm8 }
 0x270   : > { %5477 = vmatprep.subr.bf16.mxu1 %v6165_v39  ;;  %v1514_v5 = vsel %vm8319_vm8, %v1504_v11, %v1513_v48  ;;  %v1527_v58 = vrot.slane %v1525_v28, 3  ;;  %v1530_v50 = vrot.slane %v1528_v36, 4  ;;  %v1536_v20 = vrot.slane %v1534_v35, 3  ;;  %vm8321_vm13 = vmmov %vm8320_vm2 }
 0x271   : > { %v1523_v24 = vsel %vm8320_vm2, %v1513_v48, %v1522_v45  ;;  %v1539_v17 = vrot.slane %v1537_v21, 4  ;;  %v1712_v59 = vrot.slane %v1498_v62, 4  ;;  %v1713_v2 = vrot.slane %v1501_v63, 5  ;;  %vm8322_vm7 = vmmov %vm8320_vm2 }
 0x272   : > { %5466 = vmatmul.mubr.bf16.gmra.mrb[4].mxu1 %v1349_v51  ;;  %v7437_v3 = vld [vmem:[#allocation3 + $0x30] sm:$0xf]  ;;  %v1716_v61 = vrot.slane %v1507_v6, 4  ;;  %v1531_v52 = vor.u32 %v1530_v50, %v1527_v58  ;;  %v1717_v32 = vrot.slane %v1510_v7, 5  ;;  %v1720_v15 = vrot.slane %v1516_v9, 4  ;;  %v6168_v51 = vld [vmem:[#allocation8 + $0x28] sm:$0xff]  }
 0x273   : > { %5478 = vmatpush3.bf16.msra.mxu1 %v6165_v39  ;;  %5469 = vmatprep.mubr.bf16.mxu1 %v1351_v42  ;;  %v7443_v13 = vor.u32 %v1539_v17, %v1536_v20  ;;  %v1352_v8 = vrot.slane %v7437_v3, 4  ;;  %v1496_v55 = vor.u32 %v1495_v16, %v1492_v47  ;;  %v1714_v18 = vor.u32 %v1713_v2, %v1712_v59  ;;  %v6174_v2 = vld [vmem:[#allocation8 + $0x98] sm:$0xff]  }
 0x274   : > { %5479 = vmatprep.subr.bf16.mxu1 %v6166_v43  ;;  %v1532_v14 = vsel %vm8321_vm13, %v1522_v45, %v1531_v52  ;;  %v1718_v63 = vor.u32 %v1717_v32, %v1716_v61  ;;  %v1721_v6 = vrot.slane %v1519_v25, 5  ;;  %v1724_v39 = vrot.slane %v1525_v28, 4  ;;  %v6169_v28 = vld [vmem:[#allocation8 + $0x30] sm:$0xff]  }
 0x275   : > { %v1541_v62 = vsel %vm8322_vm7, %v1531_v52, %v7443_v13  ;;  %v1725_v38 = vrot.slane %v1528_v36, 5  ;;  %v1728_v48 = vrot.slane %v1534_v35, 4  ;;  %vm8323_vm8 = vsmask.f32 3328  ;;  %v6171_v35 = vld [vmem:[#allocation8 + $0x80] sm:$0xff]  }
 0x276   : > { %v1719_v7 = vsel %vm8323_vm8, %v1714_v18, %v1718_v63  ;;  %v1722_v9 = vor.u32 %v1721_v6, %v1720_v15  ;;  %v1729_v42 = vrot.slane %v1537_v21, 5  ;;  %v1353_v47 = vsel %vm8226_vm15, %v1350_v12, %v1352_v8  ;;  %vm8324_vm13 = vmmov %vm8323_vm8  ;;  %v6170_v12 = vld [vmem:[#allocation8 + $0x38] sm:$0xff]  }
 0x277   : > { %5480 = vmatpush3.bf16.msra.mxu1 %v6166_v43  ;;  %v1726_v16 = vor.u32 %v1725_v38, %v1724_v39  ;;  %v1505_v45 = vsel %vm8320_vm2, %v1496_v55, %v1504_v11  ;;  %vm8325_vm7 = vmmov %vm8323_vm8  ;;  %v6172_v11 = vld [vmem:[#allocation8 + $0x88] sm:$0xff]   ;;  %v6173_v43 = vld [vmem:[#allocation8 + $0x90] sm:$0xff]   ;;  %v1543_v21 = vshrl.u32 %v7437_v3, 16  ;;  %v1546_v20 = vshll.u32 %v7437_v3, 16 }
 0x278   : > { %5481 = vmatprep.subr.bf16.mxu1 %v6167_v10  ;;  %v1723_v58 = vsel %vm8324_vm13, %v1718_v63, %v1722_v9  ;;  %v7453_v50 = vor.u32 %v1729_v42, %v1728_v48  ;;  %vm8326_vm8 = vmmov %vm8325_vm7  ;;  %v1705_v17 = vshrl.u32 %v7407_v19, 16  ;;  %v1708_v59 = vshll.u32 %v7407_v19, 16  ;;  %v6176_v3 = vld [vmem:[#allocation8 + $0xa8] sm:$0xff]   ;;  %v6177_v55 = vld [vmem:[#allocation8 + $0xb0] sm:$0xff]  }
 0x279   : > { %v1727_v25 = vsel %vm8325_vm7, %v1722_v9, %v1726_v16  ;;  %v1545_v61 = vrot.slane %v1543_v21, 3  ;;  %v1548_v52 = vrot.slane %v1546_v20, 4  ;;  %vm8327_vm13 = vmmov %vm8325_vm7  ;;  %v6179_v48 = vld [vmem:[#allocation5 + $0x100] sm:$0xff]   ;;  %v6182_v9 = vld [vmem:[#allocation5 + $0x118] sm:$0xff]  }
 0x27a   : > { %5470 = vmatmul.mubr.bf16.gmra.mrb[8].mxu1 %v1353_v47  ;;  %v1731_v36 = vsel %vm8326_vm8, %v1726_v16, %v7453_v50  ;;  %5529 = vmatprep.subr.bf16.mxu0 %v6179_v48  ;;  %v6183_v42 = vld [vmem:[#allocation5 + $0x120] sm:$0xff]   ;;  %v6184_v47 = vld [vmem:[#allocation5 + $0x128] sm:$0xff]   ;;  %v6185_v16 = vld [vmem:[#allocation5 + $0x130] sm:$0xff]  }
 0x27b   : > { %5482 = vmatpush3.bf16.msra.mxu1 %v6167_v10  ;;  %5489 = vmatprep.mubr.bf16.mxu1 %v1505_v45  ;;  %v1707_v10 = vrot.slane %v1705_v17, 4  ;;  %v1549_v32 = vor.u32 %v1548_v52, %v1545_v61  ;;  %v6186_v45 = vld [vmem:[#allocation5 + $0x138] sm:$0xff]  }
 0x27c   : > { %5483 = vmatprep.subr.bf16.mxu1 %v6168_v51  ;;  %5530 = vmatpush3.bf16.msra.mxu0 %v6179_v48 }
 0x27d   : > { %v1550_v19 = vsel %vm8320_vm2, %v7443_v13, %v1549_v32 }
 0x27f   : > { %5484 = vmatpush3.bf16.msra.mxu1 %v6168_v51  ;;  %v6180_v51 = vld [vmem:[#allocation5 + $0x108] sm:$0xff]  }
 0x280   : > { %5485 = vmatprep.subr.bf16.mxu1 %v6169_v28  ;;  %5531 = vmatprep.subr.bf16.mxu0 %v6180_v51 }
 0x281   : > { %5532 = vmatpush3.bf16.msra.mxu0 %v6180_v51 }
 0x283   : > { %5486 = vmatpush3.bf16.msra.mxu1 %v6169_v28 }
 0x284   : > { %5487 = vmatprep.subr.bf16.mxu1 %v6170_v12 }
 0x287   : > { %5488 = vmatpush3.bf16.msra.mxu1 %v6170_v12 }
 0x288   : > { %5501 = vmatprep.subr.bf16.mxu1 %v6171_v35 }
 0x28a   : > { %5490 = vmatmul.mubr.bf16.vlgmr.msra.gmra.mrb[0].mxu1 %v1514_v5  ;;  %v1710_v5 = vrot.slane %v1708_v59, 5 }
 0x28b   : > { %5493 = vmatprep.mubr.bf16.mxu1 %v1523_v24  ;;  %5502 = vmatpush3.bf16.msra.mxu1 %v6171_v35  ;;  %v6175_v24 = vld [vmem:[#allocation8 + $0xa0] sm:$0xff]  }
 0x28c   : > { %5503 = vmatprep.subr.bf16.mxu1 %v6172_v11  ;;  %v1711_v15 = vor.u32 %v1710_v5, %v1707_v10 }
 0x28e   : > { %v1715_v8 = vsel %vm8327_vm13, %v1711_v15, %v1714_v18 }
 0x28f   : > { %5504 = vmatpush3.bf16.msra.mxu1 %v6172_v11 }
 0x290   : > { %5505 = vmatprep.subr.bf16.mxu1 %v6173_v43 }
 0x292   : > { %5494 = vmatmul.mubr.bf16.gmra.mrb[4].mxu1 %v1532_v14  ;;  %v6178_v14 = vld [vmem:[#allocation8 + $0xb8] sm:$0xff]  }
 0x293   : > { %5497 = vmatprep.mubr.bf16.mxu1 %v1541_v62  ;;  %5506 = vmatpush3.bf16.msra.mxu1 %v6173_v43  ;;  %v1686_v62 = vld [vmem:[#allocation3 + $0x30] sm:$0x1f] }
 0x294   : > { %5507 = vmatprep.subr.bf16.mxu1 %v6174_v2  ;;  %v1733_v63 = vshrl.u32 %v1686_v62, 16  ;;  %v1736_v6 = vshll.u32 %v1686_v62, 16 }
 0x296   : > { %v1735_v39 = vrot.slane %v1733_v63, 4  ;;  %v1738_v13 = vrot.slane %v1736_v6, 5 }
 0x297   : > { %5508 = vmatpush3.bf16.msra.mxu1 %v6174_v2 }
 0x298   : > { %5509 = vmatprep.subr.bf16.mxu1 %v6175_v24  ;;  %v1739_v18 = vor.u32 %v1738_v13, %v1735_v39 }
 0x29a   : > { %5498 = vmatmul.mubr.bf16.gmra.mrb[8].mxu1 %v1550_v19  ;;  %v1740_v38 = vsel %vm8325_vm7, %v7453_v50, %v1739_v18  ;;  %v7473_v50 = vld [vmem:[%s8328_s14] ss:$0 sm:$0xff] }
 0x29b   : > { %5510 = vmatpush3.bf16.msra.mxu1 %v6175_v24  ;;  %5517 = vmatprep.mubr.bf16.mxu1 %v1715_v8 }
 0x29c   : > { %5511 = vmatprep.subr.bf16.mxu1 %v6176_v3 }
 0x29f   : > { %5512 = vmatpush3.bf16.msra.mxu1 %v6176_v3 }
 0x2a0   : > { %5513 = vmatprep.subr.bf16.mxu1 %v6177_v55 }
 0x2a3   : > { %5514 = vmatpush3.bf16.msra.mxu1 %v6177_v55 }
 0x2a4   : > { %5515 = vmatprep.subr.bf16.mxu1 %v6178_v14 }
 0x2a7   : > { %5516 = vmatpush3.bf16.msra.mxu1 %v6178_v14 }
 0x2aa   : > { %5518 = vmatmul.mubr.bf16.vlgmr.msra.gmra.mrb[0].mxu1 %v1719_v7  ;;  %v6181_v7 = vld [vmem:[#allocation5 + $0x110] sm:$0xff]  }
 0x2ab   : > { %5521 = vmatprep.mubr.bf16.mxu1 %v1723_v58  ;;  %5533 = vmatprep.subr.bf16.mxu0 %v6181_v7  ;;  %v7467_v58 = vld [vmem:[#allocation5 + $0xc0] sm:$0xff]  }
 0x2ac   : > { %5534 = vmatpush3.bf16.msra.mxu0 %v6181_v7 }
 0x2ad   : > { %5535 = vmatprep.subr.bf16.mxu0 %v6182_v9 }
 0x2b0   : > { %5536 = vmatpush3.bf16.msra.mxu0 %v6182_v9 }
 0x2b1   : > { %5537 = vmatprep.subr.bf16.mxu0 %v6183_v42 }
 0x2b2   : > { %5522 = vmatmul.mubr.bf16.gmra.mrb[4].mxu1 %v1727_v25 }
 0x2b3   : > { %5525 = vmatprep.mubr.bf16.mxu1 %v1731_v36 }
 0x2b4   : > { %5538 = vmatpush3.bf16.msra.mxu0 %v6183_v42 }
 0x2b5   : > { %5539 = vmatprep.subr.bf16.mxu0 %v6184_v47 }
 0x2b8   : > { %5540 = vmatpush3.bf16.msra.mxu0 %v6184_v47 }
 0x2b9   : > { %5541 = vmatprep.subr.bf16.mxu0 %v6185_v16 }
 0x2ba   : > { %5526 = vmatmul.mubr.bf16.gmra.mrb[8].mxu1 %v1740_v38 }
 0x2bc   : > { %5542 = vmatpush3.bf16.msra.mxu0 %v6185_v16 }
 0x2bd   : > { %5543 = vmatprep.subr.bf16.mxu0 %v6186_v45 }
 0x2c0   : > { %5544 = vmatpush3.bf16.msra.mxu0 %v6186_v45 }
 0x2c1   : > { %5557 = vmatprep.subr.bf16.mxu0 %v7467_v58 }
 0x37d   : > { %v5519_v25 = vpop.f32.mrb[0].mxu1 }
 0x37e   : > { %v1897_v28 = vadd.f32 %v5519_v25, %v7473_v50  ;;  %v1829_v36 = vpop.f32.mrb[1].mxu1 }
 0x37f   : > { %v1895_v12 = vadd.f32 %v7473_v50, %v1829_v36  ;;  %v5520_v35 = vpop.f32.mrb[2].mxu1 }
 0x380   : > { %v1909_v11 = vsel %vm7130_vm10, %v1897_v28, 0.0  ;;  %v1898_v43 = vadd.f32 %v5520_v35, %v7473_v50  ;;  %v1832_v21 = vpop.f32.mrb[3].mxu1 }
 0x381   : > { %v7481_v20 = vadd.f32 %v1909_v11, %v7148_v34  ;;  %v1907_v17 = vsel %vm7111_vm9, %v1895_v12, 0.0  ;;  %v1896_v59 = vadd.f32 %v7473_v50, %v1832_v21 }
 0x382   : > { %v7487_v2 = vadd.f32 %v1907_v17, %v7126_v29  ;;  %v1910_v61 = vsel %vm7142_vm5, %v1898_v43, 0.0 }
 0x383   : > { %v1945_v52 = vmul.f32 0.1, %v7481_v20  ;;  %v7493_v10 = vadd.f32 %v1910_v61, %v7154_v37  ;;  %v1908_v34 = vsel %vm7118_vm14, %v1896_v59, 0.0  ;;  %vm1933_vm8 = vcmp.ge.f32.partialorder %v7481_v20, 0.0 }
 0x384   : > { %vm1931_vm2 = vcmp.ge.f32.partialorder %v7487_v2, 0.0  ;;  %v1943_v5 = vmul.f32 0.1, %v7487_v2  ;;  %v7501_v29 = vadd.f32 %v1908_v34, %v7136_v31 }
 0x385   : > { %vm1934_vm13 = vcmp.ge.f32.partialorder %v7493_v10, 0.0  ;;  %v1946_v24 = vmul.f32 0.1, %v7493_v10  ;;  %v5523_v32 = vpop.f32.mrb[4].mxu1  ;;  %v1957_v19 = vsel %vm1933_vm8, %v7481_v20, %v1945_v52 }
 0x386   : > { %vm1932_vm7 = vcmp.ge.f32.partialorder %v7501_v29, 0.0  ;;  %v1944_v37 = vmul.f32 0.1, %v7501_v29  ;;  %v1901_v15 = vadd.f32 %v5523_v32, %v7473_v50  ;;  %v1845_v3 = vpop.f32.mrb[5].mxu1  ;;  %v1955_v8 = vsel %vm1931_vm2, %v7487_v2, %v1943_v5 }
 0x387   : > { %v1958_v55 = vsel %vm1934_vm13, %v7493_v10, %v1946_v24  ;;  %v1899_v31 = vadd.f32 %v7473_v50, %v1845_v3  ;;  %v5524_v14 = vpop.f32.mrb[6].mxu1 }
 0x388   : > { %v1968_v62 = vpack.c.bf16 %v1958_v55, %v1957_v19  ;;  %v1956_v63 = vsel %vm1932_vm7, %v7501_v29, %v1944_v37  ;;  %v1913_v6 = vsel %vm7192_vm12, %v1901_v15, 0.0  ;;  %v1902_v39 = vadd.f32 %v5524_v14, %v7473_v50  ;;  %v1848_v13 = vpop.f32.mrb[7].mxu1 }
 0x389   : > { %v1967_v18 = vpack.c.bf16 %v1956_v63, %v1955_v8  ;;  %v7517_v38 = vadd.f32 %v1913_v6, %v7209_v1  ;;  %v1911_v48 = vsel %vm7161_vm6, %v1899_v31, 0.0  ;;  %v1900_v51 = vadd.f32 %v7473_v50, %v1848_v13  ;;  %v8330_v6 = vld [vmem:[#allocation42_spill] sm:$0xff] }
 0x38a   : > { %v7523_v7 = vadd.f32 %v1911_v48, %v7178_v46  ;;  %v1914_v9 = vsel %vm7198_vm4, %v1902_v39, 0.0  ;;  %v1980_v42 = vrot.slane %v1968_v62, 4 }
 0x38b   : > { %v1979_v47 = vrot.slane %v1967_v18, 4  ;;  %v1949_v16 = vmul.f32 0.1, %v7517_v38  ;;  %v7529_v45 = vadd.f32 %v1914_v9, %v7213_v4  ;;  %vm1937_vm8 = vcmp.ge.f32.partialorder %v7517_v38, 0.0 }
 0x38c   : > { %v1912_v1 = vsel %vm8316_vm0, %v1900_v51, 0.0  ;;  %vm1935_vm13 = vcmp.ge.f32.partialorder %v7523_v7, 0.0  ;;  %v1947_v28 = vmul.f32 0.1, %v7523_v7 }
 0x38d   : > { %1997 = vst [vmem:[#allocation3] sm:$0xf0] %v1979_v47  ;;  %vm1938_vm2 = vcmp.ge.f32.partialorder %v7529_v45, 0.0  ;;  %v1950_v46 = vmul.f32 0.1, %v7529_v45  ;;  %v5527_v25 = vpop.f32.mrb[8].mxu1  ;;  %v7539_v36 = vadd.f32 %v1912_v1, %v7183_v49  ;;  %v7543_v35 = vsel %vm8226_vm15, %v1979_v47, %v1980_v42 }
 0x38e   : > { %v1905_v4 = vadd.f32 %v5527_v25, %v7473_v50  ;;  %v1861_v12 = vpop.f32.mrb[9].mxu1  ;;  %v1961_v11 = vsel %vm1937_vm8, %v7517_v38, %v1949_v16  ;;  %vm8329_vm15 = vnez %v8308_v22  ;;  %v1959_v37 = vsel %vm1935_vm13, %v7523_v7, %v1947_v28 }
 0x38f   : > { %v1962_v43 = vsel %vm1938_vm2, %v7529_v45, %v1950_v46  ;;  %v1903_v21 = vadd.f32 %v7473_v50, %v1861_v12  ;;  %v5528_v17 = vpop.f32.mrb[10].mxu1  ;;  %vm1936_vm7 = vcmp.ge.f32.partialorder %v7539_v36, 0.0  ;;  %v1948_v61 = vmul.f32 0.1, %v7539_v36 }
 0x390   : > { %v1970_v59 = vpack.c.bf16 %v1962_v43, %v1961_v11  ;;  %v1917_v49 = vsel %vm7269_vm3, %v1905_v4, 0.0  ;;  %v1864_v52 = vpop.f32.mrb[11].mxu1  ;;  %v1906_v24 = vadd.f32 %v5528_v17, %v7473_v50  ;;  %v2055_v62 = vrot.slane %v7543_v35, 4  ;;  %v6188_v4 = vld [vmem:[#allocation5 + $0xc8] sm:$0xff]  }
 0x391   : > { %v7553_v34 = vadd.f32 %v1917_v49, %v7278_v56  ;;  %v1915_v5 = vsel %vm8329_vm15, %v1903_v21, 0.0  ;;  %v1904_v32 = vadd.f32 %v7473_v50, %v1864_v52  ;;  %v1960_v3 = vsel %vm1936_vm7, %v7539_v36, %v1948_v61  ;;  %v6189_v61 = vld [vmem:[#allocation5 + $0xd0] sm:$0xff]  }
 0x392   : > { %v1984_v15 = vrot.slane %v1970_v59, 4  ;;  %v7564_v19 = vadd.f32 %v1915_v5, %v7242_v27  ;;  %v1969_v8 = vpack.c.bf16 %v1960_v3, %v1959_v37  ;;  %v1918_v55 = vsel %vm7282_vm1, %v1906_v24, 0.0 }
 0x393   : > { %vm1941_vm8 = vcmp.ge.f32.partialorder %v7553_v34, 0.0  ;;  %v1953_v56 = vmul.f32 0.1, %v7553_v34  ;;  %v7571_v50 = vadd.f32 %v1918_v55, %v7290_v0  ;;  %v1916_v31 = vsel %vm8318_vm11, %v1904_v32, 0.0 }
 0x394   : > { %v2028_v14 = vld [vmem:[#allocation3] sm:$0xf0]  ;;  %v1982_v63 = vrot.slane %v1969_v8, 4  ;;  %v1951_v27 = vmul.f32 0.1, %v7564_v19  ;;  %v7578_v39 = vadd.f32 %v1916_v31, %v8330_v6  ;;  %vm1939_vm2 = vcmp.ge.f32.partialorder %v7564_v19, 0.0 }
 0x395   : > { %v2054_v13 = vrot.slane %v2028_v14, 4  ;;  %v1965_v18 = vsel %vm1941_vm8, %v7553_v34, %v1953_v56  ;;  %vm1942_vm13 = vcmp.ge.f32.partialorder %v7571_v50, 0.0  ;;  %v1954_v0 = vmul.f32 0.1, %v7571_v50  ;;  %v2004_v59 = vld [vmem:[#allocation3] sm:$0xfc] }
 0x396   : > { %vm8331_vm7 = vcmask 1043456   ;;  %vm1940_vm1 = vcmp.ge.f32.partialorder %v7578_v39, 0.0  ;;  %v1952_v9 = vmul.f32 0.1, %v7578_v39  ;;  %v1963_v25 = vsel %vm1939_vm2, %v7564_v19, %v1951_v27  ;;  %v6190_v8 = vld [vmem:[#allocation5 + $0xd8] sm:$0xff]  }
 0x397   : > { %v7585_v48 = vsel %vm8331_vm7, %v1980_v42, %v1982_v63  ;;  %vm8332_vm11 = vmmov %vm8331_vm7  ;;  %v1966_v47 = vsel %vm1942_vm13, %v7571_v50, %v1954_v0  ;;  %v2204_v32 = vshrl.u32 %v2004_v59, 16  ;;  %v2207_v37 = vshll.u32 %v2004_v59, 16  ;;  %v6192_v0 = vld [vmem:[#allocation5 + $0xe8] sm:$0xff]  }
 0x398   : > { %v7588_v51 = vsel %vm8332_vm11, %v1982_v63, %v1984_v15  ;;  %vm8333_vm15 = vmmov %vm8331_vm7  ;;  %v2057_v1 = vrot.slane %v7585_v48, 4  ;;  %v1972_v28 = vpack.c.bf16 %v1966_v47, %v1965_v18  ;;  %v1964_v42 = vsel %vm1940_vm1, %v7578_v39, %v1952_v9 }
 0x399   : > { %v2056_v16 = vsel %vm8333_vm15, %v2054_v13, %v2055_v62  ;;  %v2059_v46 = vrot.slane %v7588_v51, 4  ;;  %v1971_v12 = vpack.c.bf16 %v1964_v42, %v1963_v25  ;;  %vm8334_vm11 = vmmov %vm8331_vm7  ;;  %v2212_v56 = vshrl.u32 %v7543_v35, 16  ;;  %v6194_v42 = vld [vmem:[#allocation5 + $0xf8] sm:$0xff]  }
 0x39a   : > { %5545 = vmatprep.mubr.bf16.mxu0 %v2056_v16  ;;  %v2058_v11 = vsel %vm8334_vm11, %v2055_v62, %v2057_v1  ;;  %vm8335_vm8 = vmmov %vm8331_vm7  ;;  %v1988_v21 = vrot.slane %v1972_v28, 4  ;;  %v2206_v55 = vrot.slane %v2204_v32, 2  ;;  %v2209_v31 = vrot.slane %v2207_v37, 3  ;;  %v6191_v62 = vld [vmem:[#allocation5 + $0xe0] sm:$0xff]   ;;  %v6193_v16 = vld [vmem:[#allocation5 + $0xf0] sm:$0xff]  }
 0x39b   : > { %v2060_v43 = vsel %vm8335_vm8, %v2057_v1, %v2059_v46  ;;  %5546 = vmatmul.mubr.bf16.vlgmr.msra.gmra.mrb[12].mxu0 %v2058_v11  ;;  %v1986_v17 = vrot.slane %v1971_v12, 4  ;;  %vm8336_vm15 = vmmov %vm8331_vm7  ;;  %v2214_v63 = vrot.slane %v2212_v56, 2  ;;  %v2221_v1 = vshrl.u32 %v7585_v48, 16  ;;  %v6196_v37 = vld [vmem:[#allocation5 + $0x148] sm:$0xff]  }
 0x39c   : > { %5558 = vmatpush3.bf16.msra.mxu0 %v7467_v58  ;;  %5549 = vmatprep.mubr.bf16.mxu0 %v2060_v43  ;;  %2003 = vst [vmem:[#allocation3 + $0x30] sm:$0xf] %v1988_v21  ;;  %vm8337_vm1 = vmmov %vm8331_vm7  ;;  %v2210_v13 = vor.u32 %v2209_v31, %v2206_v55  ;;  %vm2202_vm7 = vsmask.f32 5376  ;;  %v2230_v25 = vshrl.u32 %v7588_v51, 16  ;;  %v2233_v28 = vshll.u32 %v7588_v51, 16 }
 0x39d   : > { %5559 = vmatprep.subr.bf16.mxu0 %v6188_v4  ;;  %v7602_v49 = vsel %vm8336_vm15, %v1984_v15, %v1986_v17  ;;  %v7605_v52 = vsel %vm8337_vm1, %v1986_v17, %v1988_v21  ;;  %vm8338_vm2 = vmmov %vm8337_vm1  ;;  %v2215_v15 = vshll.u32 %v7543_v35, 16  ;;  %v6195_v21 = vld [vmem:[#allocation5 + $0x140] sm:$0xff]   ;;  %vm2419_vm8 = vsmask.f32 2304  ;;  %v6202_v35 = vld [vmem:[#allocation5 + $0x178] sm:$0xff]  }
 0x39e   : > { %v2061_v5 = vrot.slane %v7602_v49, 4  ;;  %v2063_v24 = vrot.slane %v7605_v52, 4  ;;  %vm8339_vm13 = vmmov %vm8337_vm1  ;;  %v2232_v11 = vrot.slane %v2230_v25, 2  ;;  %v2235_v43 = vrot.slane %v2233_v28, 3 }
 0x39f   : > { %v2217_v27 = vrot.slane %v2215_v15, 3  ;;  %vm8340_vm11 = vmmov %vm8337_vm1  ;;  %v2239_v59 = vshrl.u32 %v7602_v49, 16  ;;  %v2251_v32 = vshll.u32 %v7605_v52, 16 }
 0x3a0   : > { %5560 = vmatpush3.bf16.msra.mxu0 %v6188_v4  ;;  %v2062_v58 = vsel %vm8338_vm2, %v2059_v46, %v2061_v5  ;;  %v2064_v3 = vsel %vm8339_vm13, %v2061_v5, %v2063_v24  ;;  %v2224_v46 = vshll.u32 %v7585_v48, 16  ;;  %v2223_v4 = vrot.slane %v2221_v1, 2 }
 0x3a1   : > { %5561 = vmatprep.subr.bf16.mxu0 %v6189_v61  ;;  %v2218_v18 = vor.u32 %v2217_v27, %v2214_v63  ;;  %v2236_v5 = vor.u32 %v2235_v43, %v2232_v11  ;;  %v2400_v63 = vld [vmem:[#allocation3] sm:$0xe0]  ;;  %v6197_v27 = vld [vmem:[#allocation5 + $0x150] sm:$0xff]  }
 0x3a2   : > { %v2226_v12 = vrot.slane %v2224_v46, 3 }
 0x3a3   : > { %5550 = vmatmul.mubr.bf16.gmra.mrb[16].mxu0 %v2062_v58  ;;  %v2029_v14 = vld [vmem:[#allocation3 + $0x30] sm:$0xf]  ;;  %v2219_v47 = vsel %vm2202_vm7, %v2210_v13, %v2218_v18 }
 0x3a4   : > { %5562 = vmatpush3.bf16.msra.mxu0 %v6189_v61  ;;  %5553 = vmatprep.mubr.bf16.mxu0 %v2064_v3  ;;  %v2065_v6 = vrot.slane %v2029_v14, 4  ;;  %v2227_v17 = vor.u32 %v2226_v12, %v2223_v4  ;;  %v2242_v61 = vshll.u32 %v7602_v49, 16  ;;  %v2241_v3 = vrot.slane %v2239_v59, 2 }
 0x3a5   : > { %5563 = vmatprep.subr.bf16.mxu0 %v6190_v8  ;;  %v2253_v14 = vrot.slane %v2251_v32, 3 }
 0x3a6   : > { %v2066_v9 = vsel %vm8340_vm11, %v2063_v24, %v2065_v6  ;;  %v2248_v24 = vshrl.u32 %v7605_v52, 16  ;;  %v2228_v58 = vsel %vm2202_vm7, %v2218_v18, %v2227_v17  ;;  %v2237_v55 = vsel %vm2202_vm7, %v2227_v17, %v2236_v5  ;;  %v6199_v17 = vld [vmem:[#allocation5 + $0x160] sm:$0xff]  }
 0x3a7   : > { %v2441_v48 = vrot.slane %v2242_v61, 6  ;;  %v6203_v52 = vld [vmem:[#allocation8 + $0x100] sm:$0xff]  }
 0x3a8   : > { %5564 = vmatpush3.bf16.msra.mxu0 %v6190_v8  ;;  %v2244_v8 = vrot.slane %v2242_v61, 3  ;;  %v2250_v31 = vrot.slane %v2248_v24, 2  ;;  %v2444_v51 = vrot.slane %v2248_v24, 5  ;;  %5613 = vmatprep.subr.bf16.mxu1 %v6203_v52 }
 0x3a9   : > { %5565 = vmatprep.subr.bf16.mxu0 %v6191_v62  ;;  %5614 = vmatpush3.bf16.msra.mxu1 %v6203_v52 }
 0x3aa   : > { %v2245_v6 = vor.u32 %v2244_v8, %v2241_v3 }
 0x3ab   : > { %5554 = vmatmul.mubr.bf16.gmra.mrb[20].mxu0 %v2066_v9  ;;  %v2421_v9 = vshrl.u32 %v2400_v63, 16 }
 0x3ac   : > { %5566 = vmatpush3.bf16.msra.mxu0 %v6191_v62  ;;  %5573 = vmatprep.mubr.bf16.mxu0 %v2219_v47  ;;  %v2010_v62 = vld [vmem:[#allocation3 + $0x30] sm:$0x7]  ;;  %v2424_v47 = vshll.u32 %v2400_v63, 16  ;;  %v2436_v63 = vrot.slane %v2230_v25, 5 }
 0x3ad   : > { %5567 = vmatprep.subr.bf16.mxu0 %v6192_v0  ;;  %v2257_v13 = vshrl.u32 %v2010_v62, 16  ;;  %v2260_v18 = vshll.u32 %v2010_v62, 16  ;;  %v2423_v43 = vrot.slane %v2421_v9, 5  ;;  %v6201_v62 = vld [vmem:[#allocation5 + $0x170] sm:$0xff]   ;;  %v2401_v25 = vld [vmem:[#allocation3 + $0x30] sm:$0x3f] }
 0x3ae   : > { %v2449_v9 = vshrl.u32 %v2401_v25, 16 }
 0x3af   : > { %v2259_v4 = vrot.slane %v2257_v13, 2  ;;  %v2262_v12 = vrot.slane %v2260_v18, 3 }
 0x3b0   : > { %5568 = vmatpush3.bf16.msra.mxu0 %v6192_v0  ;;  %v2254_v0 = vor.u32 %v2253_v14, %v2250_v31 }
 0x3b1   : > { %5569 = vmatprep.subr.bf16.mxu0 %v6193_v16  ;;  %v2263_v3 = vor.u32 %v2262_v12, %v2259_v4  ;;  %v6205_v12 = vld [vmem:[#allocation8 + $0x110] sm:$0xff]  }
 0x3b2   : > { %v2255_v11 = vsel %vm2202_vm7, %v2245_v6, %v2254_v0 }
 0x3b3   : > { %v2264_v31 = vsel %vm2202_vm7, %v2254_v0, %v2263_v3  ;;  %v2440_v0 = vrot.slane %v2239_v59, 5  ;;  %v7680_v3 = vld [vmem:[%s8182_s2 + $0x1] ss:$0 sm:$0xff] }
 0x3b4   : > { %5570 = vmatpush3.bf16.msra.mxu0 %v6193_v16  ;;  %v6198_v16 = vld [vmem:[#allocation5 + $0x158] sm:$0xff]  }
 0x3b5   : > { %5571 = vmatprep.subr.bf16.mxu0 %v6194_v42 }
 0x3b8   : > { %5572 = vmatpush3.bf16.msra.mxu0 %v6194_v42  ;;  %v2246_v42 = vsel %vm2202_vm7, %v2236_v5, %v2245_v6 }
 0x3b9   : > { %5585 = vmatprep.subr.bf16.mxu0 %v6195_v21 }
 0x3bb   : > { %5574 = vmatmul.mubr.bf16.vlgmr.msra.gmra.mrb[12].mxu0 %v2228_v58  ;;  %v2428_v58 = vrot.slane %v2212_v56, 5  ;;  %v2432_v56 = vrot.slane %v2221_v1, 5 }
 0x3bc   : > { %5577 = vmatprep.mubr.bf16.mxu0 %v2237_v55  ;;  %5586 = vmatpush3.bf16.msra.mxu0 %v6195_v21  ;;  %v2426_v21 = vrot.slane %v2424_v47, 6  ;;  %v6200_v55 = vld [vmem:[#allocation5 + $0x168] sm:$0xff]   ;;  %v2452_v47 = vshll.u32 %v2401_v25, 16 }
 0x3bd   : > { %5587 = vmatprep.subr.bf16.mxu0 %v6196_v37 }
 0x3be   : > { %v2427_v8 = vor.u32 %v2426_v21, %v2423_v43  ;;  %v2454_v49 = vrot.slane %v2452_v47, 6  ;;  %v6207_v43 = vld [vmem:[#allocation8 + $0x120] sm:$0xff]   ;;  %v6208_v21 = vld [vmem:[#allocation8 + $0x128] sm:$0xff]  }
 0x3c0   : > { %5588 = vmatpush3.bf16.msra.mxu0 %v6196_v37  ;;  %v2429_v37 = vrot.slane %v2215_v15, 6  ;;  %v2433_v15 = vrot.slane %v2224_v46, 6  ;;  %v2445_v46 = vrot.slane %v2251_v32, 6  ;;  %v6204_v32 = vld [vmem:[#allocation8 + $0x108] sm:$0xff]  }
 0x3c1   : > { %5589 = vmatprep.subr.bf16.mxu0 %v6197_v27  ;;  %5615 = vmatprep.subr.bf16.mxu1 %v6204_v32 }
 0x3c2   : > { %v2430_v5 = vor.u32 %v2429_v37, %v2428_v58  ;;  %v2434_v6 = vor.u32 %v2433_v15, %v2432_v56  ;;  %5616 = vmatpush3.bf16.msra.mxu1 %v6204_v32  ;;  %v6210_v58 = vld [vmem:[#allocation8 + $0x138] sm:$0xff]   ;;  %v7674_v37 = vld [vmem:[#allocation8 + $0xc0] sm:$0xff]  }
 0x3c3   : > { %5578 = vmatmul.mubr.bf16.gmra.mrb[16].mxu0 %v2246_v42  ;;  %v2451_v42 = vrot.slane %v2449_v9, 5  ;;  %5617 = vmatprep.subr.bf16.mxu1 %v6205_v12 }
 0x3c4   : > { %5581 = vmatprep.mubr.bf16.mxu0 %v2255_v11  ;;  %5590 = vmatpush3.bf16.msra.mxu0 %v6197_v27  ;;  %v2431_v14 = vsel %vm2419_vm8, %v2427_v8, %v2430_v5  ;;  %v2437_v27 = vrot.slane %v2233_v28, 6  ;;  %v2435_v18 = vsel %vm2419_vm8, %v2430_v5, %v2434_v6  ;;  %v2442_v28 = vor.u32 %v2441_v48, %v2440_v0  ;;  %v6206_v11 = vld [vmem:[#allocation8 + $0x118] sm:$0xff]  }
 0x3c5   : > { %5591 = vmatprep.subr.bf16.mxu0 %v6198_v16  ;;  %v2455_v4 = vor.u32 %v2454_v49, %v2451_v42 }
 0x3c6   : > { %v2438_v13 = vor.u32 %v2437_v27, %v2436_v63  ;;  %5618 = vmatpush3.bf16.msra.mxu1 %v6205_v12 }
 0x3c7   : > { %5619 = vmatprep.subr.bf16.mxu1 %v6206_v11 }
 0x3c8   : > { %5592 = vmatpush3.bf16.msra.mxu0 %v6198_v16  ;;  %v2439_v1 = vsel %vm2419_vm8, %v2434_v6, %v2438_v13  ;;  %v2446_v16 = vor.u32 %v2445_v46, %v2444_v51  ;;  %v2443_v59 = vsel %vm2419_vm8, %v2438_v13, %v2442_v28 }
 0x3c9   : > { %5593 = vmatprep.subr.bf16.mxu0 %v6199_v17 }
 0x3ca   : > { %v2447_v61 = vsel %vm2419_vm8, %v2442_v28, %v2446_v16  ;;  %v2456_v24 = vsel %vm2419_vm8, %v2446_v16, %v2455_v4  ;;  %5620 = vmatpush3.bf16.msra.mxu1 %v6206_v11 }
 0x3cb   : > { %5582 = vmatmul.mubr.bf16.gmra.mrb[20].mxu0 %v2264_v31  ;;  %5621 = vmatprep.subr.bf16.mxu1 %v6207_v43 }
 0x3cc   : > { %5594 = vmatpush3.bf16.msra.mxu0 %v6199_v17  ;;  %5601 = vmatprep.mubr.bf16.mxu0 %v2431_v14  ;;  %v6209_v17 = vld [vmem:[#allocation8 + $0x130] sm:$0xff]  }
 0x3cd   : > { %5595 = vmatprep.subr.bf16.mxu0 %v6200_v55 }
 0x3ce   : > { %5622 = vmatpush3.bf16.msra.mxu1 %v6207_v43 }
 0x3cf   : > { %5623 = vmatprep.subr.bf16.mxu1 %v6208_v21 }
 0x3d0   : > { %5596 = vmatpush3.bf16.msra.mxu0 %v6200_v55 }
 0x3d1   : > { %5597 = vmatprep.subr.bf16.mxu0 %v6201_v62 }
 0x3d2   : > { %5624 = vmatpush3.bf16.msra.mxu1 %v6208_v21 }
 0x3d3   : > { %5625 = vmatprep.subr.bf16.mxu1 %v6209_v17 }
 0x3d4   : > { %5598 = vmatpush3.bf16.msra.mxu0 %v6201_v62 }
 0x3d5   : > { %5599 = vmatprep.subr.bf16.mxu0 %v6202_v35 }
 0x3d6   : > { %5626 = vmatpush3.bf16.msra.mxu1 %v6209_v17 }
 0x3d7   : > { %5627 = vmatprep.subr.bf16.mxu1 %v6210_v58 }
 0x3d8   : > { %5600 = vmatpush3.bf16.msra.mxu0 %v6202_v35 }
 0x3da   : > { %5628 = vmatpush3.bf16.msra.mxu1 %v6210_v58 }
 0x3db   : > { %5602 = vmatmul.mubr.bf16.vlgmr.msra.gmra.mrb[12].mxu0 %v2435_v18  ;;  %5641 = vmatprep.subr.bf16.mxu1 %v7674_v37 }
 0x3dc   : > { %5605 = vmatprep.mubr.bf16.mxu0 %v2439_v1 }
 0x3e3   : > { %5606 = vmatmul.mubr.bf16.gmra.mrb[16].mxu0 %v2443_v59 }
 0x3e4   : > { %5609 = vmatprep.mubr.bf16.mxu0 %v2447_v61 }
 0x3eb   : > { %5610 = vmatmul.mubr.bf16.gmra.mrb[20].mxu0 %v2456_v24 }
 0x4ae   : > { %v5603_v8 = vpop.f32.mrb[12].mxu0 }
 0x4af   : > { %v2614_v5 = vadd.f32 %v5603_v8, %v7680_v3  ;;  %v2545_v55 = vpop.f32.mrb[13].mxu0 }
 0x4b0   : > { %v2612_v31 = vadd.f32 %v7680_v3, %v2545_v55  ;;  %v5604_v14 = vpop.f32.mrb[14].mxu0 }
 0x4b1   : > { %v2626_v62 = vsel %vm7130_vm10, %v2614_v5, 0.0  ;;  %v2615_v35 = vadd.f32 %v5604_v14, %v7680_v3  ;;  %v2548_v56 = vpop.f32.mrb[15].mxu0 }
 0x4b2   : > { %v2650_v15 = vmul.f32 0.1, %v2626_v62  ;;  %v2624_v63 = vsel %vm7111_vm9, %v2612_v31, 0.0  ;;  %v2613_v27 = vadd.f32 %v7680_v3, %v2548_v56  ;;  %vm2638_vm15 = vcmp.ge.f32.partialorder %v2626_v62, 0.0 }
 0x4b3   : > { %v2648_v6 = vmul.f32 0.1, %v2624_v63  ;;  %v2627_v13 = vsel %vm7142_vm5, %v2615_v35, 0.0  ;;  %vm2636_vm1 = vcmp.ge.f32.partialorder %v2624_v63, 0.0 }
 0x4b4   : > { %vm2639_vm2 = vcmp.ge.f32.partialorder %v2627_v13, 0.0  ;;  %v2651_v18 = vmul.f32 0.1, %v2627_v13  ;;  %v2625_v0 = vsel %vm7118_vm14, %v2613_v27, 0.0  ;;  %v2662_v1 = vsel %vm2638_vm15, %v2626_v62, %v2650_v15 }
 0x4b5   : > { %vm2637_vm13 = vcmp.ge.f32.partialorder %v2625_v0, 0.0  ;;  %v2649_v48 = vmul.f32 0.1, %v2625_v0  ;;  %v2660_v25 = vsel %vm2636_vm1, %v2624_v63, %v2648_v6 }
 0x4b6   : > { %v2663_v51 = vsel %vm2639_vm2, %v2627_v13, %v2651_v18  ;;  %v5607_v46 = vpop.f32.mrb[16].mxu0 }
 0x4b7   : > { %v2673_v28 = vpack.c.bf16 %v2663_v51, %v2662_v1  ;;  %v2661_v9 = vsel %vm2637_vm13, %v2625_v0, %v2649_v48  ;;  %v2618_v47 = vadd.f32 %v5607_v46, %v7680_v3  ;;  %v2561_v16 = vpop.f32.mrb[17].mxu0  ;;  %vm8341_vm13 = vnez %v8308_v22 }
 0x4b8   : > { %v2672_v59 = vpack.c.bf16 %v2661_v9, %v2660_v25  ;;  %v2616_v42 = vadd.f32 %v7680_v3, %v2561_v16  ;;  %v5608_v49 = vpop.f32.mrb[18].mxu0 }
 0x4b9   : > { %v2685_v61 = vrot.slane %v2673_v28, 4  ;;  %v2630_v4 = vsel %vm7192_vm12, %v2618_v47, 0.0  ;;  %v2619_v24 = vadd.f32 %v5608_v49, %v7680_v3  ;;  %v2564_v52 = vpop.f32.mrb[19].mxu0 }
 0x4ba   : > { %v2684_v32 = vrot.slane %v2672_v59, 4  ;;  %v2654_v12 = vmul.f32 0.1, %v2630_v4  ;;  %v2628_v11 = vsel %vm7161_vm6, %v2616_v42, 0.0  ;;  %vm2642_vm7 = vcmp.ge.f32.partialorder %v2630_v4, 0.0 }
 0x4bb   : > { %v2652_v43 = vmul.f32 0.1, %v2628_v11  ;;  %v2631_v21 = vsel %vm7198_vm4, %v2619_v24, 0.0  ;;  %v2617_v17 = vadd.f32 %v7680_v3, %v2564_v52  ;;  %vm2640_vm8 = vcmp.ge.f32.partialorder %v2628_v11, 0.0 }
 0x4bc   : > { %v7705_v58 = vsel %vm8340_vm11, %v2684_v32, %v2685_v61  ;;  %2702 = vst [vmem:[#allocation3] sm:$0xf0] %v2684_v32  ;;  %vm2643_vm15 = vcmp.ge.f32.partialorder %v2631_v21, 0.0  ;;  %v2655_v8 = vmul.f32 0.1, %v2631_v21  ;;  %v2666_v55 = vsel %vm2642_vm7, %v2630_v4, %v2654_v12 }
 0x4bd   : > { %v2629_v5 = vsel %vm8316_vm0, %v2617_v17, 0.0  ;;  %v2664_v35 = vsel %vm2640_vm8, %v2628_v11, %v2652_v43  ;;  %v2759_v27 = vrot.slane %v7705_v58, 4  ;;  %v2915_v0 = vshrl.u32 %v7705_v58, 16 }
 0x4be   : > { %v2667_v31 = vsel %vm2643_vm15, %v2631_v21, %v2655_v8  ;;  %vm2641_vm1 = vcmp.ge.f32.partialorder %v2629_v5, 0.0  ;;  %v2653_v14 = vmul.f32 0.1, %v2629_v5  ;;  %v5611_v62 = vpop.f32.mrb[20].mxu0  ;;  %v2918_v48 = vshll.u32 %v7705_v58, 16 }
 0x4bf   : > { %v2675_v56 = vpack.c.bf16 %v2667_v31, %v2666_v55  ;;  %v2622_v15 = vadd.f32 %v5611_v62, %v7680_v3  ;;  %v2577_v63 = vpop.f32.mrb[21].mxu0  ;;  %vm8342_vm11 = vnez %v8315_v60  ;;  %vm8343_vm15 = vnez %v8310_v41 }
 0x4c0   : > { %v2665_v6 = vsel %vm2641_vm1, %v2629_v5, %v2653_v14  ;;  %v2620_v13 = vadd.f32 %v7680_v3, %v2577_v63  ;;  %v5612_v18 = vpop.f32.mrb[22].mxu0  ;;  %vm8344_vm1 = vcmask 1043456   ;;  %v2917_v31 = vrot.slane %v2915_v0, 3 }
 0x4c1   : > { %v2689_v1 = vrot.slane %v2675_v56, 4  ;;  %v2674_v51 = vpack.c.bf16 %v2665_v6, %v2664_v35  ;;  %v2634_v46 = vsel %vm7269_vm3, %v2622_v15, 0.0  ;;  %v2623_v25 = vadd.f32 %v5612_v18, %v7680_v3  ;;  %v2580_v28 = vpop.f32.mrb[23].mxu0  ;;  %vm8345_vm3 = vmmov %vm8344_vm1  ;;  %v6212_v15 = vld [vmem:[#allocation8 + $0xc8] sm:$0xff]  }
 0x4c2   : > { %vm2646_vm2 = vcmp.ge.f32.partialorder %v2634_v46, 0.0  ;;  %v2658_v9 = vmul.f32 0.1, %v2634_v46  ;;  %v2632_v47 = vsel %vm8341_vm13, %v2620_v13, 0.0  ;;  %v2621_v16 = vadd.f32 %v7680_v3, %v2580_v28 }
 0x4c3   : > { %v2687_v59 = vrot.slane %v2674_v51, 4  ;;  %vm2644_vm7 = vcmp.ge.f32.partialorder %v2632_v47, 0.0  ;;  %v2656_v42 = vmul.f32 0.1, %v2632_v47  ;;  %v2635_v49 = vsel %vm8342_vm11, %v2623_v25, 0.0 }
 0x4c4   : > { %vm2647_vm8 = vcmp.ge.f32.partialorder %v2635_v49, 0.0  ;;  %v2659_v4 = vmul.f32 0.1, %v2635_v49  ;;  %v2633_v24 = vsel %vm8343_vm15, %v2621_v16, 0.0  ;;  %v7724_v52 = vld [vmem:[#allocation3] sm:$0xf0]  ;;  %v2670_v3 = vsel %vm2646_vm2, %v2634_v46, %v2658_v9  ;;  %vm8347_vm2 = vmmov %vm8344_vm1 }
 0x4c5   : > { %v7727_v32 = vsel %vm8344_vm1, %v2685_v61, %v2687_v59  ;;  %v7730_v12 = vsel %vm8345_vm3, %v2687_v59, %v2689_v1  ;;  %vm2645_vm13 = vcmp.ge.f32.partialorder %v2633_v24, 0.0  ;;  %v2657_v43 = vmul.f32 0.1, %v2633_v24  ;;  %v2709_v8 = vld [vmem:[#allocation3] sm:$0xf8]  ;;  %vm8346_vm3 = vmmov %vm8344_vm1 }
 0x4c6   : > { %v2671_v11 = vsel %vm2647_vm8, %v2635_v49, %v2659_v4  ;;  %v2758_v21 = vrot.slane %v7724_v52, 4  ;;  %v2761_v17 = vrot.slane %v7727_v32, 4  ;;  %v2763_v55 = vrot.slane %v7730_v12, 4  ;;  %vm8348_vm8 = vmmov %vm8344_vm1 }
 0x4c7   : > { %v2677_v5 = vpack.c.bf16 %v2671_v11, %v2670_v3  ;;  %v2920_v61 = vrot.slane %v2918_v48, 4  ;;  %v2668_v14 = vsel %vm2644_vm7, %v2632_v47, %v2656_v42  ;;  %v2669_v62 = vsel %vm2645_vm13, %v2633_v24, %v2657_v43  ;;  %v6213_v47 = vld [vmem:[#allocation8 + $0xd0] sm:$0xff]   ;;  %vm8349_vm13 = vmmov %vm8344_vm1 }
 0x4c8   : > { %v2760_v35 = vsel %vm8346_vm3, %v2758_v21, %v2759_v27  ;;  %v2762_v56 = vsel %vm8347_vm2, %v2759_v27, %v2761_v17  ;;  %v2676_v6 = vpack.c.bf16 %v2669_v62, %v2668_v14  ;;  %v2764_v13 = vsel %vm8348_vm8, %v2761_v17, %v2763_v55  ;;  %vm8350_vm7 = vmmov %vm8344_vm1  ;;  %v6214_v14 = vld [vmem:[#allocation8 + $0xd8] sm:$0xff]  }
 0x4c9   : > { %v2693_v63 = vrot.slane %v2677_v5, 4  ;;  %5629 = vmatprep.mubr.bf16.mxu1 %v2760_v35  ;;  %v2907_v18 = vshrl.u32 %v2709_v8, 16  ;;  %v2910_v51 = vshll.u32 %v2709_v8, 16  ;;  %v2924_v46 = vshrl.u32 %v7727_v32, 16  ;;  %vm8351_vm3 = vmmov %vm8344_vm1 }
 0x4ca   : > { %5630 = vmatmul.mubr.bf16.vlgmr.msra.gmra.mrb[12].mxu1 %v2762_v56  ;;  %v2927_v25 = vshll.u32 %v7727_v32, 16  ;;  %v2933_v28 = vshrl.u32 %v7730_v12, 16  ;;  %v2691_v9 = vrot.slane %v2676_v6, 4  ;;  %v2936_v27 = vshll.u32 %v7730_v12, 16 }
 0x4cb   : > { %2708 = vst [vmem:[#allocation3 + $0x30] sm:$0xf] %v2693_v63  ;;  %5642 = vmatpush3.bf16.msra.mxu1 %v7674_v37  ;;  %5633 = vmatprep.mubr.bf16.mxu1 %v2764_v13  ;;  %v2921_v16 = vor.u32 %v2920_v61, %v2917_v31  ;;  %v2926_v59 = vrot.slane %v2924_v46, 3  ;;  %v2909_v32 = vrot.slane %v2907_v18, 3  ;;  %v2912_v21 = vrot.slane %v2910_v51, 4 }
 0x4cc   : > { %5643 = vmatprep.subr.bf16.mxu1 %v6212_v15  ;;  %v2929_v42 = vrot.slane %v2927_v25, 4  ;;  %v2935_v49 = vrot.slane %v2933_v28, 3  ;;  %v2692_v4 = vsel %vm8349_vm13, %v2689_v1, %v2691_v9  ;;  %v2694_v24 = vsel %vm8350_vm7, %v2691_v9, %v2693_v63 }
 0x4cd   : > { %v2938_v3 = vrot.slane %v2936_v27, 4  ;;  %v2765_v11 = vrot.slane %v2692_v4, 4  ;;  %v2767_v43 = vrot.slane %v2694_v24, 4  ;;  %v2942_v8 = vshrl.u32 %v2692_v4, 16 }
 0x4ce   : > { %v2930_v17 = vor.u32 %v2929_v42, %v2926_v59  ;;  %v2945_v12 = vshll.u32 %v2692_v4, 16  ;;  %v2951_v5 = vshrl.u32 %v2694_v24, 16  ;;  %vm8352_vm2 = vsmask.f32 4352  ;;  %v6215_v59 = vld [vmem:[#allocation8 + $0xe0] sm:$0xff]  }
 0x4cf   : > { %5644 = vmatpush3.bf16.msra.mxu1 %v6212_v15  ;;  %v2939_v37 = vor.u32 %v2938_v3, %v2935_v49  ;;  %v2766_v31 = vsel %vm8344_vm1, %v2763_v55, %v2765_v11  ;;  %v2768_v61 = vsel %vm8351_vm3, %v2765_v11, %v2767_v43  ;;  %v2954_v62 = vshll.u32 %v2694_v24, 16  ;;  %vm8353_vm8 = vmmov %vm8352_vm2 }
 0x4d0   : > { %5645 = vmatprep.subr.bf16.mxu1 %v6213_v47  ;;  %v2931_v1 = vsel %vm8352_vm2, %v2921_v16, %v2930_v17  ;;  %v2944_v56 = vrot.slane %v2942_v8, 3  ;;  %v2947_v63 = vrot.slane %v2945_v12, 4  ;;  %v2953_v6 = vrot.slane %v2951_v5, 3  ;;  %vm8354_vm13 = vmmov %vm8352_vm2 }
 0x4d1   : > { %v2940_v35 = vsel %vm8353_vm8, %v2930_v17, %v2939_v37  ;;  %v2956_v13 = vrot.slane %v2954_v62, 4  ;;  %v3129_v18 = vrot.slane %v2915_v0, 4  ;;  %v3130_v55 = vrot.slane %v2918_v48, 5  ;;  %vm8355_vm7 = vmmov %vm8352_vm2 }
 0x4d2   : > { %5634 = vmatmul.mubr.bf16.gmra.mrb[16].mxu1 %v2766_v31  ;;  %v7754_v15 = vld [vmem:[#allocation3 + $0x30] sm:$0xf]  ;;  %v3133_v51 = vrot.slane %v2924_v46, 4  ;;  %v2948_v9 = vor.u32 %v2947_v63, %v2944_v56  ;;  %v3134_v49 = vrot.slane %v2927_v25, 5  ;;  %v3137_v4 = vrot.slane %v2933_v28, 4 }
 0x4d3   : > { %5646 = vmatpush3.bf16.msra.mxu1 %v6213_v47  ;;  %5637 = vmatprep.mubr.bf16.mxu1 %v2768_v61  ;;  %v7760_v42 = vor.u32 %v2956_v13, %v2953_v6  ;;  %v2769_v24 = vrot.slane %v7754_v15, 4  ;;  %v2913_v3 = vor.u32 %v2912_v21, %v2909_v32  ;;  %v3131_v58 = vor.u32 %v3130_v55, %v3129_v18  ;;  %v6216_v61 = vld [vmem:[#allocation8 + $0xe8] sm:$0xff]  }
 0x4d4   : > { %5647 = vmatprep.subr.bf16.mxu1 %v6214_v14  ;;  %v2949_v11 = vsel %vm8354_vm13, %v2939_v37, %v2948_v9  ;;  %v3135_v48 = vor.u32 %v3134_v49, %v3133_v51  ;;  %v3138_v46 = vrot.slane %v2936_v27, 5  ;;  %v3141_v47 = vrot.slane %v2942_v8, 4  ;;  %v6217_v8 = vld [vmem:[#allocation8 + $0xf0] sm:$0xff]   ;;  %v6222_v51 = vld [vmem:[#allocation8 + $0x158] sm:$0xff]  }
 0x4d5   : > { %v2958_v0 = vsel %vm8355_vm7, %v2948_v9, %v7760_v42  ;;  %v3142_v17 = vrot.slane %v2945_v12, 5  ;;  %v3145_v31 = vrot.slane %v2951_v5, 4  ;;  %vm8356_vm1 = vsmask.f32 3328  ;;  %v6219_v5 = vld [vmem:[#allocation8 + $0x140] sm:$0xff]  }
 0x4d6   : > { %v3136_v25 = vsel %vm8356_vm1, %v3131_v58, %v3135_v48  ;;  %v3139_v28 = vor.u32 %v3138_v46, %v3137_v4  ;;  %v3146_v56 = vrot.slane %v2954_v62, 5  ;;  %v2770_v32 = vsel %vm8351_vm3, %v2767_v43, %v2769_v24  ;;  %vm8357_vm8 = vmmov %vm8356_vm1  ;;  %v6218_v43 = vld [vmem:[#allocation8 + $0xf8] sm:$0xff]  }
 0x4d7   : > { %5648 = vmatpush3.bf16.msra.mxu1 %v6214_v14  ;;  %v3143_v21 = vor.u32 %v3142_v17, %v3141_v47  ;;  %v2922_v37 = vsel %vm8352_vm2, %v2913_v3, %v2921_v16  ;;  %vm8358_vm13 = vmmov %vm8356_vm1  ;;  %v6220_v16 = vld [vmem:[#allocation8 + $0x148] sm:$0xff]   ;;  %v6221_v14 = vld [vmem:[#allocation8 + $0x150] sm:$0xff]   ;;  %v2960_v62 = vshrl.u32 %v7754_v15, 16  ;;  %v2963_v13 = vshll.u32 %v7754_v15, 16 }
 0x4d8   : > { %5649 = vmatprep.subr.bf16.mxu1 %v6215_v59  ;;  %v3140_v63 = vsel %vm8357_vm8, %v3135_v48, %v3139_v28  ;;  %v7770_v6 = vor.u32 %v3146_v56, %v3145_v31  ;;  %vm8359_vm7 = vmmov %vm8356_vm1  ;;  %v3122_v18 = vshrl.u32 %v7724_v52, 16  ;;  %v3125_v55 = vshll.u32 %v7724_v52, 16  ;;  %v6224_v15 = vld [vmem:[#allocation8 + $0x168] sm:$0xff]   ;;  %v3103_v48 = vld [vmem:[#allocation3 + $0x30] sm:$0x1f] }
 0x4d9   : > { %v3144_v27 = vsel %vm8358_vm13, %v3139_v28, %v3143_v21  ;;  %v2962_v9 = vrot.slane %v2960_v62, 3  ;;  %vm8360_vm1 = vmmov %vm8352_vm2  ;;  %v3150_v46 = vshrl.u32 %v3103_v48, 16  ;;  %v3153_v47 = vshll.u32 %v3103_v48, 16  ;;  %v6228_v28 = vld [vmem:[#allocation5 + $0x1c8] sm:$0xff]   ;;  %v6230_v56 = vld [vmem:[#allocation5 + $0x1d8] sm:$0xff]  }
 0x4da   : > { %5638 = vmatmul.mubr.bf16.gmra.mrb[20].mxu1 %v2770_v32  ;;  %v3148_v12 = vsel %vm8359_vm7, %v3143_v21, %v7770_v6  ;;  %v3124_v49 = vrot.slane %v3122_v18, 4  ;;  %vm8361_vm3 = vmmov %vm8359_vm7  ;;  %v6231_v32 = vld [vmem:[#allocation5 + $0x1e0] sm:$0xff]   ;;  %v6232_v21 = vld [vmem:[#allocation5 + $0x1e8] sm:$0xff]  }
 0x4db   : > { %5650 = vmatpush3.bf16.msra.mxu1 %v6215_v59  ;;  %5657 = vmatprep.mubr.bf16.mxu1 %v2922_v37  ;;  %v2965_v59 = vrot.slane %v2963_v13, 4  ;;  %v3152_v17 = vrot.slane %v3150_v46, 4  ;;  %vm8362_vm2 = vmmov %vm8361_vm3  ;;  %v6233_v37 = vld [vmem:[#allocation5 + $0x1f0] sm:$0xff]  }
 0x4dc   : > { %5651 = vmatprep.subr.bf16.mxu1 %v6216_v61 }
 0x4dd   : > { %v2966_v4 = vor.u32 %v2965_v59, %v2962_v9 }
 0x4df   : > { %5652 = vmatpush3.bf16.msra.mxu1 %v6216_v61  ;;  %v2967_v52 = vsel %vm8360_vm1, %v7760_v42, %v2966_v4  ;;  %v3155_v42 = vrot.slane %v3153_v47, 5  ;;  %v6227_v61 = vld [vmem:[#allocation5 + $0x1c0] sm:$0xff]  }
 0x4e0   : > { %5653 = vmatprep.subr.bf16.mxu1 %v6217_v8  ;;  %5697 = vmatprep.subr.bf16.mxu0 %v6227_v61 }
 0x4e1   : > { %5698 = vmatpush3.bf16.msra.mxu0 %v6227_v61 }
 0x4e2   : > { %5699 = vmatprep.subr.bf16.mxu0 %v6228_v28 }
 0x4e3   : > { %5654 = vmatpush3.bf16.msra.mxu1 %v6217_v8 }
 0x4e4   : > { %5655 = vmatprep.subr.bf16.mxu1 %v6218_v43 }
 0x4e5   : > { %5700 = vmatpush3.bf16.msra.mxu0 %v6228_v28 }
 0x4e7   : > { %5656 = vmatpush3.bf16.msra.mxu1 %v6218_v43 }
 0x4e8   : > { %5669 = vmatprep.subr.bf16.mxu1 %v6219_v5 }
 0x4ea   : > { %5658 = vmatmul.mubr.bf16.vlgmr.msra.gmra.mrb[12].mxu1 %v2931_v1  ;;  %v3127_v1 = vrot.slane %v3125_v55, 5 }
 0x4eb   : > { %5661 = vmatprep.mubr.bf16.mxu1 %v2940_v35  ;;  %5670 = vmatpush3.bf16.msra.mxu1 %v6219_v5  ;;  %v6223_v35 = vld [vmem:[#allocation8 + $0x160] sm:$0xff]  }
 0x4ec   : > { %5671 = vmatprep.subr.bf16.mxu1 %v6220_v16  ;;  %v3128_v24 = vor.u32 %v3127_v1, %v3124_v49 }
 0x4ee   : > { %v3132_v3 = vsel %vm8361_vm3, %v3128_v24, %v3131_v58  ;;  %v3156_v58 = vor.u32 %v3155_v42, %v3152_v17 }
 0x4ef   : > { %5672 = vmatpush3.bf16.msra.mxu1 %v6220_v16 }
 0x4f0   : > { %5673 = vmatprep.subr.bf16.mxu1 %v6221_v14  ;;  %v3157_v31 = vsel %vm8362_vm2, %v7770_v6, %v3156_v58  ;;  %v7784_v6 = vld [vmem:[#allocation5 + $0x180] sm:$0xff]  }
 0x4f2   : > { %5662 = vmatmul.mubr.bf16.gmra.mrb[16].mxu1 %v2949_v11  ;;  %v6225_v11 = vld [vmem:[#allocation8 + $0x170] sm:$0xff]  }
 0x4f3   : > { %5665 = vmatprep.mubr.bf16.mxu1 %v2958_v0  ;;  %5674 = vmatpush3.bf16.msra.mxu1 %v6221_v14  ;;  %v6226_v0 = vld [vmem:[#allocation8 + $0x178] sm:$0xff]  }
 0x4f4   : > { %5675 = vmatprep.subr.bf16.mxu1 %v6222_v51 }
 0x4f7   : > { %5676 = vmatpush3.bf16.msra.mxu1 %v6222_v51 }
 0x4f8   : > { %5677 = vmatprep.subr.bf16.mxu1 %v6223_v35 }
 0x4fa   : > { %5666 = vmatmul.mubr.bf16.gmra.mrb[20].mxu1 %v2967_v52 }
 0x4fb   : > { %5678 = vmatpush3.bf16.msra.mxu1 %v6223_v35  ;;  %5685 = vmatprep.mubr.bf16.mxu1 %v3132_v3 }
 0x4fc   : > { %5679 = vmatprep.subr.bf16.mxu1 %v6224_v15 }
 0x4ff   : > { %5680 = vmatpush3.bf16.msra.mxu1 %v6224_v15 }
 0x500   : > { %5681 = vmatprep.subr.bf16.mxu1 %v6225_v11 }
 0x503   : > { %5682 = vmatpush3.bf16.msra.mxu1 %v6225_v11 }
 0x504   : > { %5683 = vmatprep.subr.bf16.mxu1 %v6226_v0 }
 0x507   : > { %5684 = vmatpush3.bf16.msra.mxu1 %v6226_v0 }
 0x50a   : > { %5686 = vmatmul.mubr.bf16.vlgmr.msra.gmra.mrb[12].mxu1 %v3136_v25  ;;  %v6229_v25 = vld [vmem:[#allocation5 + $0x1d0] sm:$0xff]  }
 0x50b   : > { %5689 = vmatprep.mubr.bf16.mxu1 %v3140_v63  ;;  %5701 = vmatprep.subr.bf16.mxu0 %v6229_v25  ;;  %v6234_v63 = vld [vmem:[#allocation5 + $0x1f8] sm:$0xff]  }
 0x50c   : > { %5702 = vmatpush3.bf16.msra.mxu0 %v6229_v25 }
 0x50d   : > { %5703 = vmatprep.subr.bf16.mxu0 %v6230_v56 }
 0x510   : > { %5704 = vmatpush3.bf16.msra.mxu0 %v6230_v56 }
 0x511   : > { %5705 = vmatprep.subr.bf16.mxu0 %v6231_v32 }
 0x512   : > { %5690 = vmatmul.mubr.bf16.gmra.mrb[16].mxu1 %v3144_v27  ;;  %v7790_v27 = vld [vmem:[%s8328_s14 + $0x1] ss:$0 sm:$0xff] }
 0x513   : > { %5693 = vmatprep.mubr.bf16.mxu1 %v3148_v12 }
 0x514   : > { %5706 = vmatpush3.bf16.msra.mxu0 %v6231_v32 }
 0x515   : > { %5707 = vmatprep.subr.bf16.mxu0 %v6232_v21 }
 0x518   : > { %5708 = vmatpush3.bf16.msra.mxu0 %v6232_v21 }
 0x519   : > { %5709 = vmatprep.subr.bf16.mxu0 %v6233_v37 }
 0x51a   : > { %5694 = vmatmul.mubr.bf16.gmra.mrb[20].mxu1 %v3157_v31 }
 0x51c   : > { %5710 = vmatpush3.bf16.msra.mxu0 %v6233_v37 }
 0x51d   : > { %5711 = vmatprep.subr.bf16.mxu0 %v6234_v63 }
 0x520   : > { %5712 = vmatpush3.bf16.msra.mxu0 %v6234_v63 }
 0x521   : > { %5725 = vmatprep.subr.bf16.mxu0 %v7784_v6 }
 0x5dd   : > { %v5687_v8 = vpop.f32.mrb[12].mxu1 }
 0x5de   : > { %v3315_v12 = vadd.f32 %v5687_v8, %v7790_v27  ;;  %v3246_v43 = vpop.f32.mrb[13].mxu1 }
 0x5df   : > { %v3313_v5 = vadd.f32 %v7790_v27, %v3246_v43  ;;  %v5688_v16 = vpop.f32.mrb[14].mxu1 }
 0x5e0   : > { %v3327_v14 = vsel %vm7130_vm10, %v3315_v12, 0.0  ;;  %v3316_v62 = vadd.f32 %v5688_v16, %v7790_v27  ;;  %v3249_v13 = vpop.f32.mrb[15].mxu1 }
 0x5e1   : > { %v7798_v18 = vadd.f32 %v3327_v14, %v7481_v20  ;;  %v3325_v55 = vsel %vm7111_vm9, %v3313_v5, 0.0  ;;  %v3314_v51 = vadd.f32 %v7790_v27, %v3249_v13 }
 0x5e2   : > { %v3337_v9 = vadd.f32 %v3325_v55, %v7487_v2  ;;  %v3328_v59 = vsel %vm7142_vm5, %v3316_v62, 0.0 }
 0x5e3   : > { %v3363_v49 = vmul.f32 0.1, %v7798_v18  ;;  %v7808_v1 = vadd.f32 %v3328_v59, %v7493_v10  ;;  %v3326_v35 = vsel %vm7118_vm14, %v3314_v51, 0.0  ;;  %vm3351_vm8 = vcmp.ge.f32.partialorder %v7798_v18, 0.0 }
 0x5e4   : > { %vm3349_vm13 = vcmp.ge.f32.partialorder %v3337_v9, 0.0  ;;  %v3361_v20 = vmul.f32 0.1, %v3337_v9  ;;  %v3338_v4 = vadd.f32 %v3326_v35, %v7501_v29 }
 0x5e5   : > { %vm3352_vm7 = vcmp.ge.f32.partialorder %v7808_v1, 0.0  ;;  %v3364_v2 = vmul.f32 0.1, %v7808_v1  ;;  %v5691_v24 = vpop.f32.mrb[16].mxu1  ;;  %v3375_v3 = vsel %vm3351_vm8, %v7798_v18, %v3363_v49 }
 0x5e6   : > { %vm3350_vm1 = vcmp.ge.f32.partialorder %v3338_v4, 0.0  ;;  %v3362_v15 = vmul.f32 0.1, %v3338_v4  ;;  %v3319_v52 = vadd.f32 %v5691_v24, %v7790_v27  ;;  %v3262_v10 = vpop.f32.mrb[17].mxu1  ;;  %v3373_v11 = vsel %vm3349_vm13, %v3337_v9, %v3361_v20 }
 0x5e7   : > { %v3376_v0 = vsel %vm3352_vm7, %v7808_v1, %v3364_v2  ;;  %v3317_v48 = vadd.f32 %v7790_v27, %v3262_v10  ;;  %v5692_v46 = vpop.f32.mrb[18].mxu1  ;;  %vm8363_vm13 = vcmask 1043456  }
 0x5e8   : > { %v3386_v47 = vpack.c.bf16 %v3376_v0, %v3375_v3  ;;  %v3374_v29 = vsel %vm3350_vm1, %v3338_v4, %v3362_v15  ;;  %v3331_v17 = vsel %vm7192_vm12, %v3319_v52, 0.0  ;;  %v3320_v42 = vadd.f32 %v5692_v46, %v7790_v27  ;;  %v3265_v58 = vpop.f32.mrb[19].mxu1 }
 0x5e9   : > { %v3385_v31 = vpack.c.bf16 %v3374_v29, %v3373_v11  ;;  %v7824_v61 = vadd.f32 %v3331_v17, %v7517_v38  ;;  %v3329_v28 = vsel %vm7161_vm6, %v3317_v48, 0.0  ;;  %v3318_v25 = vadd.f32 %v7790_v27, %v3265_v58 }
 0x5ea   : > { %v7830_v56 = vadd.f32 %v3329_v28, %v7523_v7  ;;  %v3332_v32 = vsel %vm7198_vm4, %v3320_v42, 0.0  ;;  %v3398_v21 = vrot.slane %v3386_v47, 4  ;;  %vm8364_vm1 = vnez %v8313_v53 }
 0x5eb   : > { %v3397_v37 = vrot.slane %v3385_v31, 4  ;;  %v3367_v63 = vmul.f32 0.1, %v7824_v61  ;;  %v7836_v8 = vadd.f32 %v3332_v32, %v7529_v45  ;;  %vm3355_vm3 = vcmp.ge.f32.partialorder %v7824_v61, 0.0 }
 0x5ec   : > { %v3330_v38 = vsel %vm8316_vm0, %v3318_v25, 0.0  ;;  %vm3353_vm8 = vcmp.ge.f32.partialorder %v7830_v56, 0.0  ;;  %v3365_v43 = vmul.f32 0.1, %v7830_v56 }
 0x5ed   : > { %3415 = vst [vmem:[#allocation3] sm:$0xf0] %v3397_v37  ;;  %vm3356_vm2 = vcmp.ge.f32.partialorder %v7836_v8, 0.0  ;;  %v3368_v7 = vmul.f32 0.1, %v7836_v8  ;;  %v5695_v12 = vpop.f32.mrb[20].mxu1  ;;  %v7846_v5 = vadd.f32 %v3330_v38, %v7539_v36  ;;  %v7850_v14 = vsel %vm8363_vm13, %v3397_v37, %v3398_v21 }
 0x5ee   : > { %v3323_v45 = vadd.f32 %v5695_v12, %v7790_v27  ;;  %v3278_v16 = vpop.f32.mrb[21].mxu1  ;;  %v3379_v62 = vsel %vm3355_vm3, %v7824_v61, %v3367_v63  ;;  %vm8365_vm13 = vnez %v8308_v22  ;;  %v3377_v24 = vsel %vm3353_vm8, %v7830_v56, %v3365_v43 }
 0x5ef   : > { %v3380_v13 = vsel %vm3356_vm2, %v7836_v8, %v3368_v7  ;;  %v3321_v55 = vadd.f32 %v7790_v27, %v3278_v16  ;;  %v5696_v51 = vpop.f32.mrb[22].mxu1  ;;  %vm3354_vm7 = vcmp.ge.f32.partialorder %v7846_v5, 0.0  ;;  %v3366_v59 = vmul.f32 0.1, %v7846_v5  ;;  %v6236_v7 = vld [vmem:[#allocation5 + $0x188] sm:$0xff]  }
 0x5f0   : > { %v3388_v9 = vpack.c.bf16 %v3380_v13, %v3379_v62  ;;  %v3335_v36 = vsel %vm8364_vm1, %v3323_v45, 0.0  ;;  %v3281_v49 = vpop.f32.mrb[23].mxu1  ;;  %v3324_v4 = vadd.f32 %v5696_v51, %v7790_v27  ;;  %v3473_v46 = vrot.slane %v7850_v14, 4 }
 0x5f1   : > { %v3347_v35 = vadd.f32 %v3335_v36, %v7553_v34  ;;  %v3333_v20 = vsel %vm8365_vm13, %v3321_v55, 0.0  ;;  %v3322_v2 = vadd.f32 %v7790_v27, %v3281_v49  ;;  %v3378_v52 = vsel %vm3354_vm7, %v7846_v5, %v3366_v59  ;;  %v6237_v55 = vld [vmem:[#allocation5 + $0x190] sm:$0xff]  }
 0x5f2   : > { %v3402_v15 = vrot.slane %v3388_v9, 4  ;;  %v7869_v10 = vadd.f32 %v3333_v20, %v7564_v19  ;;  %v3387_v3 = vpack.c.bf16 %v3378_v52, %v3377_v24  ;;  %v3336_v11 = vsel %vm8342_vm11, %v3324_v4, 0.0  ;;  %v6238_v4 = vld [vmem:[#allocation5 + $0x198] sm:$0xff]  }
 0x5f3   : > { %vm3359_vm3 = vcmp.ge.f32.partialorder %v3347_v35, 0.0  ;;  %v3371_v34 = vmul.f32 0.1, %v3347_v35  ;;  %v3348_v0 = vadd.f32 %v3336_v11, %v7571_v50  ;;  %v3334_v27 = vsel %vm8343_vm15, %v3322_v2, 0.0 }
 0x5f4   : > { %v3446_v48 = vld [vmem:[#allocation3] sm:$0xf0]  ;;  %v3400_v47 = vrot.slane %v3387_v3, 4  ;;  %v3369_v29 = vmul.f32 0.1, %v7869_v10  ;;  %v7879_v19 = vadd.f32 %v3334_v27, %v7578_v39  ;;  %vm3357_vm2 = vcmp.ge.f32.partialorder %v7869_v10, 0.0 }
 0x5f5   : > { %v3472_v17 = vrot.slane %v3446_v48, 4  ;;  %v3383_v42 = vsel %vm3359_vm3, %v3347_v35, %v3371_v34  ;;  %vm3360_vm8 = vcmp.ge.f32.partialorder %v3348_v0, 0.0  ;;  %v3372_v58 = vmul.f32 0.1, %v3348_v0  ;;  %v3422_v13 = vld [vmem:[#allocation3] sm:$0xfe] }
 0x5f6   : > { %vm8366_vm7 = vcmask 1043456   ;;  %vm3358_vm15 = vcmp.ge.f32.partialorder %v7879_v19, 0.0  ;;  %v3370_v28 = vmul.f32 0.1, %v7879_v19  ;;  %v3381_v63 = vsel %vm3357_vm2, %v7869_v10, %v3369_v29  ;;  %v6239_v34 = vld [vmem:[#allocation5 + $0x1a0] sm:$0xff]  }
 0x5f7   : > { %v7883_v50 = vsel %vm8366_vm7, %v3398_v21, %v3400_v47  ;;  %vm8367_vm11 = vmmov %vm8366_vm7  ;;  %v3384_v25 = vsel %vm3360_vm8, %v3348_v0, %v3372_v58  ;;  %v3622_v49 = vshrl.u32 %v3422_v13, 16  ;;  %v3625_v35 = vshll.u32 %v3422_v13, 16 }
 0x5f8   : > { %v7886_v31 = vsel %vm8367_vm11, %v3400_v47, %v3402_v15  ;;  %vm8368_vm13 = vmmov %vm8366_vm7  ;;  %v3475_v32 = vrot.slane %v7883_v50, 4  ;;  %v3390_v38 = vpack.c.bf16 %v3384_v25, %v3383_v42  ;;  %v3382_v21 = vsel %vm3358_vm15, %v7879_v19, %v3370_v28  ;;  %v6240_v47 = vld [vmem:[#allocation5 + $0x1a8] sm:$0xff]   ;;  %v6241_v42 = vld [vmem:[#allocation5 + $0x1b0] sm:$0xff]  }
 0x5f9   : > { %v3474_v39 = vsel %vm8368_vm13, %v3472_v17, %v3473_v46  ;;  %v3477_v37 = vrot.slane %v7886_v31, 4  ;;  %v3389_v12 = vpack.c.bf16 %v3382_v21, %v3381_v63  ;;  %vm8369_vm11 = vmmov %vm8366_vm7  ;;  %v3630_v2 = vshrl.u32 %v7850_v14, 16 }
 0x5fa   : > { %5713 = vmatprep.mubr.bf16.mxu0 %v3474_v39  ;;  %v3476_v43 = vsel %vm8369_vm11, %v3473_v46, %v3475_v32  ;;  %vm8370_vm3 = vmmov %vm8366_vm7  ;;  %v3406_v16 = vrot.slane %v3390_v38, 4  ;;  %v3633_v24 = vshll.u32 %v7850_v14, 16  ;;  %v3627_v52 = vrot.slane %v3625_v35, 2  ;;  %v6250_v14 = vld [vmem:[#allocation5 + $0x238] sm:$0xff]  }
 0x5fb   : > { %v3478_v45 = vsel %vm8370_vm3, %v3475_v32, %v3477_v37  ;;  %5714 = vmatmul.mubr.bf16.vlgmr.msra.gmra.mrb[24].mxu0 %v3476_v43  ;;  %v3404_v62 = vrot.slane %v3389_v12, 4  ;;  %vm8371_vm13 = vmmov %vm8370_vm3  ;;  %v3632_v11 = vrot.slane %v3630_v2, 1  ;;  %vm3620_vm7 = vsmask.f32 6400  ;;  %v6242_v32 = vld [vmem:[#allocation5 + $0x1b8] sm:$0xff]  }
 0x5fc   : > { %5726 = vmatpush3.bf16.msra.mxu0 %v7784_v6  ;;  %5717 = vmatprep.mubr.bf16.mxu0 %v3478_v45  ;;  %3421 = vst [vmem:[#allocation3 + $0x30] sm:$0xf] %v3406_v16  ;;  %vm8372_vm15 = vmmov %vm8370_vm3  ;;  %v3635_v0 = vrot.slane %v3633_v24, 2  ;;  %v3639_v58 = vshrl.u32 %v7883_v50, 16  ;;  %v3642_v28 = vshll.u32 %v7883_v50, 16  ;;  %v3648_v25 = vshrl.u32 %v7886_v31, 16 }
 0x5fd   : > { %5727 = vmatprep.subr.bf16.mxu0 %v6236_v7  ;;  %v7899_v51 = vsel %vm8371_vm13, %v3402_v15, %v3404_v62  ;;  %v7902_v9 = vsel %vm8372_vm15, %v3404_v62, %v3406_v16  ;;  %vm8373_vm2 = vmmov %vm8370_vm3  ;;  %v3624_v15 = vrot.slane %v3622_v49, 1  ;;  %v3651_v39 = vshll.u32 %v7886_v31, 16 }
 0x5fe   : > { %v3479_v59 = vrot.slane %v7899_v51, 4  ;;  %v3481_v36 = vrot.slane %v7902_v9, 4  ;;  %vm8374_vm8 = vmmov %vm8373_vm2  ;;  %v3636_v46 = vor.u32 %v3635_v0, %v3632_v11  ;;  %v3644_v63 = vrot.slane %v3642_v28, 2 }
 0x5ff   : > { %v3628_v48 = vor.u32 %v3627_v52, %v3624_v15  ;;  %vm8375_vm11 = vmmov %vm8373_vm2  ;;  %v3650_v38 = vrot.slane %v3648_v25, 1  ;;  %v3653_v21 = vrot.slane %v3651_v39, 2  ;;  %v3657_v43 = vshrl.u32 %v7899_v51, 16  ;;  %v3818_v15 = vld [vmem:[#allocation3] sm:$0xc0]  ;;  %v6245_v52 = vld [vmem:[#allocation5 + $0x210] sm:$0xff]  }
 0x600   : > { %5728 = vmatpush3.bf16.msra.mxu0 %v6236_v7  ;;  %v3480_v6 = vsel %vm8373_vm2, %v3477_v37, %v3479_v59  ;;  %v3482_v20 = vsel %vm8374_vm8, %v3479_v59, %v3481_v36  ;;  %v3641_v37 = vrot.slane %v3639_v58, 1  ;;  %v6243_v7 = vld [vmem:[#allocation5 + $0x200] sm:$0xff]   ;;  %v3660_v45 = vshll.u32 %v7899_v51, 16 }
 0x601   : > { %5729 = vmatprep.subr.bf16.mxu0 %v6237_v55  ;;  %v3637_v17 = vsel %vm3620_vm7, %v3628_v48, %v3636_v46  ;;  %v3654_v16 = vor.u32 %v3653_v21, %v3650_v38  ;;  %v3666_v62 = vshrl.u32 %v7902_v9, 16  ;;  %v3669_v13 = vshll.u32 %v7902_v9, 16  ;;  %v6251_v9 = vld [vmem:[#allocation8 + $0x1c0] sm:$0xff]  }
 0x602   : > { %v3645_v12 = vor.u32 %v3644_v63, %v3641_v37  ;;  %v3662_v49 = vrot.slane %v3660_v45, 2  ;;  %v3842_v48 = vshll.u32 %v3818_v15, 16  ;;  %v6247_v63 = vld [vmem:[#allocation5 + $0x220] sm:$0xff]   ;;  %v3846_v38 = vrot.slane %v3630_v2, 6  ;;  %5781 = vmatprep.subr.bf16.mxu1 %v6251_v9 }
 0x603   : > { %5718 = vmatmul.mubr.bf16.gmra.mrb[28].mxu0 %v3480_v6  ;;  %v3447_v3 = vld [vmem:[#allocation3 + $0x30] sm:$0xf]  ;;  %v3668_v6 = vrot.slane %v3666_v62, 1  ;;  %v3847_v21 = vrot.slane %v3633_v24, 7  ;;  %vm3837_vm3 = vsmask.f32 1280  ;;  %5782 = vmatpush3.bf16.msra.mxu1 %v6251_v9 }
 0x604   : > { %5730 = vmatpush3.bf16.msra.mxu0 %v6237_v55  ;;  %5721 = vmatprep.mubr.bf16.mxu0 %v3482_v20  ;;  %v3483_v27 = vrot.slane %v3447_v3, 4  ;;  %v6244_v55 = vld [vmem:[#allocation5 + $0x208] sm:$0xff]   ;;  %v3646_v59 = vsel %vm3620_vm7, %v3636_v46, %v3645_v12  ;;  %v3655_v35 = vsel %vm3620_vm7, %v3645_v12, %v3654_v16  ;;  %v3671_v20 = vrot.slane %v3669_v13, 2  ;;  %v6246_v46 = vld [vmem:[#allocation5 + $0x218] sm:$0xff]  }
 0x605   : > { %5731 = vmatprep.subr.bf16.mxu0 %v6238_v4  ;;  %v3844_v37 = vrot.slane %v3842_v48, 7  ;;  %v3850_v2 = vrot.slane %v3639_v58, 6  ;;  %v3851_v24 = vrot.slane %v3642_v28, 7  ;;  %v3859_v50 = vrot.slane %v3660_v45, 7  ;;  %v6253_v48 = vld [vmem:[#allocation8 + $0x1d0] sm:$0xff]  }
 0x606   : > { %v3484_v29 = vsel %vm8375_vm11, %v3481_v36, %v3483_v27  ;;  %v3659_v36 = vrot.slane %v3657_v43, 1  ;;  %v3672_v0 = vor.u32 %v3671_v20, %v3668_v6  ;;  %v3839_v27 = vshrl.u32 %v3818_v15, 16 }
 0x607   : > { %v3855_v6 = vrot.slane %v3651_v39, 7  ;;  %v3852_v20 = vor.u32 %v3851_v24, %v3850_v2  ;;  %v3862_v31 = vrot.slane %v3666_v62, 6  ;;  %v3863_v28 = vrot.slane %v3669_v13, 7  ;;  %v6252_v13 = vld [vmem:[#allocation8 + $0x1c8] sm:$0xff]  }
 0x608   : > { %5732 = vmatpush3.bf16.msra.mxu0 %v6238_v4  ;;  %v3428_v4 = vld [vmem:[#allocation3 + $0x30] sm:$0x3]  ;;  %v3663_v3 = vor.u32 %v3662_v49, %v3659_v36  ;;  %v6249_v49 = vld [vmem:[#allocation5 + $0x230] sm:$0xff]   ;;  %5783 = vmatprep.subr.bf16.mxu1 %v6252_v13 }
 0x609   : > { %5733 = vmatprep.subr.bf16.mxu0 %v6239_v34  ;;  %v3678_v11 = vshll.u32 %v3428_v4, 16  ;;  %5784 = vmatpush3.bf16.msra.mxu1 %v6252_v13 }
 0x60a   : > { %5785 = vmatprep.subr.bf16.mxu1 %v6253_v48 }
 0x60b   : > { %5722 = vmatmul.mubr.bf16.gmra.mrb[32].mxu0 %v3484_v29 }
 0x60c   : > { %5734 = vmatpush3.bf16.msra.mxu0 %v6239_v34  ;;  %5741 = vmatprep.mubr.bf16.mxu0 %v3637_v17  ;;  %v3675_v34 = vshrl.u32 %v3428_v4, 16  ;;  %v3680_v17 = vrot.slane %v3678_v11, 2  ;;  %v3864_v11 = vor.u32 %v3863_v28, %v3862_v31 }
 0x60d   : > { %5735 = vmatprep.subr.bf16.mxu0 %v6240_v47  ;;  %5786 = vmatpush3.bf16.msra.mxu1 %v6253_v48 }
 0x60e   : > { %v3677_v29 = vrot.slane %v3675_v34, 1 }
 0x610   : > { %5736 = vmatpush3.bf16.msra.mxu0 %v6240_v47  ;;  %v3664_v47 = vsel %vm3620_vm7, %v3654_v16, %v3663_v3  ;;  %v3848_v16 = vor.u32 %v3847_v21, %v3846_v38 }
 0x611   : > { %5737 = vmatprep.subr.bf16.mxu0 %v6241_v42 }
 0x612   : > { %v3853_v15 = vsel %vm3837_vm3, %v3848_v16, %v3852_v20 }
 0x614   : > { %5738 = vmatpush3.bf16.msra.mxu0 %v6241_v42  ;;  %v3673_v42 = vsel %vm3620_vm7, %v3663_v3, %v3672_v0 }
 0x615   : > { %5739 = vmatprep.subr.bf16.mxu0 %v6242_v32 }
 0x618   : > { %5740 = vmatpush3.bf16.msra.mxu0 %v6242_v32  ;;  %v3841_v32 = vrot.slane %v3839_v27, 6 }
 0x619   : > { %5753 = vmatprep.subr.bf16.mxu0 %v6243_v7 }
 0x61a   : > { %v3845_v12 = vor.u32 %v3844_v37, %v3841_v32  ;;  %v7971_v32 = vld [vmem:[#allocation8 + $0x180] sm:$0xff]   ;;  %v7977_v37 = vld [vmem:[%s8182_s2 + $0x2] ss:$0 sm:$0xff] }
 0x61b   : > { %5742 = vmatmul.mubr.bf16.vlgmr.msra.gmra.mrb[24].mxu0 %v3646_v59 }
 0x61c   : > { %5745 = vmatprep.mubr.bf16.mxu0 %v3655_v35  ;;  %5754 = vmatpush3.bf16.msra.mxu0 %v6243_v7  ;;  %v3681_v7 = vor.u32 %v3680_v17, %v3677_v29  ;;  %v3849_v36 = vsel %vm3837_vm3, %v3845_v12, %v3848_v16  ;;  %v3854_v35 = vrot.slane %v3648_v25, 6  ;;  %v3819_v25 = vld [vmem:[#allocation3 + $0x30] sm:$0x7f]  ;;  %v6256_v29 = vld [vmem:[#allocation8 + $0x1e8] sm:$0xff]   ;;  %v6257_v17 = vld [vmem:[#allocation8 + $0x1f0] sm:$0xff]  }
 0x61d   : > { %5755 = vmatprep.subr.bf16.mxu0 %v6244_v55  ;;  %v3867_v3 = vshrl.u32 %v3819_v25, 16  ;;  %v3870_v34 = vshll.u32 %v3819_v25, 16 }
 0x61e   : > { %v3682_v59 = vsel %vm3620_vm7, %v3672_v0, %v3681_v7  ;;  %v3856_v4 = vor.u32 %v3855_v6, %v3854_v35 }
 0x61f   : > { %v3869_v0 = vrot.slane %v3867_v3, 6  ;;  %v3872_v51 = vrot.slane %v3870_v34, 7 }
 0x620   : > { %5756 = vmatpush3.bf16.msra.mxu0 %v6244_v55  ;;  %v6248_v55 = vld [vmem:[#allocation5 + $0x228] sm:$0xff]   ;;  %v3857_v58 = vsel %vm3837_vm3, %v3852_v20, %v3856_v4 }
 0x621   : > { %5757 = vmatprep.subr.bf16.mxu0 %v6245_v52  ;;  %v3873_v27 = vor.u32 %v3872_v51, %v3869_v0 }
 0x623   : > { %5746 = vmatmul.mubr.bf16.gmra.mrb[28].mxu0 %v3664_v47  ;;  %v3874_v62 = vsel %vm3837_vm3, %v3864_v11, %v3873_v27  ;;  %v6255_v47 = vld [vmem:[#allocation8 + $0x1e0] sm:$0xff]  }
 0x624   : > { %5749 = vmatprep.mubr.bf16.mxu0 %v3673_v42  ;;  %5758 = vmatpush3.bf16.msra.mxu0 %v6245_v52  ;;  %v3858_v52 = vrot.slane %v3657_v43, 6  ;;  %v6258_v42 = vld [vmem:[#allocation8 + $0x1f8] sm:$0xff]  }
 0x625   : > { %5759 = vmatprep.subr.bf16.mxu0 %v6246_v46 }
 0x626   : > { %v3860_v39 = vor.u32 %v3859_v50, %v3858_v52 }
 0x628   : > { %5760 = vmatpush3.bf16.msra.mxu0 %v6246_v46  ;;  %v3861_v43 = vsel %vm3837_vm3, %v3856_v4, %v3860_v39  ;;  %v3865_v45 = vsel %vm3837_vm3, %v3860_v39, %v3864_v11  ;;  %v6254_v46 = vld [vmem:[#allocation8 + $0x1d8] sm:$0xff]  }
 0x629   : > { %5761 = vmatprep.subr.bf16.mxu0 %v6247_v63  ;;  %5787 = vmatprep.subr.bf16.mxu1 %v6254_v46 }
 0x62a   : > { %5788 = vmatpush3.bf16.msra.mxu1 %v6254_v46 }
 0x62b   : > { %5750 = vmatmul.mubr.bf16.gmra.mrb[32].mxu0 %v3682_v59  ;;  %5789 = vmatprep.subr.bf16.mxu1 %v6255_v47 }
 0x62c   : > { %5762 = vmatpush3.bf16.msra.mxu0 %v6247_v63  ;;  %5769 = vmatprep.mubr.bf16.mxu0 %v3849_v36 }
 0x62d   : > { %5763 = vmatprep.subr.bf16.mxu0 %v6248_v55 }
 0x62e   : > { %5790 = vmatpush3.bf16.msra.mxu1 %v6255_v47 }
 0x62f   : > { %5791 = vmatprep.subr.bf16.mxu1 %v6256_v29 }
 0x630   : > { %5764 = vmatpush3.bf16.msra.mxu0 %v6248_v55 }
 0x631   : > { %5765 = vmatprep.subr.bf16.mxu0 %v6249_v49 }
 0x632   : > { %5792 = vmatpush3.bf16.msra.mxu1 %v6256_v29 }
 0x633   : > { %5793 = vmatprep.subr.bf16.mxu1 %v6257_v17 }
 0x634   : > { %5766 = vmatpush3.bf16.msra.mxu0 %v6249_v49 }
 0x635   : > { %5767 = vmatprep.subr.bf16.mxu0 %v6250_v14 }
 0x636   : > { %5794 = vmatpush3.bf16.msra.mxu1 %v6257_v17 }
 0x637   : > { %5795 = vmatprep.subr.bf16.mxu1 %v6258_v42 }
 0x638   : > { %5768 = vmatpush3.bf16.msra.mxu0 %v6250_v14 }
 0x63a   : > { %5796 = vmatpush3.bf16.msra.mxu1 %v6258_v42 }
 0x63b   : > { %5770 = vmatmul.mubr.bf16.vlgmr.msra.gmra.mrb[24].mxu0 %v3853_v15  ;;  %5809 = vmatprep.subr.bf16.mxu1 %v7971_v32 }
 0x63c   : > { %5773 = vmatprep.mubr.bf16.mxu0 %v3857_v58 }
 0x643   : > { %5774 = vmatmul.mubr.bf16.gmra.mrb[28].mxu0 %v3861_v43 }
 0x644   : > { %5777 = vmatprep.mubr.bf16.mxu0 %v3865_v45 }
 0x64b   : > { %5778 = vmatmul.mubr.bf16.gmra.mrb[32].mxu0 %v3874_v62 }
 0x70e   : > { %v5771_v63 = vpop.f32.mrb[24].mxu0 }
 0x70f   : > { %v4032_v38 = vadd.f32 %v5771_v63, %v7977_v37  ;;  %v3963_v21 = vpop.f32.mrb[25].mxu0 }
 0x710   : > { %v4030_v7 = vadd.f32 %v7977_v37, %v3963_v21  ;;  %v5772_v12 = vpop.f32.mrb[26].mxu0 }
 0x711   : > { %v4044_v16 = vsel %vm7130_vm10, %v4032_v38, 0.0  ;;  %v4033_v55 = vadd.f32 %v5772_v12, %v7977_v37  ;;  %v3966_v59 = vpop.f32.mrb[27].mxu0 }
 0x712   : > { %v4068_v36 = vmul.f32 0.1, %v4044_v16  ;;  %v4042_v49 = vsel %vm7111_vm9, %v4030_v7, 0.0  ;;  %v4031_v14 = vadd.f32 %v7977_v37, %v3966_v59  ;;  %vm4056_vm13 = vcmp.ge.f32.partialorder %v4044_v16, 0.0 }
 0x713   : > { %v4066_v2 = vmul.f32 0.1, %v4042_v49  ;;  %v4045_v24 = vsel %vm7142_vm5, %v4033_v55, 0.0  ;;  %vm4054_vm15 = vcmp.ge.f32.partialorder %v4042_v49, 0.0 }
 0x714   : > { %vm4057_vm2 = vcmp.ge.f32.partialorder %v4045_v24, 0.0  ;;  %v4069_v35 = vmul.f32 0.1, %v4045_v24  ;;  %v4043_v6 = vsel %vm7118_vm14, %v4031_v14, 0.0  ;;  %v4080_v4 = vsel %vm4056_vm13, %v4044_v16, %v4068_v36  ;;  %vm8376_vm14 = vmmov %vm8375_vm11 }
 0x715   : > { %vm4055_vm8 = vcmp.ge.f32.partialorder %v4043_v6, 0.0  ;;  %v4067_v20 = vmul.f32 0.1, %v4043_v6  ;;  %v4078_v23 = vsel %vm4054_vm15, %v4042_v49, %v4066_v2  ;;  %vm8377_vm15 = vnez %v8308_v22 }
 0x716   : > { %v4081_v15 = vsel %vm4057_vm2, %v4045_v24, %v4069_v35  ;;  %v5775_v52 = vpop.f32.mrb[28].mxu0 }
 0x717   : > { %v4091_v50 = vpack.c.bf16 %v4081_v15, %v4080_v4  ;;  %v4079_v58 = vsel %vm4055_vm8, %v4043_v6, %v4067_v20  ;;  %v4036_v31 = vadd.f32 %v5775_v52, %v7977_v37  ;;  %v3979_v28 = vpop.f32.mrb[29].mxu0  ;;  %vm8378_vm8 = vnez %v8315_v60 }
 0x718   : > { %v4090_v25 = vpack.c.bf16 %v4079_v58, %v4078_v23  ;;  %v4034_v39 = vadd.f32 %v7977_v37, %v3979_v28  ;;  %v5776_v3 = vpop.f32.mrb[30].mxu0 }
 0x719   : > { %v4103_v34 = vrot.slane %v4091_v50, 4  ;;  %v4048_v26 = vsel %vm7192_vm12, %v4036_v31, 0.0  ;;  %v4037_v11 = vadd.f32 %v5776_v3, %v7977_v37  ;;  %v3982_v43 = vpop.f32.mrb[31].mxu0 }
 0x71a   : > { %v4102_v0 = vrot.slane %v4090_v25, 4  ;;  %v4072_v51 = vmul.f32 0.1, %v4048_v26  ;;  %v4046_v45 = vsel %vm7161_vm6, %v4034_v39, 0.0  ;;  %vm4060_vm9 = vcmp.ge.f32.partialorder %v4048_v26, 0.0 }
 0x71b   : > { %v4070_v27 = vmul.f32 0.1, %v4046_v45  ;;  %v4049_v62 = vsel %vm7198_vm4, %v4037_v11, 0.0  ;;  %v4035_v9 = vadd.f32 %v7977_v37, %v3982_v43  ;;  %vm4058_vm7 = vcmp.ge.f32.partialorder %v4046_v45, 0.0 }
 0x71c   : > { %v8002_v13 = vsel %vm8376_vm14, %v4102_v0, %v4103_v34  ;;  %4120 = vst [vmem:[#allocation3] sm:$0xf0] %v4102_v0  ;;  %vm4061_vm11 = vcmp.ge.f32.partialorder %v4049_v62, 0.0  ;;  %v4073_v48 = vmul.f32 0.1, %v4049_v62  ;;  %v4084_v47 = vsel %vm4060_vm9, %v4048_v26, %v4072_v51 }
 0x71d   : > { %v4047_v46 = vsel %vm8316_vm0, %v4035_v9, 0.0  ;;  %v4082_v63 = vsel %vm4058_vm7, %v4046_v45, %v4070_v27  ;;  %v4177_v12 = vrot.slane %v8002_v13, 4  ;;  %v4329_v36 = vshrl.u32 %v8002_v13, 16  ;;  %vm8380_vm7 = vmmov %vm8376_vm14 }
 0x71e   : > { %v4085_v29 = vsel %vm4061_vm11, %v4049_v62, %v4073_v48  ;;  %vm4059_vm3 = vcmp.ge.f32.partialorder %v4047_v46, 0.0  ;;  %v4071_v17 = vmul.f32 0.1, %v4047_v46  ;;  %v5779_v42 = vpop.f32.mrb[32].mxu0  ;;  %v4332_v49 = vshll.u32 %v8002_v13, 16  ;;  %v6260_v48 = vld [vmem:[#allocation8 + $0x188] sm:$0xff]  }
 0x71f   : > { %v4093_v38 = vpack.c.bf16 %v4085_v29, %v4084_v47  ;;  %v4040_v21 = vadd.f32 %v5779_v42, %v7977_v37  ;;  %v3995_v7 = vpop.f32.mrb[33].mxu0  ;;  %v4331_v51 = vrot.slane %v4329_v36, 3 }
 0x720   : > { %v4083_v16 = vsel %vm4059_vm3, %v4047_v46, %v4071_v17  ;;  %v4038_v55 = vadd.f32 %v7977_v37, %v3995_v7  ;;  %v5780_v59 = vpop.f32.mrb[34].mxu0  ;;  %vm8381_vm3 = vmmov %vm8380_vm7 }
 0x721   : > { %v4107_v14 = vrot.slane %v4093_v38, 4  ;;  %v4092_v2 = vpack.c.bf16 %v4083_v16, %v4082_v63  ;;  %v4052_v24 = vsel %vm8364_vm1, %v4040_v21, 0.0  ;;  %v4041_v35 = vadd.f32 %v5780_v59, %v7977_v37  ;;  %v3998_v6 = vpop.f32.mrb[35].mxu0  ;;  %v6261_v16 = vld [vmem:[#allocation8 + $0x190] sm:$0xff]  }
 0x722   : > { %vm4064_vm13 = vcmp.ge.f32.partialorder %v4052_v24, 0.0  ;;  %v4076_v20 = vmul.f32 0.1, %v4052_v24  ;;  %v4050_v4 = vsel %vm8377_vm15, %v4038_v55, 0.0  ;;  %v4039_v15 = vadd.f32 %v7977_v37, %v3998_v6 }
 0x723   : > { %v4105_v52 = vrot.slane %v4092_v2, 4  ;;  %vm4062_vm2 = vcmp.ge.f32.partialorder %v4050_v4, 0.0  ;;  %v4074_v23 = vmul.f32 0.1, %v4050_v4  ;;  %v4053_v50 = vsel %vm8378_vm8, %v4041_v35, 0.0  ;;  %vm8383_vm8 = vmmov %vm8381_vm3 }
 0x724   : > { %vm4065_vm9 = vcmp.ge.f32.partialorder %v4053_v50, 0.0  ;;  %v4077_v58 = vmul.f32 0.1, %v4053_v50  ;;  %vm8379_vm1 = vnez %v8310_v41  ;;  %v8021_v31 = vld [vmem:[#allocation3] sm:$0xf0]  ;;  %v4088_v37 = vsel %vm4064_vm13, %v4052_v24, %v4076_v20  ;;  %vm8382_vm13 = vmmov %vm8381_vm3 }
 0x725   : > { %v4051_v53 = vsel %vm8379_vm1, %v4039_v15, 0.0  ;;  %v8024_v28 = vsel %vm8376_vm14, %v4103_v34, %v4105_v52  ;;  %v8027_v25 = vsel %vm8380_vm7, %v4105_v52, %v4107_v14  ;;  %v4176_v60 = vrot.slane %v8021_v31, 4  ;;  %v4127_v11 = vld [vmem:[#allocation3] sm:$0xf8] }
 0x726   : > { %vm4063_vm11 = vcmp.ge.f32.partialorder %v4051_v53, 0.0  ;;  %v4089_v39 = vsel %vm4065_vm9, %v4053_v50, %v4077_v58  ;;  %v4075_v3 = vmul.f32 0.1, %v4051_v53  ;;  %v4179_v26 = vrot.slane %v8024_v28, 4 }
 0x727   : > { %v4095_v43 = vpack.c.bf16 %v4089_v39, %v4088_v37  ;;  %v4181_v0 = vrot.slane %v8027_v25, 4  ;;  %v4334_v34 = vrot.slane %v4332_v49, 4  ;;  %v4086_v45 = vsel %vm4062_vm2, %v4050_v4, %v4074_v23  ;;  %vm8384_vm2 = vmmov %vm8381_vm3  ;;  %v6262_v39 = vld [vmem:[#allocation8 + $0x198] sm:$0xff]  }
 0x728   : > { %v4087_v27 = vsel %vm4063_vm11, %v4051_v53, %v4075_v3  ;;  %v4178_v62 = vsel %vm8381_vm3, %v4176_v60, %v4177_v12  ;;  %v4180_v9 = vsel %vm8382_vm13, %v4177_v12, %v4179_v26  ;;  %v4321_v17 = vshrl.u32 %v4127_v11, 16  ;;  %vm8385_vm9 = vmmov %vm8384_vm2 }
 0x729   : > { %v4111_v46 = vrot.slane %v4095_v43, 4  ;;  %v4094_v47 = vpack.c.bf16 %v4087_v27, %v4086_v45  ;;  %5797 = vmatprep.mubr.bf16.mxu1 %v4178_v62  ;;  %v4182_v29 = vsel %vm8383_vm8, %v4179_v26, %v4181_v0  ;;  %v4324_v42 = vshll.u32 %v4127_v11, 16  ;;  %vm8386_vm14 = vmmov %vm8384_vm2 }
 0x72a   : > { %5798 = vmatmul.mubr.bf16.vlgmr.msra.gmra.mrb[24].mxu1 %v4180_v9  ;;  %v4338_v63 = vshrl.u32 %v8024_v28, 16  ;;  %v4341_v38 = vshll.u32 %v8024_v28, 16  ;;  %v4347_v21 = vshrl.u32 %v8027_v25, 16  ;;  %v4350_v12 = vshll.u32 %v8027_v25, 16  ;;  %vm8387_vm7 = vmmov %vm8384_vm2  ;;  %v6263_v9 = vld [vmem:[#allocation8 + $0x1a0] sm:$0xff]  }
 0x72b   : > { %4126 = vst [vmem:[#allocation3 + $0x30] sm:$0xf] %v4111_v46  ;;  %v4109_v7 = vrot.slane %v4094_v47, 4  ;;  %5810 = vmatpush3.bf16.msra.mxu1 %v7971_v32  ;;  %5801 = vmatprep.mubr.bf16.mxu1 %v4182_v29  ;;  %v4335_v55 = vor.u32 %v4334_v34, %v4331_v51  ;;  %v4323_v20 = vrot.slane %v4321_v17, 3  ;;  %v4326_v23 = vrot.slane %v4324_v42, 4 }
 0x72c   : > { %5811 = vmatprep.subr.bf16.mxu1 %v6260_v48  ;;  %v4340_v59 = vrot.slane %v4338_v63, 3  ;;  %v4343_v2 = vrot.slane %v4341_v38, 4  ;;  %v4349_v24 = vrot.slane %v4347_v21, 3  ;;  %v4352_v4 = vrot.slane %v4350_v12, 4 }
 0x72d   : > { %v4110_v35 = vsel %vm8384_vm2, %v4107_v14, %v4109_v7  ;;  %v4112_v6 = vsel %vm8385_vm9, %v4109_v7, %v4111_v46  ;;  %vm8388_vm11 = vsmask.f32 4352  ;;  %v4539_v45 = vrot.slane %v4329_v36, 4  ;;  %vm8393_vm9 = vmmov %vm8387_vm7 }
 0x72e   : > { %v4183_v15 = vrot.slane %v4110_v35, 4  ;;  %v4185_v52 = vrot.slane %v4112_v6, 4  ;;  %v4344_v50 = vor.u32 %v4343_v2, %v4340_v59  ;;  %v4353_v32 = vor.u32 %v4352_v4, %v4349_v24  ;;  %vm8389_vm3 = vmmov %vm8388_vm11  ;;  %v6264_v2 = vld [vmem:[#allocation8 + $0x1a8] sm:$0xff]  }
 0x72f   : > { %5812 = vmatpush3.bf16.msra.mxu1 %v6260_v48  ;;  %v4356_v58 = vshrl.u32 %v4110_v35, 16  ;;  %v4359_v53 = vshll.u32 %v4110_v35, 16  ;;  %v4365_v28 = vshrl.u32 %v4112_v6, 16  ;;  %v4368_v3 = vshll.u32 %v4112_v6, 16  ;;  %vm8390_vm13 = vmmov %vm8389_vm3 }
 0x730   : > { %5813 = vmatprep.subr.bf16.mxu1 %v6261_v16  ;;  %v4184_v25 = vsel %vm8386_vm14, %v4181_v0, %v4183_v15  ;;  %v4186_v37 = vsel %vm8387_vm7, %v4183_v15, %v4185_v52  ;;  %v4345_v14 = vsel %vm8388_vm11, %v4335_v55, %v4344_v50  ;;  %v4354_v60 = vsel %vm8389_vm3, %v4344_v50, %v4353_v32  ;;  %vm8391_vm8 = vmmov %vm8389_vm3 }
 0x731   : > { %v4358_v26 = vrot.slane %v4356_v58, 3  ;;  %v4361_v11 = vrot.slane %v4359_v53, 4  ;;  %v4367_v43 = vrot.slane %v4365_v28, 3  ;;  %v4370_v34 = vrot.slane %v4368_v3, 4  ;;  %vm8394_vm14 = vmmov %vm8389_vm3 }
 0x732   : > { %5802 = vmatmul.mubr.bf16.gmra.mrb[28].mxu1 %v4184_v25  ;;  %v8051_v51 = vld [vmem:[#allocation3 + $0x30] sm:$0xf]  ;;  %v4540_v0 = vrot.slane %v4332_v49, 5  ;;  %v4543_v27 = vrot.slane %v4338_v63, 4  ;;  %v4544_v46 = vrot.slane %v4341_v38, 5  ;;  %v4547_v47 = vrot.slane %v4347_v21, 4 }
 0x733   : > { %5814 = vmatpush3.bf16.msra.mxu1 %v6261_v16  ;;  %5805 = vmatprep.mubr.bf16.mxu1 %v4186_v37  ;;  %v4362_v62 = vor.u32 %v4361_v11, %v4358_v26  ;;  %v8057_v48 = vor.u32 %v4370_v34, %v4367_v43  ;;  %v4187_v29 = vrot.slane %v8051_v51, 4  ;;  %v4327_v17 = vor.u32 %v4326_v23, %v4323_v20  ;;  %v6265_v23 = vld [vmem:[#allocation8 + $0x1b0] sm:$0xff]  }
 0x734   : > { %5815 = vmatprep.subr.bf16.mxu1 %v6262_v39  ;;  %v4541_v13 = vor.u32 %v4540_v0, %v4539_v45  ;;  %v4545_v49 = vor.u32 %v4544_v46, %v4543_v27  ;;  %v4548_v63 = vrot.slane %v4350_v12, 5  ;;  %v4551_v7 = vrot.slane %v4356_v58, 4  ;;  %v6269_v58 = vld [vmem:[#allocation8 + $0x210] sm:$0xff]   ;;  %v6274_v27 = vld [vmem:[#allocation8 + $0x238] sm:$0xff]  }
 0x735   : > { %v4363_v42 = vsel %vm8390_vm13, %v4353_v32, %v4362_v62  ;;  %v4372_v36 = vsel %vm8391_vm8, %v4362_v62, %v8057_v48  ;;  %v4552_v16 = vrot.slane %v4359_v53, 5  ;;  %v4555_v59 = vrot.slane %v4365_v28, 4  ;;  %v6267_v32 = vld [vmem:[#allocation8 + $0x200] sm:$0xff]   ;;  %vm8398_vm13 = vmmov %vm8391_vm8  ;;  %v6273_v0 = vld [vmem:[#allocation8 + $0x230] sm:$0xff]  }
 0x736   : > { %vm8392_vm2 = vsmask.f32 3328  ;;  %v4549_v21 = vor.u32 %v4548_v63, %v4547_v47  ;;  %v4556_v24 = vrot.slane %v4368_v3, 5  ;;  %v4188_v35 = vsel %vm8393_vm9, %v4185_v52, %v4187_v29  ;;  %v6266_v52 = vld [vmem:[#allocation8 + $0x1b8] sm:$0xff]  }
 0x737   : > { %5816 = vmatpush3.bf16.msra.mxu1 %v6262_v39  ;;  %v4546_v38 = vsel %vm8392_vm2, %v4541_v13, %v4545_v49  ;;  %v4553_v6 = vor.u32 %v4552_v16, %v4551_v7  ;;  %v4336_v20 = vsel %vm8394_vm14, %v4327_v17, %v4335_v55  ;;  %vm8395_vm7 = vmmov %vm8392_vm2  ;;  %v6268_v55 = vld [vmem:[#allocation8 + $0x208] sm:$0xff]   ;;  %v4374_v53 = vshrl.u32 %v8051_v51, 16  ;;  %v6270_v39 = vld [vmem:[#allocation8 + $0x218] sm:$0xff]  }
 0x738   : > { %5817 = vmatprep.subr.bf16.mxu1 %v6263_v9  ;;  %v4550_v4 = vsel %vm8395_vm7, %v4545_v49, %v4549_v21  ;;  %v8067_v15 = vor.u32 %v4556_v24, %v4555_v59  ;;  %vm8396_vm11 = vmmov %vm8392_vm2  ;;  %v4377_v28 = vshll.u32 %v8051_v51, 16  ;;  %v4532_v25 = vshrl.u32 %v8021_v31, 16  ;;  %v6272_v51 = vld [vmem:[#allocation8 + $0x228] sm:$0xff]   ;;  %v4513_v62 = vld [vmem:[#allocation3 + $0x30] sm:$0x1f] }
 0x739   : > { %v4554_v12 = vsel %vm8396_vm11, %v4549_v21, %v4553_v6  ;;  %vm8397_vm3 = vmmov %vm8392_vm2  ;;  %v4535_v37 = vshll.u32 %v8021_v31, 16  ;;  %v4376_v3 = vrot.slane %v4374_v53, 3  ;;  %v4563_v46 = vshll.u32 %v4513_v62, 16 }
 0x73a   : > { %5806 = vmatmul.mubr.bf16.gmra.mrb[32].mxu1 %v4188_v35  ;;  %v4558_v50 = vsel %vm8397_vm3, %v4553_v6, %v8067_v15  ;;  %v4379_v26 = vrot.slane %v4377_v28, 4  ;;  %v4534_v11 = vrot.slane %v4532_v25, 4  ;;  %vm8399_vm8 = vmmov %vm8392_vm2 }
 0x73b   : > { %5818 = vmatpush3.bf16.msra.mxu1 %v6263_v9  ;;  %5825 = vmatprep.mubr.bf16.mxu1 %v4336_v20  ;;  %v4560_v9 = vshrl.u32 %v4513_v62, 16 }
 0x73c   : > { %5819 = vmatprep.subr.bf16.mxu1 %v6264_v2  ;;  %v4380_v43 = vor.u32 %v4379_v26, %v4376_v3 }
 0x73d   : > { %v4562_v47 = vrot.slane %v4560_v9, 4 }
 0x73e   : > { %v4381_v31 = vsel %vm8398_vm13, %v8057_v48, %v4380_v43  ;;  %v4565_v48 = vrot.slane %v4563_v46, 5 }
 0x73f   : > { %5820 = vmatpush3.bf16.msra.mxu1 %v6264_v2 }
 0x740   : > { %5821 = vmatprep.subr.bf16.mxu1 %v6265_v23  ;;  %v4566_v29 = vor.u32 %v4565_v48, %v4562_v47 }
 0x742   : > { %v4567_v17 = vsel %vm8392_vm2, %v8067_v15, %v4566_v29 }
 0x743   : > { %5822 = vmatpush3.bf16.msra.mxu1 %v6265_v23 }
 0x744   : > { %5823 = vmatprep.subr.bf16.mxu1 %v6266_v52 }
 0x747   : > { %5824 = vmatpush3.bf16.msra.mxu1 %v6266_v52 }
 0x748   : > { %5837 = vmatprep.subr.bf16.mxu1 %v6267_v32 }
 0x74a   : > { %5826 = vmatmul.mubr.bf16.vlgmr.msra.gmra.mrb[36].mxu1 %v4345_v14  ;;  %v4537_v14 = vrot.slane %v4535_v37, 5 }
 0x74b   : > { %5829 = vmatprep.mubr.bf16.mxu1 %v4354_v60  ;;  %5838 = vmatpush3.bf16.msra.mxu1 %v6267_v32  ;;  %v6271_v60 = vld [vmem:[#allocation8 + $0x220] sm:$0xff]   ;;  %v5094_v32 = vld [vmem:[%s8328_s14 + $0x2] ss:$0 sm:$0xff] }
 0x74c   : > { %5839 = vmatprep.subr.bf16.mxu1 %v6268_v55  ;;  %v4538_v34 = vor.u32 %v4537_v14, %v4534_v11 }
 0x74e   : > { %v4542_v45 = vsel %vm8399_vm8, %v4538_v34, %v4541_v13 }
 0x74f   : > { %5840 = vmatpush3.bf16.msra.mxu1 %v6268_v55 }
 0x750   : > { %5841 = vmatprep.subr.bf16.mxu1 %v6269_v58 }
 0x752   : > { %5830 = vmatmul.mubr.bf16.gmra.mrb[28].mxu1 %v4363_v42 }
 0x753   : > { %5833 = vmatprep.mubr.bf16.mxu1 %v4372_v36  ;;  %5842 = vmatpush3.bf16.msra.mxu1 %v6269_v58 }
 0x754   : > { %5843 = vmatprep.subr.bf16.mxu1 %v6270_v39 }
 0x757   : > { %5844 = vmatpush3.bf16.msra.mxu1 %v6270_v39 }
 0x758   : > { %5845 = vmatprep.subr.bf16.mxu1 %v6271_v60 }
 0x75a   : > { %5834 = vmatmul.mubr.bf16.gmra.mrb[40].mxu1 %v4381_v31 }
 0x75b   : > { %5846 = vmatpush3.bf16.msra.mxu1 %v6271_v60  ;;  %5853 = vmatprep.mubr.bf16.mxu1 %v4542_v45 }
 0x75c   : > { %5847 = vmatprep.subr.bf16.mxu1 %v6272_v51 }
 0x75f   : > { %5848 = vmatpush3.bf16.msra.mxu1 %v6272_v51 }
 0x760   : > { %5849 = vmatprep.subr.bf16.mxu1 %v6273_v0 }
 0x763   : > { %5850 = vmatpush3.bf16.msra.mxu1 %v6273_v0 }
 0x764   : > { %5851 = vmatprep.subr.bf16.mxu1 %v6274_v27 }
 0x767   : > { %5852 = vmatpush3.bf16.msra.mxu1 %v6274_v27 }
 0x76a   : > { %5854 = vmatmul.mubr.bf16.vlgmr.msra.gmra.mrb[44].mxu1 %v4546_v38 }
 0x76b   : > { %5857 = vmatprep.mubr.bf16.mxu1 %v4550_v4 }
 0x772   : > { %5858 = vmatmul.mubr.bf16.gmra.mrb[28].mxu1 %v4554_v12 }
 0x773   : > { %5861 = vmatprep.mubr.bf16.mxu1 %v4558_v50 }
 0x77a   : > { %5862 = vmatmul.mubr.bf16.gmra.mrb[48].mxu1 %v4567_v17 }
 0x7fd   : > { %v5799_v42 = vpop.f32.mrb[24].mxu1 }
 0x7fe   : > { %v4277_v36 = vpop.f32.mrb[25].mxu1 }
 0x7ff   : > { %v5800_v13 = vpop.f32.mrb[26].mxu1 }
 0x800   : > { %v4279_v49 = vpop.f32.mrb[27].mxu1 }
 0x80d   : > { %v5807_v63 = vpop.f32.mrb[32].mxu1 }
 0x80e   : > { %v4307_v7 = vpop.f32.mrb[33].mxu1 }
 0x80f   : > { %v5808_v16 = vpop.f32.mrb[34].mxu1 }
 0x810   : > { %v4310_v59 = vpop.f32.mrb[35].mxu1 }
 0x81d   : > { %v5827_v2 = vpop.f32.mrb[36].mxu1 }
 0x81e   : > { %v4477_v38 = vadd.f32 %v5827_v2, %v5799_v42  ;;  %v4470_v21 = vpop.f32.mrb[37].mxu1 }
 0x81f   : > { %v5828_v24 = vpop.f32.mrb[38].mxu1 }
 0x820   : > { %v4480_v35 = vadd.f32 %v5828_v24, %v5800_v13  ;;  %v4472_v6 = vpop.f32.mrb[39].mxu1 }
 0x82d   : > { %v5835_v20 = vpop.f32.mrb[40].mxu1 }
 0x82e   : > { %v4500_v4 = vpop.f32.mrb[41].mxu1 }
 0x82f   : > { %v4501_v12 = vadd.f32 %v4500_v4, %v4307_v7  ;;  %v5836_v15 = vpop.f32.mrb[42].mxu1 }
 0x830   : > { %v4503_v23 = vpop.f32.mrb[43].mxu1 }
 0x831   : > { %v4504_v50 = vadd.f32 %v4503_v23, %v4310_v59 }
 0x83d   : > { %v5855_v52 = vpop.f32.mrb[44].mxu1 }
 0x83e   : > { %v4699_v55 = vadd.f32 %v5855_v52, %v4477_v38  ;;  %v4656_v58 = vpop.f32.mrb[45].mxu1 }
 0x83f   : > { %v5856_v53 = vpop.f32.mrb[46].mxu1 }
 0x840   : > { %v4715_v28 = vadd.f32 %v5094_v32, %v4699_v55  ;;  %v4700_v25 = vadd.f32 %v5856_v53, %v4480_v35  ;;  %v4658_v37 = vpop.f32.mrb[47].mxu1 }
 0x842   : > { %v4723_v39 = vsel %vm7130_vm10, %v4715_v28, 0.0  ;;  %v4716_v3 = vadd.f32 %v5094_v32, %v4700_v25 }
 0x843   : > { %v4731_v26 = vadd.f32 %v4723_v39, %v7798_v18 }
 0x844   : > { %v4724_v11 = vsel %vm7142_vm5, %v4716_v3, 0.0 }
 0x845   : > { %4739 = vst [vmem:[%s7068_s6] sm:$0xff] %v4731_v26  ;;  %v4732_v14 = vadd.f32 %v4724_v11, %v7808_v1  ;;  %v5859_v60 = vpop.f32.mrb[28].mxu1 }
 0x846   : > { %v4719_v43 = vadd.f32 %v5859_v60, %v5094_v32  ;;  %v4670_v34 = vpop.f32.mrb[29].mxu1 }
 0x847   : > { %4740 = vst [vmem:[%s7068_s6 + $0x8] sm:$0xff] %v4732_v14  ;;  %v4717_v51 = vadd.f32 %v5094_v32, %v4670_v34  ;;  %v5860_v31 = vpop.f32.mrb[30].mxu1 }
 0x848   : > { %v4727_v30 = vsel %vm7192_vm12, %v4719_v43, 0.0  ;;  %v4720_v18 = vadd.f32 %v5860_v31, %v5094_v32  ;;  %v4673_v33 = vpop.f32.mrb[31].mxu1 }
 0x849   : > { %v4735_v45 = vadd.f32 %v4727_v30, %v7824_v61  ;;  %v4725_v1 = vsel %vm7161_vm6, %v4717_v51, 0.0  ;;  %v4718_v0 = vadd.f32 %v5094_v32, %v4673_v33 }
 0x84a   : > { %v4733_v27 = vadd.f32 %v4725_v1, %v7830_v56  ;;  %v4728_v62 = vsel %vm7198_vm4, %v4720_v18, 0.0 }
 0x84b   : > { %4743 = vst [vmem:[%s7068_s6 + $0x20] sm:$0xff] %v4735_v45  ;;  %v4736_v54 = vadd.f32 %v4728_v62, %v7836_v8  ;;  %v4726_v9 = vsel %vm8316_vm0, %v4718_v0, 0.0 }
 0x84c   : > { %4741 = vst [vmem:[%s7068_s6 + $0x10] sm:$0xff] %v4733_v27  ;;  %v4734_v46 = vadd.f32 %v4726_v9, %v7846_v5 }
 0x84d   : > { %4744 = vst [vmem:[%s7068_s6 + $0x28] sm:$0xff] %v4736_v54  ;;  %v5863_v61 = vpop.f32.mrb[48].mxu1 }
 0x84e   : > { %4742 = vst [vmem:[%s7068_s6 + $0x18] sm:$0xff] %v4734_v46  ;;  %v4686_v40 = vpop.f32.mrb[49].mxu1 }
 0x84f   : > { %v4705_v56 = vadd.f32 %v4686_v40, %v4501_v12  ;;  %v5864_v57 = vpop.f32.mrb[50].mxu1 }
 0x850   : > { %v4689_v47 = vpop.f32.mrb[51].mxu1 }
 0x851   : > { %v4721_v8 = vadd.f32 %v5094_v32, %v4705_v56  ;;  %v4706_v44 = vadd.f32 %v4689_v47, %v4504_v50 }
 0x853   : > { %v4729_v5 = vsel %vm8377_vm15, %v4721_v8, 0.0  ;;  %v4722_v48 = vadd.f32 %v5094_v32, %v4706_v44 }
 0x854   : > { %v4737_v29 = vadd.f32 %v4729_v5, %v7869_v10 }
 0x855   : > { %v4730_v17 = vsel %vm8379_vm1, %v4722_v48, 0.0 }
 0x856   : > { %4745 = vst [vmem:[%s7068_s6 + $0x30] sm:$0xff] %v4737_v29  ;;  %v4738_v42 = vadd.f32 %v4730_v17, %v7879_v19 }
 0x858   : > { %4746 = vst [vmem:[%s7068_s6 + $0x38] sm:$0xff] %v4738_v42 }
 0x859   : > { %6524 = shalt.err (!%p6521_p6)
}
 0x85a   : > { %s6525_s6 = scalar_lea.hbm %s8123_s20, 1024  ;;  %s6529_s1 = scalar_lea.hbm %s8403_s10, 8192 }
 0x85b   : > { %p6526_p7 = scmp.ne.s32.totalorder %s8123_s20, %s6525_s6  ;;  %p6530_p4 = scmp.lt.u32.totalorder %s8123_s20, %s8403_s10 }
 0x85c   : > { %p6531_p3 = scmp.lt.u32.totalorder %s6529_s1, %s6525_s6  ;;  %p6533_p10 = scmp.lt.u32.totalorder %s6525_s6, %s8123_s20 }
 0x85d   : > { %p6527_p8 = pnand %p6526_p7, %p8405_p2 }
 0x85e   : > { %p6532_p1 = por %p6531_p3, %p6530_p4 }
 0x85f   : > { %p6528_p13 = pneg %p6527_p8 }
 0x860   : > { %p6534_p0 = por %p6533_p10, %p6532_p1 }
 0x862   : > { %p6535_p5 = pnand %p6534_p0, %p6528_p13 }
 0x864   : > { %6538 = shalt.err (!%p6535_p5)
}
 0x865   : > { %s6634_s7 = smov 128   ;;  %s6635_s23 = smov 8  }
 0x866   : > { %6017 = dma.vmem_to_hbm [thread:$0]  (%p8405_p2), %s8116_s4, 1024, %s8123_s20, %s8128_s8, %s6634_s7, %s6634_s7, %s6635_s23  }
 0x867 PF: > { %s8406_s26 = sld [smem:[#allocation36_spill]]  ;;  %s8407_s29 = sld [smem:[#allocation31_spill]] }
 0x868   : > { %s8408_s9 = sld [smem:[#allocation40_spill]] }
 0x86d   : > { %p6059_p11 = scmp.ge.s32.totalorder %s8406_s26, 2  ;;  %s4778_s16 = sand.u32 1, %s8407_s29  }
 0x86e   : > { %p8409_p9 = scmp.ne.s32.totalorder %s8408_s9, 0  ;;  %s4779_s27 = scalar_lea.sflag [#allocation7], %s4778_s16 }
 0x870   : > { %p6045_p12 = pnand %p6059_p11, %p8409_p9 }
 0x872   : > { %6592 = dma.done.wait (!%p6045_p12), %s4779_s27, 1024  }
 0x873   : > { %6594 = vsyncadd (!%p6045_p12), %s4779_s27, 4294966272  ;;  %s20_s25 = sadd.s32 1, %s8406_s26   ;;  %s8410_s18 = sld [smem:[#allocation32_spill]] }
 0x874   : > { %p17_p6 = scmp.ge.s32.totalorder %s20_s25, 10   ;;  %s8411_s19 = sld [smem:[#allocation33_spill]] }
 0x875   : > { %s8412_s20 = sld [smem:[#allocation41_spill]]  ;;  %s8413_s21 = sld [smem:[#allocation34_spill]] }
 0x876   : > { %s8414_s22 = sld [smem:[#allocation35_spill]]  ;;  %s8415_s23 = sld [smem:[#allocation37_spill]] }
 0x877   : > { %s8416_s24 = sld [smem:[#allocation39_spill]]  ;;  %19 = sbr.rel (!%p17_p6) target bundleno = 12 (0xc), region = 182 }
 0x87e   :  { %4784 = vsyncpa [#allocation6], 1 }
 0x87f   :  { %4786 = vsyncpa [#allocation6 + $0x1], 1 }
 0x880   :  { %4787 = vsyncpa [#allocation9], 1 }
 0x881   :  { %4788 = vsyncpa [#allocation7], 1 }
 0x882   :  { %4790 = vsyncpa [#allocation7 + $0x1], 1 }
 0x883   :  { %4791 = vsyncmov [#allocation4] }
 0x886   :  { %s4792_s11 = vpop.sfrf %4791 }
 0x887   :  { %p5101_p2 = scmp.ne.s32.totalorder %s4792_s11, 0 }
 0x889   :  { %4796 = shalt.err (%p5101_p2)  }
 0x88a   :  { %4798 = vsyncmov [#allocation4 + $0x1] }
 0x88d   :  { %s4799_s5 = vpop.sfrf %4798 }
 0x88e   :  { %p5102_p7 = scmp.ne.s32.totalorder %s4799_s5, 0 }
 0x890   :  { %4803 = shalt.err (%p5102_p7)  }

</bundles_post_ra>
